<compile_context>
chip_gen: v5e
topology: v5e:2x2
jax: 0.10.0
libtpu: 0.0.40
codegen_flags: <defaults>
</compile_context>

<pallas_src>
import math
import functools

import jax
import jax.numpy as jnp
from jax import lax
from jax.experimental import pallas as pl
from jax.experimental.pallas import tpu as pltpu


def _mhca_kernel(tokens_ref, gamma_ref, beta_ref,
                 wq_ref, wk_ref, wv_ref, wo_ref,
                 out_ref, k_out_ref, v_out_ref,
                 ln_s, k_s, v_s,
                 *, num_heads, head_dim, tile_q, num_q_tiles, eps):
    """grid = (batch, query_tile).  Batch dim is squeezed out of the refs."""
    H, D, KB, TQ = num_heads, head_dim, num_q_tiles, tile_q
    L, E = tokens_ref.shape          # full sequence block (batch dim squeezed)
    qi = pl.program_id(1)

    # ---- once per batch element: LayerNorm + K/V projections ----------------
    @pl.when(qi == 0)
    def _():
        x = tokens_ref[...]                                   # (L, E) f32
        mean = jnp.mean(x, axis=-1, keepdims=True)
        cen = x - mean
        var = jnp.mean(cen * cen, axis=-1, keepdims=True)
        ln = (cen * lax.rsqrt(var + eps)) * gamma_ref[...] + beta_ref[...]
        ln_bf = ln.astype(jnp.bfloat16)                       # bf16 feeds MXU
        ln_s[...] = ln.reshape(KB, TQ, E).astype(jnp.bfloat16)
        # Module quirk: k comes from v_linear, v comes from k_linear.
        k_flat = jnp.dot(ln_bf, wv_ref[...], preferred_element_type=jnp.float32)
        for h in range(H):                                    # head-major bf16 scratch
            k_s[h] = (k_flat[:, h * D:(h + 1) * D]
                      .reshape(KB, TQ, D).astype(jnp.bfloat16))
        v_flat = jnp.dot(ln_bf, wk_ref[...], preferred_element_type=jnp.float32)
        for h in range(H):
            v_s[h] = (v_flat[:, h * D:(h + 1) * D]
                      .reshape(KB, TQ, D).astype(jnp.bfloat16))

    # ---- per query tile ------------------------------------------------------
    q_start = pl.multiple_of(qi * TQ, TQ)
    x_tile = tokens_ref[pl.ds(q_start, TQ), :]                # (TQ, E) residual, f32
    ln_tile = ln_s[qi]                                        # (TQ, E) bf16

    # wq already carries the 1/sqrt(D) softmax scale (folded on the host).
    q = jnp.dot(ln_tile, wq_ref[...],
                preferred_element_type=jnp.float32).astype(jnp.bfloat16)  # (TQ, H*D)

    row = q_start + lax.broadcasted_iota(jnp.int32, (TQ, TQ), 0)
    col_in_blk = lax.broadcasted_iota(jnp.int32, (TQ, TQ), 1)

    o_heads = []
    for h in range(H):                                        # H small & static
        qh = q[:, h * D:(h + 1) * D]                          # (TQ, D) bf16

        def block_step(kb, carry, *, masked):
            m, l, acc = carry
            k_blk = k_s[h, kb]                                # (TQ, D) bf16
            v_blk = v_s[h, kb]
            s = lax.dot_general(qh, k_blk, (((1,), (1,)), ((), ())),
                                preferred_element_type=jnp.float32)  # (TQ, TQ)
            if masked:                                        # diagonal block only
                s = jnp.where(kb * TQ + col_in_blk <= row, s, -jnp.inf)
            m_new = jnp.maximum(m, jnp.max(s, axis=-1, keepdims=True))
            alpha = jnp.exp(m - m_new)
            p = jnp.exp(s - m_new)
            l_new = alpha * l + jnp.sum(p, axis=-1, keepdims=True)
            acc_new = alpha * acc + jnp.dot(p.astype(jnp.bfloat16), v_blk,
                                            preferred_element_type=jnp.float32)
            return m_new, l_new, acc_new

        carry0 = (jnp.full((TQ, 1), -jnp.inf, jnp.float32),
                  jnp.zeros((TQ, 1), jnp.float32),
                  jnp.zeros((TQ, D), jnp.float32))
        # Causal block skipping: only key blocks kb <= qi contribute.
        carry = lax.fori_loop(0, qi, lambda kb, c: block_step(kb, c, masked=False),
                              carry0)
        _, l_f, acc_f = block_step(qi, carry, masked=True)    # diagonal block
        # Normalize after PV: scale the (TQ, D) accumulator, not (TQ, L) probs.
        o_heads.append(acc_f * pl.reciprocal(l_f, approx=True))

    # One wide output projection: contraction over H*D, not per-head D.
    agg = jnp.concatenate(o_heads, axis=-1).astype(jnp.bfloat16)   # (TQ, H*D)
    proj = jnp.dot(agg, wo_ref[...], preferred_element_type=jnp.float32)
    out_ref[...] = (proj + x_tile).astype(out_ref.dtype)

    # K / V emitted directly in (N, H, L, D); no host permute pass over HBM.
    for h in range(H):
        k_out_ref[h] = k_s[h, qi].astype(k_out_ref.dtype)
        v_out_ref[h] = v_s[h, qi].astype(v_out_ref.dtype)


def _build_call(N, L, E, H, D, tile_q, num_q_tiles, out_dtype, kernel, cost,
                *, single_buffer_consts):
    T = H * D
    const = lambda n, qi: (0, 0)
    # Constant blocks never change along the grid -> single buffering halves
    # their VMEM residency (weights + gamma/beta).
    ckw = dict(pipeline_mode=pl.Buffered(1)) if single_buffer_consts else {}

    grid_spec = pltpu.PrefetchScalarGridSpec(
        num_scalar_prefetch=0,
        grid=(N, num_q_tiles),
        in_specs=[
            pl.BlockSpec((None, L, E), lambda n, qi: (n, 0, 0)),   # tokens
            pl.BlockSpec((1, E), const, **ckw),                    # gamma
            pl.BlockSpec((1, E), const, **ckw),                    # beta
            pl.BlockSpec((E, T), const, **ckw),                    # wq
            pl.BlockSpec((E, T), const, **ckw),                    # wk
            pl.BlockSpec((E, T), const, **ckw),                    # wv
            pl.BlockSpec((T, E), const, **ckw),                    # wo
        ],
        out_specs=[
            pl.BlockSpec((None, tile_q, E), lambda n, qi: (n, qi, 0)),
            pl.BlockSpec((None, H, tile_q, D), lambda n, qi: (n, 0, qi, 0)),
            pl.BlockSpec((None, H, tile_q, D), lambda n, qi: (n, 0, qi, 0)),
        ],
        scratch_shapes=[
            pltpu.VMEM((num_q_tiles, tile_q, E), jnp.bfloat16),     # LN(x)
            pltpu.VMEM((H, num_q_tiles, tile_q, D), jnp.bfloat16),  # K (head-major)
            pltpu.VMEM((H, num_q_tiles, tile_q, D), jnp.bfloat16),  # V (head-major)
        ],
    )
    return pl.pallas_call(
        kernel,
        out_shape=(
            jax.ShapeDtypeStruct((N, L, E), out_dtype),
            jax.ShapeDtypeStruct((N, H, L, D), out_dtype),
            jax.ShapeDtypeStruct((N, H, L, D), out_dtype),
        ),
        grid_spec=grid_spec,
        compiler_params=pltpu.CompilerParams(
            dimension_semantics=("parallel", "arbitrary"),
            # v5e's scoped default is ~16 MiB; 64 MiB also fits v7x physical VMEM.
            vmem_limit_bytes=64 * 1024 * 1024),
        cost_estimate=cost,
    )


def multi_head_causal_attention(tokens, params, *, num_heads, head_dim,
                                eps=1e-5, tile_q=256):
    """tokens: (N, L, E) f32.  Returns (out (N,L,E), k (N,H,L,D), v (N,H,L,D))."""
    N, L, E = tokens.shape
    H, D = num_heads, head_dim
    T = H * D

    tile_q = min(tile_q, L)
    assert L % tile_q == 0 and (tile_q % 8 == 0 or tile_q == L), \
        "query tile must divide L and respect the (8,128) sublane rule"
    num_q_tiles = L // tile_q

    gamma = params["gamma"].reshape(1, E).astype(jnp.float32)
    beta = params["beta"].reshape(1, E).astype(jnp.float32)
    # PyTorch Linear weight is (out, in); pre-transpose so the kernel does
    # x @ W, cast to bf16 (native MXU dtype), fold the softmax scale into wq.
    wq = (params["wq"].T / math.sqrt(D)).astype(jnp.bfloat16)   # (E, T)
    wk = params["wk"].T.astype(jnp.bfloat16)                    # (E, T)
    wv = params["wv"].T.astype(jnp.bfloat16)                    # (E, T)
    wo = params["wo"].T.astype(jnp.bfloat16)                    # (T, E)

    kernel = functools.partial(_mhca_kernel, num_heads=H, head_dim=D,
                               tile_q=tile_q, num_q_tiles=num_q_tiles, eps=eps)

    flops = (8 * N * L * E * T               # q/k/v/out projections
             + 2 * N * L * L * T             # causal QK^T + PV (~half of dense)
             + 10 * N * L * E)               # layernorm
    cost = pl.CostEstimate(
        flops=flops,
        transcendentals=N * H * L * L // 2 + N * L,
        bytes_accessed=(2 * N * L * E * 4 + 2 * N * L * T * 4
                        + 4 * E * T * 2 + 2 * E * 4))

    args = (tokens, gamma, beta, wq, wk, wv, wo)
    # TODO(synk): when N < 2 on v7x (two TensorCores) the batch 'parallel' axis
    # cannot be core-sharded; a core-parallel query-tile axis (with the LN/KV
    # projection hoisted to a separate stage) would recover the idle core.
    try:
        out, k, v = _build_call(N, L, E, H, D, tile_q, num_q_tiles,
                                tokens.dtype, kernel, cost,
                                single_buffer_consts=True)(*args)
    except Exception:
        # This Pallas build rejected pipeline_mode=pl.Buffered(1); fall back to
        # default double buffering of the constant blocks (correctness is
        # unaffected, only VMEM residency grows).
        out, k, v = _build_call(N, L, E, H, D, tile_q, num_q_tiles,
                                tokens.dtype, kernel, cost,
                                single_buffer_consts=False)(*args)
    return out, k, v


def _reference(tokens, params, *, num_heads, head_dim, eps=1e-5):
    """Pure-JAX f32 reference mirroring the PyTorch forward (incl. k/v swap)."""
    N, L, E = tokens.shape
    mean = jnp.mean(tokens, axis=-1, keepdims=True)
    var = jnp.mean((tokens - mean) ** 2, axis=-1, keepdims=True)
    ln = (tokens - mean) / jnp.sqrt(var + eps) * params["gamma"] + params["beta"]

    def proj(w):
        y = ln @ w.T
        return y.reshape(N, L, num_heads, head_dim).transpose(0, 2, 1, 3)

    q = proj(params["wq"])
    k = proj(params["wv"])   # swap, as in the module
    v = proj(params["wk"])   # swap, as in the module

    s = jnp.einsum("nhqd,nhkd->nhqk", q, k) / math.sqrt(head_dim)
    mask = jnp.tril(jnp.ones((L, L), bool))
    s = jnp.where(mask, s, -jnp.inf)
    p = jax.nn.softmax(s, axis=-1)
    o = jnp.einsum("nhqk,nhkd->nhqd", p, v)
    agg = o.transpose(0, 2, 1, 3).reshape(N, L, num_heads * head_dim)
    out = agg @ params["wo"].T + tokens
    return out, k, v


if __name__ == "__main__":
    N, L, E = 2, 16, 32
    H, D = 4, 8            # num_attention_heads, head_embedding_dim
    T = H * D

    key = jax.random.PRNGKey(0)
    k_tok, k_q, k_k, k_v, k_o = jax.random.split(key, 5)

    tokens = jax.random.normal(k_tok, (N, L, E), jnp.float32)
    params = {
        "gamma": jnp.ones((E,), jnp.float32),       # nn.LayerNorm default init
        "beta": jnp.zeros((E,), jnp.float32),
        "wq": jax.random.normal(k_q, (T, E), jnp.float32) * (1.0 / math.sqrt(E)),
        "wk": jax.random.normal(k_k, (T, E), jnp.float32) * (1.0 / math.sqrt(E)),
        "wv": jax.random.normal(k_v, (T, E), jnp.float32) * (1.0 / math.sqrt(E)),
        "wo": jax.random.normal(k_o, (E, T), jnp.float32) * (1.0 / math.sqrt(T)),
    }

    # tile_q=8 -> two query tiles per batch element, exercising the persistent
    # per-batch scratch and the causal key-block skipping path.
    out, k_out, v_out = multi_head_causal_attention(
        tokens, params, num_heads=H, head_dim=D, tile_q=8)
    jax.block_until_ready((out, k_out, v_out))

    ref_out, ref_k, ref_v = _reference(tokens, params, num_heads=H, head_dim=D)
    # bf16 MXU feeds + bf16 LN/K/V scratch (f32 accumulation) => loose tolerance
    assert jnp.allclose(out, ref_out, atol=5e-2, rtol=5e-2), \
        float(jnp.max(jnp.abs(out - ref_out)))
    assert jnp.allclose(k_out, ref_k, atol=5e-2, rtol=5e-2), \
        float(jnp.max(jnp.abs(k_out - ref_k)))
    assert jnp.allclose(v_out, ref_v, atol=5e-2, rtol=5e-2), \
        float(jnp.max(jnp.abs(v_out - ref_v)))

    print("KERNEL_OK")
</pallas_src>

<mosaic_0001>
module attributes {stable_mosaic.version = 11 : i64} {
  func.func @_mhca_kernel(%arg0: i32, %arg1: i32, %arg2: memref<1x16x32xf32, #tpu.memory_space<vmem>>, %arg3: memref<1x32xf32, #tpu.memory_space<vmem>>, %arg4: memref<1x32xf32, #tpu.memory_space<vmem>>, %arg5: memref<32x32xbf16, #tpu.memory_space<vmem>>, %arg6: memref<32x32xbf16, #tpu.memory_space<vmem>>, %arg7: memref<32x32xbf16, #tpu.memory_space<vmem>>, %arg8: memref<32x32xbf16, #tpu.memory_space<vmem>>, %arg9: memref<1x8x32xf32, #tpu.memory_space<vmem>>, %arg10: memref<1x4x8x8xf32, #tpu.memory_space<vmem>>, %arg11: memref<1x4x8x8xf32, #tpu.memory_space<vmem>>, %arg12: memref<2x8x32xbf16, #tpu.memory_space<vmem>>, %arg13: memref<4x2x8x8xbf16, #tpu.memory_space<vmem>>, %arg14: memref<4x2x8x8xbf16, #tpu.memory_space<vmem>>) attributes {dimension_semantics = [#tpu.dimension_semantics<parallel>, #tpu.dimension_semantics<arbitrary>], iteration_bounds = array<i64: 2, 2>, scalar_prefetch = 0 : i64, scratch_operands = 3 : i64, tpu.core_type = #tpu.core_type<tc>, window_params = [{transform_indices = @transform_0, window_bounds = array<i64: 1, 16, 32>}, {pipeline_mode = #tpu.pipeline_mode<synchronous>, transform_indices = @transform_1, window_bounds = array<i64: 1, 32>}, {pipeline_mode = #tpu.pipeline_mode<synchronous>, transform_indices = @transform_2, window_bounds = array<i64: 1, 32>}, {pipeline_mode = #tpu.pipeline_mode<synchronous>, transform_indices = @transform_3, window_bounds = array<i64: 32, 32>}, {pipeline_mode = #tpu.pipeline_mode<synchronous>, transform_indices = @transform_4, window_bounds = array<i64: 32, 32>}, {pipeline_mode = #tpu.pipeline_mode<synchronous>, transform_indices = @transform_5, window_bounds = array<i64: 32, 32>}, {pipeline_mode = #tpu.pipeline_mode<synchronous>, transform_indices = @transform_6, window_bounds = array<i64: 32, 32>}, {transform_indices = @transform_7, window_bounds = array<i64: 1, 8, 32>}, {transform_indices = @transform_8, window_bounds = array<i64: 1, 4, 8, 8>}, {transform_indices = @transform_9, window_bounds = array<i64: 1, 4, 8, 8>}]} {
    %c0_i32 = arith.constant 0 : i32
    %0 = arith.cmpi eq, %arg1, %c0_i32 : i32
    %1 = arith.extui %0 : i1 to i32
    %c0_i32_0 = arith.constant 0 : i32
    %2 = arith.cmpi ne, %1, %c0_i32_0 : i32
    scf.if %2 {
      %c0_132 = arith.constant 0 : index
      %c0_133 = arith.constant 0 : index
      %c0_134 = arith.constant 0 : index
      %242 = vector.load %arg2[%c0_132, %c0_133, %c0_134] : memref<1x16x32xf32, #tpu.memory_space<vmem>>, vector<1x16x32xf32>
      %243 = vector.shape_cast %242 : vector<1x16x32xf32> to vector<16x32xf32>
      %cst_135 = arith.constant dense<0.000000e+00> : vector<16xf32>
      %244 = vector.multi_reduction <add>, %243, %cst_135 [1] : vector<16x32xf32> to vector<16xf32>
      %245 = vector.shape_cast %244 : vector<16xf32> to vector<16x1xf32>
      %cst_136 = arith.constant 3.200000e+01 : f32
      %246 = vector.broadcast %cst_136 : f32 to vector<16x1xf32>
      %247 = arith.divf %245, %246 : vector<16x1xf32>
      %248 = vector.broadcast %247 : vector<16x1xf32> to vector<16x32xf32>
      %249 = arith.subf %243, %248 : vector<16x32xf32>
      %250 = arith.mulf %249, %249 : vector<16x32xf32>
      %cst_137 = arith.constant dense<0.000000e+00> : vector<16xf32>
      %251 = vector.multi_reduction <add>, %250, %cst_137 [1] : vector<16x32xf32> to vector<16xf32>
      %252 = vector.shape_cast %251 : vector<16xf32> to vector<16x1xf32>
      %cst_138 = arith.constant 3.200000e+01 : f32
      %253 = vector.broadcast %cst_138 : f32 to vector<16x1xf32>
      %254 = arith.divf %252, %253 : vector<16x1xf32>
      %cst_139 = arith.constant 9.99999974E-6 : f32
      %255 = vector.broadcast %cst_139 : f32 to vector<16x1xf32>
      %256 = arith.addf %254, %255 : vector<16x1xf32>
      %257 = math.rsqrt %256 : vector<16x1xf32>
      %258 = vector.broadcast %257 : vector<16x1xf32> to vector<16x32xf32>
      %259 = arith.mulf %249, %258 : vector<16x32xf32>
      %c0_140 = arith.constant 0 : index
      %c0_141 = arith.constant 0 : index
      %260 = vector.load %arg3[%c0_140, %c0_141] : memref<1x32xf32, #tpu.memory_space<vmem>>, vector<1x32xf32>
      %261 = vector.broadcast %260 : vector<1x32xf32> to vector<16x32xf32>
      %262 = arith.mulf %259, %261 : vector<16x32xf32>
      %c0_142 = arith.constant 0 : index
      %c0_143 = arith.constant 0 : index
      %263 = vector.load %arg4[%c0_142, %c0_143] : memref<1x32xf32, #tpu.memory_space<vmem>>, vector<1x32xf32>
      %264 = vector.broadcast %263 : vector<1x32xf32> to vector<16x32xf32>
      %265 = arith.addf %262, %264 : vector<16x32xf32>
      %266 = arith.truncf %265 : vector<16x32xf32> to vector<16x32xbf16>
      %267 = vector.shape_cast %265 : vector<16x32xf32> to vector<2x8x32xf32>
      %268 = arith.truncf %267 : vector<2x8x32xf32> to vector<2x8x32xbf16>
      %c0_144 = arith.constant 0 : index
      %c0_145 = arith.constant 0 : index
      %c0_146 = arith.constant 0 : index
      %269 = vector.load %arg12[%c0_144, %c0_145, %c0_146] : memref<2x8x32xbf16, #tpu.memory_space<vmem>>, vector<2x8x32xbf16>
      tpu.vector_store %arg12[%c0_144, %c0_145, %c0_146], %268 {strides = array<i32>} : memref<2x8x32xbf16, #tpu.memory_space<vmem>>, vector<2x8x32xbf16>,
      %c0_147 = arith.constant 0 : index
      %c0_148 = arith.constant 0 : index
      %270 = vector.load %arg7[%c0_147, %c0_148] : memref<32x32xbf16, #tpu.memory_space<vmem>>, vector<32x32xbf16>
      %cst_149 = arith.constant dense<0.000000e+00> : vector<16x32xf32>
      %271 = tpu.matmul %266, %270, %cst_149 {dimension_numbers = #tpu.dot_dimension_numbers<[1], [0], [0], [1], [0, 0, 1, 1], [], []>} : vector<16x32xbf16>, vector<32x32xbf16>, vector<16x32xf32> -> vector<16x32xf32>
      %272 = vector.extract_strided_slice %271 {offsets = [0, 0], sizes = [16, 8], strides = [1, 1]} : vector<16x32xf32> to vector<16x8xf32>
      %273 = vector.shape_cast %272 : vector<16x8xf32> to vector<2x8x8xf32>
      %274 = arith.truncf %273 : vector<2x8x8xf32> to vector<2x8x8xbf16>
      %c0_150 = arith.constant 0 : index
      %c0_151 = arith.constant 0 : index
      %c0_152 = arith.constant 0 : index
      %c0_153 = arith.constant 0 : index
      %275 = vector.load %arg13[%c0_150, %c0_151, %c0_152, %c0_153] : memref<4x2x8x8xbf16, #tpu.memory_space<vmem>>, vector<1x2x8x8xbf16>
      %276 = vector.shape_cast %275 : vector<1x2x8x8xbf16> to vector<2x8x8xbf16>
      %277 = vector.shape_cast %274 : vector<2x8x8xbf16> to vector<1x2x8x8xbf16>
      tpu.vector_store %arg13[%c0_150, %c0_151, %c0_152, %c0_153], %277 {strides = array<i32>} : memref<4x2x8x8xbf16, #tpu.memory_space<vmem>>, vector<1x2x8x8xbf16>,
      %278 = vector.extract_strided_slice %271 {offsets = [0, 8], sizes = [16, 8], strides = [1, 1]} : vector<16x32xf32> to vector<16x8xf32>
      %279 = vector.shape_cast %278 : vector<16x8xf32> to vector<2x8x8xf32>
      %280 = arith.truncf %279 : vector<2x8x8xf32> to vector<2x8x8xbf16>
      %c1_154 = arith.constant 1 : index
      %c0_155 = arith.constant 0 : index
      %c0_156 = arith.constant 0 : index
      %c0_157 = arith.constant 0 : index
      %281 = vector.load %arg13[%c1_154, %c0_155, %c0_156, %c0_157] : memref<4x2x8x8xbf16, #tpu.memory_space<vmem>>, vector<1x2x8x8xbf16>
      %282 = vector.shape_cast %281 : vector<1x2x8x8xbf16> to vector<2x8x8xbf16>
      %283 = vector.shape_cast %280 : vector<2x8x8xbf16> to vector<1x2x8x8xbf16>
      tpu.vector_store %arg13[%c1_154, %c0_155, %c0_156, %c0_157], %283 {strides = array<i32>} : memref<4x2x8x8xbf16, #tpu.memory_space<vmem>>, vector<1x2x8x8xbf16>,
      %284 = vector.extract_strided_slice %271 {offsets = [0, 16], sizes = [16, 8], strides = [1, 1]} : vector<16x32xf32> to vector<16x8xf32>
      %285 = vector.shape_cast %284 : vector<16x8xf32> to vector<2x8x8xf32>
      %286 = arith.truncf %285 : vector<2x8x8xf32> to vector<2x8x8xbf16>
      %c2_158 = arith.constant 2 : index
      %c0_159 = arith.constant 0 : index
      %c0_160 = arith.constant 0 : index
      %c0_161 = arith.constant 0 : index
      %287 = vector.load %arg13[%c2_158, %c0_159, %c0_160, %c0_161] : memref<4x2x8x8xbf16, #tpu.memory_space<vmem>>, vector<1x2x8x8xbf16>
      %288 = vector.shape_cast %287 : vector<1x2x8x8xbf16> to vector<2x8x8xbf16>
      %289 = vector.shape_cast %286 : vector<2x8x8xbf16> to vector<1x2x8x8xbf16>
      tpu.vector_store %arg13[%c2_158, %c0_159, %c0_160, %c0_161], %289 {strides = array<i32>} : memref<4x2x8x8xbf16, #tpu.memory_space<vmem>>, vector<1x2x8x8xbf16>,
      %290 = vector.extract_strided_slice %271 {offsets = [0, 24], sizes = [16, 8], strides = [1, 1]} : vector<16x32xf32> to vector<16x8xf32>
      %291 = vector.shape_cast %290 : vector<16x8xf32> to vector<2x8x8xf32>
      %292 = arith.truncf %291 : vector<2x8x8xf32> to vector<2x8x8xbf16>
      %c3_162 = arith.constant 3 : index
      %c0_163 = arith.constant 0 : index
      %c0_164 = arith.constant 0 : index
      %c0_165 = arith.constant 0 : index
      %293 = vector.load %arg13[%c3_162, %c0_163, %c0_164, %c0_165] : memref<4x2x8x8xbf16, #tpu.memory_space<vmem>>, vector<1x2x8x8xbf16>
      %294 = vector.shape_cast %293 : vector<1x2x8x8xbf16> to vector<2x8x8xbf16>
      %295 = vector.shape_cast %292 : vector<2x8x8xbf16> to vector<1x2x8x8xbf16>
      tpu.vector_store %arg13[%c3_162, %c0_163, %c0_164, %c0_165], %295 {strides = array<i32>} : memref<4x2x8x8xbf16, #tpu.memory_space<vmem>>, vector<1x2x8x8xbf16>,
      %c0_166 = arith.constant 0 : index
      %c0_167 = arith.constant 0 : index
      %296 = vector.load %arg6[%c0_166, %c0_167] : memref<32x32xbf16, #tpu.memory_space<vmem>>, vector<32x32xbf16>
      %cst_168 = arith.constant dense<0.000000e+00> : vector<16x32xf32>
      %297 = tpu.matmul %266, %296, %cst_168 {dimension_numbers = #tpu.dot_dimension_numbers<[1], [0], [0], [1], [0, 0, 1, 1], [], []>} : vector<16x32xbf16>, vector<32x32xbf16>, vector<16x32xf32> -> vector<16x32xf32>
      %298 = vector.extract_strided_slice %297 {offsets = [0, 0], sizes = [16, 8], strides = [1, 1]} : vector<16x32xf32> to vector<16x8xf32>
      %299 = vector.shape_cast %298 : vector<16x8xf32> to vector<2x8x8xf32>
      %300 = arith.truncf %299 : vector<2x8x8xf32> to vector<2x8x8xbf16>
      %c0_169 = arith.constant 0 : index
      %c0_170 = arith.constant 0 : index
      %c0_171 = arith.constant 0 : index
      %c0_172 = arith.constant 0 : index
      %301 = vector.load %arg14[%c0_169, %c0_170, %c0_171, %c0_172] : memref<4x2x8x8xbf16, #tpu.memory_space<vmem>>, vector<1x2x8x8xbf16>
      %302 = vector.shape_cast %301 : vector<1x2x8x8xbf16> to vector<2x8x8xbf16>
      %303 = vector.shape_cast %300 : vector<2x8x8xbf16> to vector<1x2x8x8xbf16>
      tpu.vector_store %arg14[%c0_169, %c0_170, %c0_171, %c0_172], %303 {strides = array<i32>} : memref<4x2x8x8xbf16, #tpu.memory_space<vmem>>, vector<1x2x8x8xbf16>,
      %304 = vector.extract_strided_slice %297 {offsets = [0, 8], sizes = [16, 8], strides = [1, 1]} : vector<16x32xf32> to vector<16x8xf32>
      %305 = vector.shape_cast %304 : vector<16x8xf32> to vector<2x8x8xf32>
      %306 = arith.truncf %305 : vector<2x8x8xf32> to vector<2x8x8xbf16>
      %c1_173 = arith.constant 1 : index
      %c0_174 = arith.constant 0 : index
      %c0_175 = arith.constant 0 : index
      %c0_176 = arith.constant 0 : index
      %307 = vector.load %arg14[%c1_173, %c0_174, %c0_175, %c0_176] : memref<4x2x8x8xbf16, #tpu.memory_space<vmem>>, vector<1x2x8x8xbf16>
      %308 = vector.shape_cast %307 : vector<1x2x8x8xbf16> to vector<2x8x8xbf16>
      %309 = vector.shape_cast %306 : vector<2x8x8xbf16> to vector<1x2x8x8xbf16>
      tpu.vector_store %arg14[%c1_173, %c0_174, %c0_175, %c0_176], %309 {strides = array<i32>} : memref<4x2x8x8xbf16, #tpu.memory_space<vmem>>, vector<1x2x8x8xbf16>,
      %310 = vector.extract_strided_slice %297 {offsets = [0, 16], sizes = [16, 8], strides = [1, 1]} : vector<16x32xf32> to vector<16x8xf32>
      %311 = vector.shape_cast %310 : vector<16x8xf32> to vector<2x8x8xf32>
      %312 = arith.truncf %311 : vector<2x8x8xf32> to vector<2x8x8xbf16>
      %c2_177 = arith.constant 2 : index
      %c0_178 = arith.constant 0 : index
      %c0_179 = arith.constant 0 : index
      %c0_180 = arith.constant 0 : index
      %313 = vector.load %arg14[%c2_177, %c0_178, %c0_179, %c0_180] : memref<4x2x8x8xbf16, #tpu.memory_space<vmem>>, vector<1x2x8x8xbf16>
      %314 = vector.shape_cast %313 : vector<1x2x8x8xbf16> to vector<2x8x8xbf16>
      %315 = vector.shape_cast %312 : vector<2x8x8xbf16> to vector<1x2x8x8xbf16>
      tpu.vector_store %arg14[%c2_177, %c0_178, %c0_179, %c0_180], %315 {strides = array<i32>} : memref<4x2x8x8xbf16, #tpu.memory_space<vmem>>, vector<1x2x8x8xbf16>,
      %316 = vector.extract_strided_slice %297 {offsets = [0, 24], sizes = [16, 8], strides = [1, 1]} : vector<16x32xf32> to vector<16x8xf32>
      %317 = vector.shape_cast %316 : vector<16x8xf32> to vector<2x8x8xf32>
      %318 = arith.truncf %317 : vector<2x8x8xf32> to vector<2x8x8xbf16>
      %c3_181 = arith.constant 3 : index
      %c0_182 = arith.constant 0 : index
      %c0_183 = arith.constant 0 : index
      %c0_184 = arith.constant 0 : index
      %319 = vector.load %arg14[%c3_181, %c0_182, %c0_183, %c0_184] : memref<4x2x8x8xbf16, #tpu.memory_space<vmem>>, vector<1x2x8x8xbf16>
      %320 = vector.shape_cast %319 : vector<1x2x8x8xbf16> to vector<2x8x8xbf16>
      %321 = vector.shape_cast %318 : vector<2x8x8xbf16> to vector<1x2x8x8xbf16>
      tpu.vector_store %arg14[%c3_181, %c0_182, %c0_183, %c0_184], %321 {strides = array<i32>} : memref<4x2x8x8xbf16, #tpu.memory_space<vmem>>, vector<1x2x8x8xbf16>,
    } else {
    }
    %c8_i32 = arith.constant 8 : i32
    %3 = arith.muli %arg1, %c8_i32 : i32
    %4 = tpu.assume_multiple %3, 8 : i32
    %c0 = arith.constant 0 : index
    %5 = arith.index_cast %4 : i32 to index
    %c0_1 = arith.constant 0 : index
    %6 = vector.load %arg2[%c0, %5, %c0_1] : memref<1x16x32xf32, #tpu.memory_space<vmem>>, vector<1x8x32xf32>
    %7 = vector.shape_cast %6 : vector<1x8x32xf32> to vector<8x32xf32>
    %8 = arith.index_cast %arg1 : i32 to index
    %c0_2 = arith.constant 0 : index
    %c0_3 = arith.constant 0 : index
    %9 = vector.load %arg12[%8, %c0_2, %c0_3] : memref<2x8x32xbf16, #tpu.memory_space<vmem>>, vector<1x8x32xbf16>
    %10 = vector.shape_cast %9 : vector<1x8x32xbf16> to vector<8x32xbf16>
    %c0_4 = arith.constant 0 : index
    %c0_5 = arith.constant 0 : index
    %11 = vector.load %arg5[%c0_4, %c0_5] : memref<32x32xbf16, #tpu.memory_space<vmem>>, vector<32x32xbf16>
    %cst = arith.constant dense<0.000000e+00> : vector<8x32xf32>
    %12 = tpu.matmul %10, %11, %cst {dimension_numbers = #tpu.dot_dimension_numbers<[1], [0], [0], [1], [0, 0, 1, 1], [], []>} : vector<8x32xbf16>, vector<32x32xbf16>, vector<8x32xf32> -> vector<8x32xf32>
    %13 = arith.truncf %12 : vector<8x32xf32> to vector<8x32xbf16>
    %14 = tpu.iota {dimensions = array<i32: 0>} : vector<8x8xi32>
    %15 = vector.broadcast %4 : i32 to vector<8x8xi32>
    %16 = arith.addi %15, %14 : vector<8x8xi32>
    %17 = tpu.iota {dimensions = array<i32: 1>} : vector<8x8xi32>
    %18 = vector.extract_strided_slice %13 {offsets = [0, 0], sizes = [8, 8], strides = [1, 1]} : vector<8x32xbf16> to vector<8x8xbf16>
    %cst_6 = arith.constant 0xFF800000 : f32
    %19 = vector.broadcast %cst_6 : f32 to vector<8x1xf32>
    %cst_7 = arith.constant 0.000000e+00 : f32
    %20 = vector.broadcast %cst_7 : f32 to vector<8x1xf32>
    %cst_8 = arith.constant 0.000000e+00 : f32
    %21 = vector.broadcast %cst_8 : f32 to vector<8x8xf32>
    %c0_i32_9 = arith.constant 0 : i32
    %22 = arith.subi %arg1, %c0_i32_9 : i32
    %23 = arith.addi %c0_i32_9, %22 : i32
    %c1_i32 = arith.constant 1 : i32
    %24:3 = scf.for %arg15 = %c0_i32_9 to %23 step %c1_i32 iter_args(%arg16 = %19, %arg17 = %20, %arg18 = %21) -> (vector<8x1xf32>, vector<8x1xf32>, vector<8x8xf32>)  : i32 {
      %c0_132 = arith.constant 0 : index
      %242 = arith.index_cast %arg15 : i32 to index
      %c0_133 = arith.constant 0 : index
      %c0_134 = arith.constant 0 : index
      %243 = vector.load %arg13[%c0_132, %242, %c0_133, %c0_134] : memref<4x2x8x8xbf16, #tpu.memory_space<vmem>>, vector<1x1x8x8xbf16>
      %244 = vector.shape_cast %243 : vector<1x1x8x8xbf16> to vector<8x8xbf16>
      %c0_135 = arith.constant 0 : index
      %245 = arith.index_cast %arg15 : i32 to index
      %c0_136 = arith.constant 0 : index
      %c0_137 = arith.constant 0 : index
      %246 = vector.load %arg14[%c0_135, %245, %c0_136, %c0_137] : memref<4x2x8x8xbf16, #tpu.memory_space<vmem>>, vector<1x1x8x8xbf16>
      %247 = vector.shape_cast %246 : vector<1x1x8x8xbf16> to vector<8x8xbf16>
      %cst_138 = arith.constant dense<0.000000e+00> : vector<8x8xf32>
      %248 = tpu.matmul %18, %244, %cst_138 {dimension_numbers = #tpu.dot_dimension_numbers<[1], [1], [0], [0], [0, 0, 1, 0], [], []>} : vector<8x8xbf16>, vector<8x8xbf16>, vector<8x8xf32> -> vector<8x8xf32>
      %cst_139 = arith.constant dense<0xFF800000> : vector<8xf32>
      %249 = vector.multi_reduction <maximumf>, %248, %cst_139 [1] : vector<8x8xf32> to vector<8xf32>
      %250 = vector.shape_cast %249 : vector<8xf32> to vector<8x1xf32>
      %251 = arith.maximumf %arg16, %250 : vector<8x1xf32>
      %252 = arith.subf %arg16, %251 : vector<8x1xf32>
      %253 = math.exp %252 : vector<8x1xf32>
      %254 = vector.broadcast %251 : vector<8x1xf32> to vector<8x8xf32>
      %255 = arith.subf %248, %254 : vector<8x8xf32>
      %256 = math.exp %255 : vector<8x8xf32>
      %257 = arith.mulf %253, %arg17 : vector<8x1xf32>
      %cst_140 = arith.constant dense<0.000000e+00> : vector<8xf32>
      %258 = vector.multi_reduction <add>, %256, %cst_140 [1] : vector<8x8xf32> to vector<8xf32>
      %259 = vector.shape_cast %258 : vector<8xf32> to vector<8x1xf32>
      %260 = arith.addf %257, %259 : vector<8x1xf32>
      %261 = vector.broadcast %253 : vector<8x1xf32> to vector<8x8xf32>
      %262 = arith.mulf %261, %arg18 : vector<8x8xf32>
      %263 = arith.truncf %256 : vector<8x8xf32> to vector<8x8xbf16>
      %cst_141 = arith.constant dense<0.000000e+00> : vector<8x8xf32>
      %264 = tpu.matmul %263, %247, %cst_141 {dimension_numbers = #tpu.dot_dimension_numbers<[1], [0], [0], [1], [0, 0, 1, 1], [], []>} : vector<8x8xbf16>, vector<8x8xbf16>, vector<8x8xf32> -> vector<8x8xf32>
      %265 = arith.addf %262, %264 : vector<8x8xf32>
      scf.yield %251, %260, %265 : vector<8x1xf32>, vector<8x1xf32>, vector<8x8xf32>
    }
    %c0_10 = arith.constant 0 : index
    %25 = arith.index_cast %arg1 : i32 to index
    %c0_11 = arith.constant 0 : index
    %c0_12 = arith.constant 0 : index
    %26 = vector.load %arg13[%c0_10, %25, %c0_11, %c0_12] : memref<4x2x8x8xbf16, #tpu.memory_space<vmem>>, vector<1x1x8x8xbf16>
    %27 = vector.shape_cast %26 : vector<1x1x8x8xbf16> to vector<8x8xbf16>
    %c0_13 = arith.constant 0 : index
    %28 = arith.index_cast %arg1 : i32 to index
    %c0_14 = arith.constant 0 : index
    %c0_15 = arith.constant 0 : index
    %29 = vector.load %arg14[%c0_13, %28, %c0_14, %c0_15] : memref<4x2x8x8xbf16, #tpu.memory_space<vmem>>, vector<1x1x8x8xbf16>
    %30 = vector.shape_cast %29 : vector<1x1x8x8xbf16> to vector<8x8xbf16>
    %cst_16 = arith.constant dense<0.000000e+00> : vector<8x8xf32>
    %31 = tpu.matmul %18, %27, %cst_16 {dimension_numbers = #tpu.dot_dimension_numbers<[1], [1], [0], [0], [0, 0, 1, 0], [], []>} : vector<8x8xbf16>, vector<8x8xbf16>, vector<8x8xf32> -> vector<8x8xf32>
    %c8_i32_17 = arith.constant 8 : i32
    %32 = arith.muli %arg1, %c8_i32_17 : i32
    %33 = vector.broadcast %32 : i32 to vector<8x8xi32>
    %34 = arith.addi %33, %17 : vector<8x8xi32>
    %35 = arith.cmpi sle, %34, %16 : vector<8x8xi32>
    %cst_18 = arith.constant 0xFF800000 : f32
    %36 = vector.broadcast %cst_18 : f32 to vector<8x8xf32>
    %37 = arith.select %35, %31, %36 : vector<8x8xi1>, vector<8x8xf32>
    %cst_19 = arith.constant dense<0xFF800000> : vector<8xf32>
    %38 = vector.multi_reduction <maximumf>, %37, %cst_19 [1] : vector<8x8xf32> to vector<8xf32>
    %39 = vector.shape_cast %38 : vector<8xf32> to vector<8x1xf32>
    %40 = arith.maximumf %24#0, %39 : vector<8x1xf32>
    %41 = arith.subf %24#0, %40 : vector<8x1xf32>
    %42 = math.exp %41 : vector<8x1xf32>
    %43 = vector.broadcast %40 : vector<8x1xf32> to vector<8x8xf32>
    %44 = arith.subf %37, %43 : vector<8x8xf32>
    %45 = math.exp %44 : vector<8x8xf32>
    %46 = arith.mulf %42, %24#1 : vector<8x1xf32>
    %cst_20 = arith.constant dense<0.000000e+00> : vector<8xf32>
    %47 = vector.multi_reduction <add>, %45, %cst_20 [1] : vector<8x8xf32> to vector<8xf32>
    %48 = vector.shape_cast %47 : vector<8xf32> to vector<8x1xf32>
    %49 = arith.addf %46, %48 : vector<8x1xf32>
    %50 = vector.broadcast %42 : vector<8x1xf32> to vector<8x8xf32>
    %51 = arith.mulf %50, %24#2 : vector<8x8xf32>
    %52 = arith.truncf %45 : vector<8x8xf32> to vector<8x8xbf16>
    %cst_21 = arith.constant dense<0.000000e+00> : vector<8x8xf32>
    %53 = tpu.matmul %52, %30, %cst_21 {dimension_numbers = #tpu.dot_dimension_numbers<[1], [0], [0], [1], [0, 0, 1, 1], [], []>} : vector<8x8xbf16>, vector<8x8xbf16>, vector<8x8xf32> -> vector<8x8xf32>
    %54 = arith.addf %51, %53 : vector<8x8xf32>
    %55 = tpu.reciprocal %49 {approx = true} : vector<8x1xf32> -> vector<8x1xf32>
    %56 = vector.broadcast %55 : vector<8x1xf32> to vector<8x8xf32>
    %57 = arith.mulf %54, %56 : vector<8x8xf32>
    %58 = vector.extract_strided_slice %13 {offsets = [0, 8], sizes = [8, 8], strides = [1, 1]} : vector<8x32xbf16> to vector<8x8xbf16>
    %cst_22 = arith.constant 0xFF800000 : f32
    %59 = vector.broadcast %cst_22 : f32 to vector<8x1xf32>
    %cst_23 = arith.constant 0.000000e+00 : f32
    %60 = vector.broadcast %cst_23 : f32 to vector<8x1xf32>
    %cst_24 = arith.constant 0.000000e+00 : f32
    %61 = vector.broadcast %cst_24 : f32 to vector<8x8xf32>
    %c0_i32_25 = arith.constant 0 : i32
    %62 = arith.subi %arg1, %c0_i32_25 : i32
    %63 = arith.addi %c0_i32_25, %62 : i32
    %c1_i32_26 = arith.constant 1 : i32
    %64:3 = scf.for %arg15 = %c0_i32_25 to %63 step %c1_i32_26 iter_args(%arg16 = %59, %arg17 = %60, %arg18 = %61) -> (vector<8x1xf32>, vector<8x1xf32>, vector<8x8xf32>)  : i32 {
      %c1_132 = arith.constant 1 : index
      %242 = arith.index_cast %arg15 : i32 to index
      %c0_133 = arith.constant 0 : index
      %c0_134 = arith.constant 0 : index
      %243 = vector.load %arg13[%c1_132, %242, %c0_133, %c0_134] : memref<4x2x8x8xbf16, #tpu.memory_space<vmem>>, vector<1x1x8x8xbf16>
      %244 = vector.shape_cast %243 : vector<1x1x8x8xbf16> to vector<8x8xbf16>
      %c1_135 = arith.constant 1 : index
      %245 = arith.index_cast %arg15 : i32 to index
      %c0_136 = arith.constant 0 : index
      %c0_137 = arith.constant 0 : index
      %246 = vector.load %arg14[%c1_135, %245, %c0_136, %c0_137] : memref<4x2x8x8xbf16, #tpu.memory_space<vmem>>, vector<1x1x8x8xbf16>
      %247 = vector.shape_cast %246 : vector<1x1x8x8xbf16> to vector<8x8xbf16>
      %cst_138 = arith.constant dense<0.000000e+00> : vector<8x8xf32>
      %248 = tpu.matmul %58, %244, %cst_138 {dimension_numbers = #tpu.dot_dimension_numbers<[1], [1], [0], [0], [0, 0, 1, 0], [], []>} : vector<8x8xbf16>, vector<8x8xbf16>, vector<8x8xf32> -> vector<8x8xf32>
      %cst_139 = arith.constant dense<0xFF800000> : vector<8xf32>
      %249 = vector.multi_reduction <maximumf>, %248, %cst_139 [1] : vector<8x8xf32> to vector<8xf32>
      %250 = vector.shape_cast %249 : vector<8xf32> to vector<8x1xf32>
      %251 = arith.maximumf %arg16, %250 : vector<8x1xf32>
      %252 = arith.subf %arg16, %251 : vector<8x1xf32>
      %253 = math.exp %252 : vector<8x1xf32>
      %254 = vector.broadcast %251 : vector<8x1xf32> to vector<8x8xf32>
      %255 = arith.subf %248, %254 : vector<8x8xf32>
      %256 = math.exp %255 : vector<8x8xf32>
      %257 = arith.mulf %253, %arg17 : vector<8x1xf32>
      %cst_140 = arith.constant dense<0.000000e+00> : vector<8xf32>
      %258 = vector.multi_reduction <add>, %256, %cst_140 [1] : vector<8x8xf32> to vector<8xf32>
      %259 = vector.shape_cast %258 : vector<8xf32> to vector<8x1xf32>
      %260 = arith.addf %257, %259 : vector<8x1xf32>
      %261 = vector.broadcast %253 : vector<8x1xf32> to vector<8x8xf32>
      %262 = arith.mulf %261, %arg18 : vector<8x8xf32>
      %263 = arith.truncf %256 : vector<8x8xf32> to vector<8x8xbf16>
      %cst_141 = arith.constant dense<0.000000e+00> : vector<8x8xf32>
      %264 = tpu.matmul %263, %247, %cst_141 {dimension_numbers = #tpu.dot_dimension_numbers<[1], [0], [0], [1], [0, 0, 1, 1], [], []>} : vector<8x8xbf16>, vector<8x8xbf16>, vector<8x8xf32> -> vector<8x8xf32>
      %265 = arith.addf %262, %264 : vector<8x8xf32>
      scf.yield %251, %260, %265 : vector<8x1xf32>, vector<8x1xf32>, vector<8x8xf32>
    }
    %c1 = arith.constant 1 : index
    %65 = arith.index_cast %arg1 : i32 to index
    %c0_27 = arith.constant 0 : index
    %c0_28 = arith.constant 0 : index
    %66 = vector.load %arg13[%c1, %65, %c0_27, %c0_28] : memref<4x2x8x8xbf16, #tpu.memory_space<vmem>>, vector<1x1x8x8xbf16>
    %67 = vector.shape_cast %66 : vector<1x1x8x8xbf16> to vector<8x8xbf16>
    %c1_29 = arith.constant 1 : index
    %68 = arith.index_cast %arg1 : i32 to index
    %c0_30 = arith.constant 0 : index
    %c0_31 = arith.constant 0 : index
    %69 = vector.load %arg14[%c1_29, %68, %c0_30, %c0_31] : memref<4x2x8x8xbf16, #tpu.memory_space<vmem>>, vector<1x1x8x8xbf16>
    %70 = vector.shape_cast %69 : vector<1x1x8x8xbf16> to vector<8x8xbf16>
    %cst_32 = arith.constant dense<0.000000e+00> : vector<8x8xf32>
    %71 = tpu.matmul %58, %67, %cst_32 {dimension_numbers = #tpu.dot_dimension_numbers<[1], [1], [0], [0], [0, 0, 1, 0], [], []>} : vector<8x8xbf16>, vector<8x8xbf16>, vector<8x8xf32> -> vector<8x8xf32>
    %c8_i32_33 = arith.constant 8 : i32
    %72 = arith.muli %arg1, %c8_i32_33 : i32
    %73 = vector.broadcast %72 : i32 to vector<8x8xi32>
    %74 = arith.addi %73, %17 : vector<8x8xi32>
    %75 = arith.cmpi sle, %74, %16 : vector<8x8xi32>
    %cst_34 = arith.constant 0xFF800000 : f32
    %76 = vector.broadcast %cst_34 : f32 to vector<8x8xf32>
    %77 = arith.select %75, %71, %76 : vector<8x8xi1>, vector<8x8xf32>
    %cst_35 = arith.constant dense<0xFF800000> : vector<8xf32>
    %78 = vector.multi_reduction <maximumf>, %77, %cst_35 [1] : vector<8x8xf32> to vector<8xf32>
    %79 = vector.shape_cast %78 : vector<8xf32> to vector<8x1xf32>
    %80 = arith.maximumf %64#0, %79 : vector<8x1xf32>
    %81 = arith.subf %64#0, %80 : vector<8x1xf32>
    %82 = math.exp %81 : vector<8x1xf32>
    %83 = vector.broadcast %80 : vector<8x1xf32> to vector<8x8xf32>
    %84 = arith.subf %77, %83 : vector<8x8xf32>
    %85 = math.exp %84 : vector<8x8xf32>
    %86 = arith.mulf %82, %64#1 : vector<8x1xf32>
    %cst_36 = arith.constant dense<0.000000e+00> : vector<8xf32>
    %87 = vector.multi_reduction <add>, %85, %cst_36 [1] : vector<8x8xf32> to vector<8xf32>
    %88 = vector.shape_cast %87 : vector<8xf32> to vector<8x1xf32>
    %89 = arith.addf %86, %88 : vector<8x1xf32>
    %90 = vector.broadcast %82 : vector<8x1xf32> to vector<8x8xf32>
    %91 = arith.mulf %90, %64#2 : vector<8x8xf32>
    %92 = arith.truncf %85 : vector<8x8xf32> to vector<8x8xbf16>
    %cst_37 = arith.constant dense<0.000000e+00> : vector<8x8xf32>
    %93 = tpu.matmul %92, %70, %cst_37 {dimension_numbers = #tpu.dot_dimension_numbers<[1], [0], [0], [1], [0, 0, 1, 1], [], []>} : vector<8x8xbf16>, vector<8x8xbf16>, vector<8x8xf32> -> vector<8x8xf32>
    %94 = arith.addf %91, %93 : vector<8x8xf32>
    %95 = tpu.reciprocal %89 {approx = true} : vector<8x1xf32> -> vector<8x1xf32>
    %96 = vector.broadcast %95 : vector<8x1xf32> to vector<8x8xf32>
    %97 = arith.mulf %94, %96 : vector<8x8xf32>
    %98 = vector.extract_strided_slice %13 {offsets = [0, 16], sizes = [8, 8], strides = [1, 1]} : vector<8x32xbf16> to vector<8x8xbf16>
    %cst_38 = arith.constant 0xFF800000 : f32
    %99 = vector.broadcast %cst_38 : f32 to vector<8x1xf32>
    %cst_39 = arith.constant 0.000000e+00 : f32
    %100 = vector.broadcast %cst_39 : f32 to vector<8x1xf32>
    %cst_40 = arith.constant 0.000000e+00 : f32
    %101 = vector.broadcast %cst_40 : f32 to vector<8x8xf32>
    %c0_i32_41 = arith.constant 0 : i32
    %102 = arith.subi %arg1, %c0_i32_41 : i32
    %103 = arith.addi %c0_i32_41, %102 : i32
    %c1_i32_42 = arith.constant 1 : i32
    %104:3 = scf.for %arg15 = %c0_i32_41 to %103 step %c1_i32_42 iter_args(%arg16 = %99, %arg17 = %100, %arg18 = %101) -> (vector<8x1xf32>, vector<8x1xf32>, vector<8x8xf32>)  : i32 {
      %c2_132 = arith.constant 2 : index
      %242 = arith.index_cast %arg15 : i32 to index
      %c0_133 = arith.constant 0 : index
      %c0_134 = arith.constant 0 : index
      %243 = vector.load %arg13[%c2_132, %242, %c0_133, %c0_134] : memref<4x2x8x8xbf16, #tpu.memory_space<vmem>>, vector<1x1x8x8xbf16>
      %244 = vector.shape_cast %243 : vector<1x1x8x8xbf16> to vector<8x8xbf16>
      %c2_135 = arith.constant 2 : index
      %245 = arith.index_cast %arg15 : i32 to index
      %c0_136 = arith.constant 0 : index
      %c0_137 = arith.constant 0 : index
      %246 = vector.load %arg14[%c2_135, %245, %c0_136, %c0_137] : memref<4x2x8x8xbf16, #tpu.memory_space<vmem>>, vector<1x1x8x8xbf16>
      %247 = vector.shape_cast %246 : vector<1x1x8x8xbf16> to vector<8x8xbf16>
      %cst_138 = arith.constant dense<0.000000e+00> : vector<8x8xf32>
      %248 = tpu.matmul %98, %244, %cst_138 {dimension_numbers = #tpu.dot_dimension_numbers<[1], [1], [0], [0], [0, 0, 1, 0], [], []>} : vector<8x8xbf16>, vector<8x8xbf16>, vector<8x8xf32> -> vector<8x8xf32>
      %cst_139 = arith.constant dense<0xFF800000> : vector<8xf32>
      %249 = vector.multi_reduction <maximumf>, %248, %cst_139 [1] : vector<8x8xf32> to vector<8xf32>
      %250 = vector.shape_cast %249 : vector<8xf32> to vector<8x1xf32>
      %251 = arith.maximumf %arg16, %250 : vector<8x1xf32>
      %252 = arith.subf %arg16, %251 : vector<8x1xf32>
      %253 = math.exp %252 : vector<8x1xf32>
      %254 = vector.broadcast %251 : vector<8x1xf32> to vector<8x8xf32>
      %255 = arith.subf %248, %254 : vector<8x8xf32>
      %256 = math.exp %255 : vector<8x8xf32>
      %257 = arith.mulf %253, %arg17 : vector<8x1xf32>
      %cst_140 = arith.constant dense<0.000000e+00> : vector<8xf32>
      %258 = vector.multi_reduction <add>, %256, %cst_140 [1] : vector<8x8xf32> to vector<8xf32>
      %259 = vector.shape_cast %258 : vector<8xf32> to vector<8x1xf32>
      %260 = arith.addf %257, %259 : vector<8x1xf32>
      %261 = vector.broadcast %253 : vector<8x1xf32> to vector<8x8xf32>
      %262 = arith.mulf %261, %arg18 : vector<8x8xf32>
      %263 = arith.truncf %256 : vector<8x8xf32> to vector<8x8xbf16>
      %cst_141 = arith.constant dense<0.000000e+00> : vector<8x8xf32>
      %264 = tpu.matmul %263, %247, %cst_141 {dimension_numbers = #tpu.dot_dimension_numbers<[1], [0], [0], [1], [0, 0, 1, 1], [], []>} : vector<8x8xbf16>, vector<8x8xbf16>, vector<8x8xf32> -> vector<8x8xf32>
      %265 = arith.addf %262, %264 : vector<8x8xf32>
      scf.yield %251, %260, %265 : vector<8x1xf32>, vector<8x1xf32>, vector<8x8xf32>
    }
    %c2 = arith.constant 2 : index
    %105 = arith.index_cast %arg1 : i32 to index
    %c0_43 = arith.constant 0 : index
    %c0_44 = arith.constant 0 : index
    %106 = vector.load %arg13[%c2, %105, %c0_43, %c0_44] : memref<4x2x8x8xbf16, #tpu.memory_space<vmem>>, vector<1x1x8x8xbf16>
    %107 = vector.shape_cast %106 : vector<1x1x8x8xbf16> to vector<8x8xbf16>
    %c2_45 = arith.constant 2 : index
    %108 = arith.index_cast %arg1 : i32 to index
    %c0_46 = arith.constant 0 : index
    %c0_47 = arith.constant 0 : index
    %109 = vector.load %arg14[%c2_45, %108, %c0_46, %c0_47] : memref<4x2x8x8xbf16, #tpu.memory_space<vmem>>, vector<1x1x8x8xbf16>
    %110 = vector.shape_cast %109 : vector<1x1x8x8xbf16> to vector<8x8xbf16>
    %cst_48 = arith.constant dense<0.000000e+00> : vector<8x8xf32>
    %111 = tpu.matmul %98, %107, %cst_48 {dimension_numbers = #tpu.dot_dimension_numbers<[1], [1], [0], [0], [0, 0, 1, 0], [], []>} : vector<8x8xbf16>, vector<8x8xbf16>, vector<8x8xf32> -> vector<8x8xf32>
    %c8_i32_49 = arith.constant 8 : i32
    %112 = arith.muli %arg1, %c8_i32_49 : i32
    %113 = vector.broadcast %112 : i32 to vector<8x8xi32>
    %114 = arith.addi %113, %17 : vector<8x8xi32>
    %115 = arith.cmpi sle, %114, %16 : vector<8x8xi32>
    %cst_50 = arith.constant 0xFF800000 : f32
    %116 = vector.broadcast %cst_50 : f32 to vector<8x8xf32>
    %117 = arith.select %115, %111, %116 : vector<8x8xi1>, vector<8x8xf32>
    %cst_51 = arith.constant dense<0xFF800000> : vector<8xf32>
    %118 = vector.multi_reduction <maximumf>, %117, %cst_51 [1] : vector<8x8xf32> to vector<8xf32>
    %119 = vector.shape_cast %118 : vector<8xf32> to vector<8x1xf32>
    %120 = arith.maximumf %104#0, %119 : vector<8x1xf32>
    %121 = arith.subf %104#0, %120 : vector<8x1xf32>
    %122 = math.exp %121 : vector<8x1xf32>
    %123 = vector.broadcast %120 : vector<8x1xf32> to vector<8x8xf32>
    %124 = arith.subf %117, %123 : vector<8x8xf32>
    %125 = math.exp %124 : vector<8x8xf32>
    %126 = arith.mulf %122, %104#1 : vector<8x1xf32>
    %cst_52 = arith.constant dense<0.000000e+00> : vector<8xf32>
    %127 = vector.multi_reduction <add>, %125, %cst_52 [1] : vector<8x8xf32> to vector<8xf32>
    %128 = vector.shape_cast %127 : vector<8xf32> to vector<8x1xf32>
    %129 = arith.addf %126, %128 : vector<8x1xf32>
    %130 = vector.broadcast %122 : vector<8x1xf32> to vector<8x8xf32>
    %131 = arith.mulf %130, %104#2 : vector<8x8xf32>
    %132 = arith.truncf %125 : vector<8x8xf32> to vector<8x8xbf16>
    %cst_53 = arith.constant dense<0.000000e+00> : vector<8x8xf32>
    %133 = tpu.matmul %132, %110, %cst_53 {dimension_numbers = #tpu.dot_dimension_numbers<[1], [0], [0], [1], [0, 0, 1, 1], [], []>} : vector<8x8xbf16>, vector<8x8xbf16>, vector<8x8xf32> -> vector<8x8xf32>
    %134 = arith.addf %131, %133 : vector<8x8xf32>
    %135 = tpu.reciprocal %129 {approx = true} : vector<8x1xf32> -> vector<8x1xf32>
    %136 = vector.broadcast %135 : vector<8x1xf32> to vector<8x8xf32>
    %137 = arith.mulf %134, %136 : vector<8x8xf32>
    %138 = vector.extract_strided_slice %13 {offsets = [0, 24], sizes = [8, 8], strides = [1, 1]} : vector<8x32xbf16> to vector<8x8xbf16>
    %cst_54 = arith.constant 0xFF800000 : f32
    %139 = vector.broadcast %cst_54 : f32 to vector<8x1xf32>
    %cst_55 = arith.constant 0.000000e+00 : f32
    %140 = vector.broadcast %cst_55 : f32 to vector<8x1xf32>
    %cst_56 = arith.constant 0.000000e+00 : f32
    %141 = vector.broadcast %cst_56 : f32 to vector<8x8xf32>
    %c0_i32_57 = arith.constant 0 : i32
    %142 = arith.subi %arg1, %c0_i32_57 : i32
    %143 = arith.addi %c0_i32_57, %142 : i32
    %c1_i32_58 = arith.constant 1 : i32
    %144:3 = scf.for %arg15 = %c0_i32_57 to %143 step %c1_i32_58 iter_args(%arg16 = %139, %arg17 = %140, %arg18 = %141) -> (vector<8x1xf32>, vector<8x1xf32>, vector<8x8xf32>)  : i32 {
      %c3_132 = arith.constant 3 : index
      %242 = arith.index_cast %arg15 : i32 to index
      %c0_133 = arith.constant 0 : index
      %c0_134 = arith.constant 0 : index
      %243 = vector.load %arg13[%c3_132, %242, %c0_133, %c0_134] : memref<4x2x8x8xbf16, #tpu.memory_space<vmem>>, vector<1x1x8x8xbf16>
      %244 = vector.shape_cast %243 : vector<1x1x8x8xbf16> to vector<8x8xbf16>
      %c3_135 = arith.constant 3 : index
      %245 = arith.index_cast %arg15 : i32 to index
      %c0_136 = arith.constant 0 : index
      %c0_137 = arith.constant 0 : index
      %246 = vector.load %arg14[%c3_135, %245, %c0_136, %c0_137] : memref<4x2x8x8xbf16, #tpu.memory_space<vmem>>, vector<1x1x8x8xbf16>
      %247 = vector.shape_cast %246 : vector<1x1x8x8xbf16> to vector<8x8xbf16>
      %cst_138 = arith.constant dense<0.000000e+00> : vector<8x8xf32>
      %248 = tpu.matmul %138, %244, %cst_138 {dimension_numbers = #tpu.dot_dimension_numbers<[1], [1], [0], [0], [0, 0, 1, 0], [], []>} : vector<8x8xbf16>, vector<8x8xbf16>, vector<8x8xf32> -> vector<8x8xf32>
      %cst_139 = arith.constant dense<0xFF800000> : vector<8xf32>
      %249 = vector.multi_reduction <maximumf>, %248, %cst_139 [1] : vector<8x8xf32> to vector<8xf32>
      %250 = vector.shape_cast %249 : vector<8xf32> to vector<8x1xf32>
      %251 = arith.maximumf %arg16, %250 : vector<8x1xf32>
      %252 = arith.subf %arg16, %251 : vector<8x1xf32>
      %253 = math.exp %252 : vector<8x1xf32>
      %254 = vector.broadcast %251 : vector<8x1xf32> to vector<8x8xf32>
      %255 = arith.subf %248, %254 : vector<8x8xf32>
      %256 = math.exp %255 : vector<8x8xf32>
      %257 = arith.mulf %253, %arg17 : vector<8x1xf32>
      %cst_140 = arith.constant dense<0.000000e+00> : vector<8xf32>
      %258 = vector.multi_reduction <add>, %256, %cst_140 [1] : vector<8x8xf32> to vector<8xf32>
      %259 = vector.shape_cast %258 : vector<8xf32> to vector<8x1xf32>
      %260 = arith.addf %257, %259 : vector<8x1xf32>
      %261 = vector.broadcast %253 : vector<8x1xf32> to vector<8x8xf32>
      %262 = arith.mulf %261, %arg18 : vector<8x8xf32>
      %263 = arith.truncf %256 : vector<8x8xf32> to vector<8x8xbf16>
      %cst_141 = arith.constant dense<0.000000e+00> : vector<8x8xf32>
      %264 = tpu.matmul %263, %247, %cst_141 {dimension_numbers = #tpu.dot_dimension_numbers<[1], [0], [0], [1], [0, 0, 1, 1], [], []>} : vector<8x8xbf16>, vector<8x8xbf16>, vector<8x8xf32> -> vector<8x8xf32>
      %265 = arith.addf %262, %264 : vector<8x8xf32>
      scf.yield %251, %260, %265 : vector<8x1xf32>, vector<8x1xf32>, vector<8x8xf32>
    }
    %c3 = arith.constant 3 : index
    %145 = arith.index_cast %arg1 : i32 to index
    %c0_59 = arith.constant 0 : index
    %c0_60 = arith.constant 0 : index
    %146 = vector.load %arg13[%c3, %145, %c0_59, %c0_60] : memref<4x2x8x8xbf16, #tpu.memory_space<vmem>>, vector<1x1x8x8xbf16>
    %147 = vector.shape_cast %146 : vector<1x1x8x8xbf16> to vector<8x8xbf16>
    %c3_61 = arith.constant 3 : index
    %148 = arith.index_cast %arg1 : i32 to index
    %c0_62 = arith.constant 0 : index
    %c0_63 = arith.constant 0 : index
    %149 = vector.load %arg14[%c3_61, %148, %c0_62, %c0_63] : memref<4x2x8x8xbf16, #tpu.memory_space<vmem>>, vector<1x1x8x8xbf16>
    %150 = vector.shape_cast %149 : vector<1x1x8x8xbf16> to vector<8x8xbf16>
    %cst_64 = arith.constant dense<0.000000e+00> : vector<8x8xf32>
    %151 = tpu.matmul %138, %147, %cst_64 {dimension_numbers = #tpu.dot_dimension_numbers<[1], [1], [0], [0], [0, 0, 1, 0], [], []>} : vector<8x8xbf16>, vector<8x8xbf16>, vector<8x8xf32> -> vector<8x8xf32>
    %c8_i32_65 = arith.constant 8 : i32
    %152 = arith.muli %arg1, %c8_i32_65 : i32
    %153 = vector.broadcast %152 : i32 to vector<8x8xi32>
    %154 = arith.addi %153, %17 : vector<8x8xi32>
    %155 = arith.cmpi sle, %154, %16 : vector<8x8xi32>
    %cst_66 = arith.constant 0xFF800000 : f32
    %156 = vector.broadcast %cst_66 : f32 to vector<8x8xf32>
    %157 = arith.select %155, %151, %156 : vector<8x8xi1>, vector<8x8xf32>
    %cst_67 = arith.constant dense<0xFF800000> : vector<8xf32>
    %158 = vector.multi_reduction <maximumf>, %157, %cst_67 [1] : vector<8x8xf32> to vector<8xf32>
    %159 = vector.shape_cast %158 : vector<8xf32> to vector<8x1xf32>
    %160 = arith.maximumf %144#0, %159 : vector<8x1xf32>
    %161 = arith.subf %144#0, %160 : vector<8x1xf32>
    %162 = math.exp %161 : vector<8x1xf32>
    %163 = vector.broadcast %160 : vector<8x1xf32> to vector<8x8xf32>
    %164 = arith.subf %157, %163 : vector<8x8xf32>
    %165 = math.exp %164 : vector<8x8xf32>
    %166 = arith.mulf %162, %144#1 : vector<8x1xf32>
    %cst_68 = arith.constant dense<0.000000e+00> : vector<8xf32>
    %167 = vector.multi_reduction <add>, %165, %cst_68 [1] : vector<8x8xf32> to vector<8xf32>
    %168 = vector.shape_cast %167 : vector<8xf32> to vector<8x1xf32>
    %169 = arith.addf %166, %168 : vector<8x1xf32>
    %170 = vector.broadcast %162 : vector<8x1xf32> to vector<8x8xf32>
    %171 = arith.mulf %170, %144#2 : vector<8x8xf32>
    %172 = arith.truncf %165 : vector<8x8xf32> to vector<8x8xbf16>
    %cst_69 = arith.constant dense<0.000000e+00> : vector<8x8xf32>
    %173 = tpu.matmul %172, %150, %cst_69 {dimension_numbers = #tpu.dot_dimension_numbers<[1], [0], [0], [1], [0, 0, 1, 1], [], []>} : vector<8x8xbf16>, vector<8x8xbf16>, vector<8x8xf32> -> vector<8x8xf32>
    %174 = arith.addf %171, %173 : vector<8x8xf32>
    %175 = tpu.reciprocal %169 {approx = true} : vector<8x1xf32> -> vector<8x1xf32>
    %176 = vector.broadcast %175 : vector<8x1xf32> to vector<8x8xf32>
    %177 = arith.mulf %174, %176 : vector<8x8xf32>
    %178 = tpu.concatenate %57, %97, %137, %177 in 1 : vector<8x8xf32>, vector<8x8xf32>, vector<8x8xf32>, vector<8x8xf32> -> vector<8x32xf32>
    %179 = arith.truncf %178 : vector<8x32xf32> to vector<8x32xbf16>
    %c0_70 = arith.constant 0 : index
    %c0_71 = arith.constant 0 : index
    %180 = vector.load %arg8[%c0_70, %c0_71] : memref<32x32xbf16, #tpu.memory_space<vmem>>, vector<32x32xbf16>
    %cst_72 = arith.constant dense<0.000000e+00> : vector<8x32xf32>
    %181 = tpu.matmul %179, %180, %cst_72 {dimension_numbers = #tpu.dot_dimension_numbers<[1], [0], [0], [1], [0, 0, 1, 1], [], []>} : vector<8x32xbf16>, vector<32x32xbf16>, vector<8x32xf32> -> vector<8x32xf32>
    %182 = arith.addf %181, %7 : vector<8x32xf32>
    %c0_73 = arith.constant 0 : index
    %c0_74 = arith.constant 0 : index
    %c0_75 = arith.constant 0 : index
    %183 = vector.load %arg9[%c0_73, %c0_74, %c0_75] : memref<1x8x32xf32, #tpu.memory_space<vmem>>, vector<1x8x32xf32>
    %184 = vector.shape_cast %183 : vector<1x8x32xf32> to vector<8x32xf32>
    %185 = vector.shape_cast %182 : vector<8x32xf32> to vector<1x8x32xf32>
    tpu.vector_store %arg9[%c0_73, %c0_74, %c0_75], %185 {strides = array<i32>} : memref<1x8x32xf32, #tpu.memory_space<vmem>>, vector<1x8x32xf32>,
    %c0_76 = arith.constant 0 : index
    %186 = arith.index_cast %arg1 : i32 to index
    %c0_77 = arith.constant 0 : index
    %c0_78 = arith.constant 0 : index
    %187 = vector.load %arg13[%c0_76, %186, %c0_77, %c0_78] : memref<4x2x8x8xbf16, #tpu.memory_space<vmem>>, vector<1x1x8x8xbf16>
    %188 = vector.shape_cast %187 : vector<1x1x8x8xbf16> to vector<8x8xbf16>
    %189 = arith.extf %188 : vector<8x8xbf16> to vector<8x8xf32>
    %c0_79 = arith.constant 0 : index
    %c0_80 = arith.constant 0 : index
    %c0_81 = arith.constant 0 : index
    %c0_82 = arith.constant 0 : index
    %190 = vector.load %arg10[%c0_79, %c0_80, %c0_81, %c0_82] : memref<1x4x8x8xf32, #tpu.memory_space<vmem>>, vector<1x1x8x8xf32>
    %191 = vector.shape_cast %190 : vector<1x1x8x8xf32> to vector<8x8xf32>
    %192 = vector.shape_cast %189 : vector<8x8xf32> to vector<1x1x8x8xf32>
    tpu.vector_store %arg10[%c0_79, %c0_80, %c0_81, %c0_82], %192 {strides = array<i32>} : memref<1x4x8x8xf32, #tpu.memory_space<vmem>>, vector<1x1x8x8xf32>,
    %c0_83 = arith.constant 0 : index
    %193 = arith.index_cast %arg1 : i32 to index
    %c0_84 = arith.constant 0 : index
    %c0_85 = arith.constant 0 : index
    %194 = vector.load %arg14[%c0_83, %193, %c0_84, %c0_85] : memref<4x2x8x8xbf16, #tpu.memory_space<vmem>>, vector<1x1x8x8xbf16>
    %195 = vector.shape_cast %194 : vector<1x1x8x8xbf16> to vector<8x8xbf16>
    %196 = arith.extf %195 : vector<8x8xbf16> to vector<8x8xf32>
    %c0_86 = arith.constant 0 : index
    %c0_87 = arith.constant 0 : index
    %c0_88 = arith.constant 0 : index
    %c0_89 = arith.constant 0 : index
    %197 = vector.load %arg11[%c0_86, %c0_87, %c0_88, %c0_89] : memref<1x4x8x8xf32, #tpu.memory_space<vmem>>, vector<1x1x8x8xf32>
    %198 = vector.shape_cast %197 : vector<1x1x8x8xf32> to vector<8x8xf32>
    %199 = vector.shape_cast %196 : vector<8x8xf32> to vector<1x1x8x8xf32>
    tpu.vector_store %arg11[%c0_86, %c0_87, %c0_88, %c0_89], %199 {strides = array<i32>} : memref<1x4x8x8xf32, #tpu.memory_space<vmem>>, vector<1x1x8x8xf32>,
    %c1_90 = arith.constant 1 : index
    %200 = arith.index_cast %arg1 : i32 to index
    %c0_91 = arith.constant 0 : index
    %c0_92 = arith.constant 0 : index
    %201 = vector.load %arg13[%c1_90, %200, %c0_91, %c0_92] : memref<4x2x8x8xbf16, #tpu.memory_space<vmem>>, vector<1x1x8x8xbf16>
    %202 = vector.shape_cast %201 : vector<1x1x8x8xbf16> to vector<8x8xbf16>
    %203 = arith.extf %202 : vector<8x8xbf16> to vector<8x8xf32>
    %c0_93 = arith.constant 0 : index
    %c1_94 = arith.constant 1 : index
    %c0_95 = arith.constant 0 : index
    %c0_96 = arith.constant 0 : index
    %204 = vector.load %arg10[%c0_93, %c1_94, %c0_95, %c0_96] : memref<1x4x8x8xf32, #tpu.memory_space<vmem>>, vector<1x1x8x8xf32>
    %205 = vector.shape_cast %204 : vector<1x1x8x8xf32> to vector<8x8xf32>
    %206 = vector.shape_cast %203 : vector<8x8xf32> to vector<1x1x8x8xf32>
    tpu.vector_store %arg10[%c0_93, %c1_94, %c0_95, %c0_96], %206 {strides = array<i32>} : memref<1x4x8x8xf32, #tpu.memory_space<vmem>>, vector<1x1x8x8xf32>,
    %c1_97 = arith.constant 1 : index
    %207 = arith.index_cast %arg1 : i32 to index
    %c0_98 = arith.constant 0 : index
    %c0_99 = arith.constant 0 : index
    %208 = vector.load %arg14[%c1_97, %207, %c0_98, %c0_99] : memref<4x2x8x8xbf16, #tpu.memory_space<vmem>>, vector<1x1x8x8xbf16>
    %209 = vector.shape_cast %208 : vector<1x1x8x8xbf16> to vector<8x8xbf16>
    %210 = arith.extf %209 : vector<8x8xbf16> to vector<8x8xf32>
    %c0_100 = arith.constant 0 : index
    %c1_101 = arith.constant 1 : index
    %c0_102 = arith.constant 0 : index
    %c0_103 = arith.constant 0 : index
    %211 = vector.load %arg11[%c0_100, %c1_101, %c0_102, %c0_103] : memref<1x4x8x8xf32, #tpu.memory_space<vmem>>, vector<1x1x8x8xf32>
    %212 = vector.shape_cast %211 : vector<1x1x8x8xf32> to vector<8x8xf32>
    %213 = vector.shape_cast %210 : vector<8x8xf32> to vector<1x1x8x8xf32>
    tpu.vector_store %arg11[%c0_100, %c1_101, %c0_102, %c0_103], %213 {strides = array<i32>} : memref<1x4x8x8xf32, #tpu.memory_space<vmem>>, vector<1x1x8x8xf32>,
    %c2_104 = arith.constant 2 : index
    %214 = arith.index_cast %arg1 : i32 to index
    %c0_105 = arith.constant 0 : index
    %c0_106 = arith.constant 0 : index
    %215 = vector.load %arg13[%c2_104, %214, %c0_105, %c0_106] : memref<4x2x8x8xbf16, #tpu.memory_space<vmem>>, vector<1x1x8x8xbf16>
    %216 = vector.shape_cast %215 : vector<1x1x8x8xbf16> to vector<8x8xbf16>
    %217 = arith.extf %216 : vector<8x8xbf16> to vector<8x8xf32>
    %c0_107 = arith.constant 0 : index
    %c2_108 = arith.constant 2 : index
    %c0_109 = arith.constant 0 : index
    %c0_110 = arith.constant 0 : index
    %218 = vector.load %arg10[%c0_107, %c2_108, %c0_109, %c0_110] : memref<1x4x8x8xf32, #tpu.memory_space<vmem>>, vector<1x1x8x8xf32>
    %219 = vector.shape_cast %218 : vector<1x1x8x8xf32> to vector<8x8xf32>
    %220 = vector.shape_cast %217 : vector<8x8xf32> to vector<1x1x8x8xf32>
    tpu.vector_store %arg10[%c0_107, %c2_108, %c0_109, %c0_110], %220 {strides = array<i32>} : memref<1x4x8x8xf32, #tpu.memory_space<vmem>>, vector<1x1x8x8xf32>,
    %c2_111 = arith.constant 2 : index
    %221 = arith.index_cast %arg1 : i32 to index
    %c0_112 = arith.constant 0 : index
    %c0_113 = arith.constant 0 : index
    %222 = vector.load %arg14[%c2_111, %221, %c0_112, %c0_113] : memref<4x2x8x8xbf16, #tpu.memory_space<vmem>>, vector<1x1x8x8xbf16>
    %223 = vector.shape_cast %222 : vector<1x1x8x8xbf16> to vector<8x8xbf16>
    %224 = arith.extf %223 : vector<8x8xbf16> to vector<8x8xf32>
    %c0_114 = arith.constant 0 : index
    %c2_115 = arith.constant 2 : index
    %c0_116 = arith.constant 0 : index
    %c0_117 = arith.constant 0 : index
    %225 = vector.load %arg11[%c0_114, %c2_115, %c0_116, %c0_117] : memref<1x4x8x8xf32, #tpu.memory_space<vmem>>, vector<1x1x8x8xf32>
    %226 = vector.shape_cast %225 : vector<1x1x8x8xf32> to vector<8x8xf32>
    %227 = vector.shape_cast %224 : vector<8x8xf32> to vector<1x1x8x8xf32>
    tpu.vector_store %arg11[%c0_114, %c2_115, %c0_116, %c0_117], %227 {strides = array<i32>} : memref<1x4x8x8xf32, #tpu.memory_space<vmem>>, vector<1x1x8x8xf32>,
    %c3_118 = arith.constant 3 : index
    %228 = arith.index_cast %arg1 : i32 to index
    %c0_119 = arith.constant 0 : index
    %c0_120 = arith.constant 0 : index
    %229 = vector.load %arg13[%c3_118, %228, %c0_119, %c0_120] : memref<4x2x8x8xbf16, #tpu.memory_space<vmem>>, vector<1x1x8x8xbf16>
    %230 = vector.shape_cast %229 : vector<1x1x8x8xbf16> to vector<8x8xbf16>
    %231 = arith.extf %230 : vector<8x8xbf16> to vector<8x8xf32>
    %c0_121 = arith.constant 0 : index
    %c3_122 = arith.constant 3 : index
    %c0_123 = arith.constant 0 : index
    %c0_124 = arith.constant 0 : index
    %232 = vector.load %arg10[%c0_121, %c3_122, %c0_123, %c0_124] : memref<1x4x8x8xf32, #tpu.memory_space<vmem>>, vector<1x1x8x8xf32>
    %233 = vector.shape_cast %232 : vector<1x1x8x8xf32> to vector<8x8xf32>
    %234 = vector.shape_cast %231 : vector<8x8xf32> to vector<1x1x8x8xf32>
    tpu.vector_store %arg10[%c0_121, %c3_122, %c0_123, %c0_124], %234 {strides = array<i32>} : memref<1x4x8x8xf32, #tpu.memory_space<vmem>>, vector<1x1x8x8xf32>,
    %c3_125 = arith.constant 3 : index
    %235 = arith.index_cast %arg1 : i32 to index
    %c0_126 = arith.constant 0 : index
    %c0_127 = arith.constant 0 : index
    %236 = vector.load %arg14[%c3_125, %235, %c0_126, %c0_127] : memref<4x2x8x8xbf16, #tpu.memory_space<vmem>>, vector<1x1x8x8xbf16>
    %237 = vector.shape_cast %236 : vector<1x1x8x8xbf16> to vector<8x8xbf16>
    %238 = arith.extf %237 : vector<8x8xbf16> to vector<8x8xf32>
    %c0_128 = arith.constant 0 : index
    %c3_129 = arith.constant 3 : index
    %c0_130 = arith.constant 0 : index
    %c0_131 = arith.constant 0 : index
    %239 = vector.load %arg11[%c0_128, %c3_129, %c0_130, %c0_131] : memref<1x4x8x8xf32, #tpu.memory_space<vmem>>, vector<1x1x8x8xf32>
    %240 = vector.shape_cast %239 : vector<1x1x8x8xf32> to vector<8x8xf32>
    %241 = vector.shape_cast %238 : vector<8x8xf32> to vector<1x1x8x8xf32>
    tpu.vector_store %arg11[%c0_128, %c3_129, %c0_130, %c0_131], %241 {strides = array<i32>} : memref<1x4x8x8xf32, #tpu.memory_space<vmem>>, vector<1x1x8x8xf32>,
    return
  }
  func.func @transform_0(%arg0: i32, %arg1: i32) -> (i32, i32, i32) {
    %c0_i32 = arith.constant 0 : i32
    %c0_i32_0 = arith.constant 0 : i32
    %c0_i32_1 = arith.constant 0 : i32
    return %arg0, %c0_i32, %c0_i32_0 : i32, i32, i32
  }
  func.func @transform_1(%arg0: i32, %arg1: i32) -> (i32, i32) {
    %c0_i32 = arith.constant 0 : i32
    %c0_i32_0 = arith.constant 0 : i32
    %c0_i32_1 = arith.constant 0 : i32
    return %c0_i32, %c0_i32_0 : i32, i32
  }
  func.func @transform_2(%arg0: i32, %arg1: i32) -> (i32, i32) {
    %c0_i32 = arith.constant 0 : i32
    %c0_i32_0 = arith.constant 0 : i32
    %c0_i32_1 = arith.constant 0 : i32
    return %c0_i32, %c0_i32_0 : i32, i32
  }
  func.func @transform_3(%arg0: i32, %arg1: i32) -> (i32, i32) {
    %c0_i32 = arith.constant 0 : i32
    %c0_i32_0 = arith.constant 0 : i32
    %c0_i32_1 = arith.constant 0 : i32
    return %c0_i32, %c0_i32_0 : i32, i32
  }
  func.func @transform_4(%arg0: i32, %arg1: i32) -> (i32, i32) {
    %c0_i32 = arith.constant 0 : i32
    %c0_i32_0 = arith.constant 0 : i32
    %c0_i32_1 = arith.constant 0 : i32
    return %c0_i32, %c0_i32_0 : i32, i32
  }
  func.func @transform_5(%arg0: i32, %arg1: i32) -> (i32, i32) {
    %c0_i32 = arith.constant 0 : i32
    %c0_i32_0 = arith.constant 0 : i32
    %c0_i32_1 = arith.constant 0 : i32
    return %c0_i32, %c0_i32_0 : i32, i32
  }
  func.func @transform_6(%arg0: i32, %arg1: i32) -> (i32, i32) {
    %c0_i32 = arith.constant 0 : i32
    %c0_i32_0 = arith.constant 0 : i32
    %c0_i32_1 = arith.constant 0 : i32
    return %c0_i32, %c0_i32_0 : i32, i32
  }
  func.func @transform_7(%arg0: i32, %arg1: i32) -> (i32, i32, i32) {
    %c0_i32 = arith.constant 0 : i32
    %c0_i32_0 = arith.constant 0 : i32
    return %arg0, %arg1, %c0_i32 : i32, i32, i32
  }
  func.func @transform_8(%arg0: i32, %arg1: i32) -> (i32, i32, i32, i32) {
    %c0_i32 = arith.constant 0 : i32
    %c0_i32_0 = arith.constant 0 : i32
    %c0_i32_1 = arith.constant 0 : i32
    return %arg0, %c0_i32, %arg1, %c0_i32_0 : i32, i32, i32, i32
  }
  func.func @transform_9(%arg0: i32, %arg1: i32) -> (i32, i32, i32, i32) {
    %c0_i32 = arith.constant 0 : i32
    %c0_i32_0 = arith.constant 0 : i32
    %c0_i32_1 = arith.constant 0 : i32
    return %arg0, %c0_i32, %arg1, %c0_i32_0 : i32, i32, i32, i32
  }
}

module attributes {stable_mosaic.version = 11 : i64} {
  func.func @_mhca_kernel(%arg0: i32, %arg1: i32, %arg2: memref<1x16x32xf32, #tpu.memory_space<vmem>>, %arg3: memref<1x32xf32, #tpu.memory_space<vmem>>, %arg4: memref<1x32xf32, #tpu.memory_space<vmem>>, %arg5: memref<32x32xbf16, #tpu.memory_space<vmem>>, %arg6: memref<32x32xbf16, #tpu.memory_space<vmem>>, %arg7: memref<32x32xbf16, #tpu.memory_space<vmem>>, %arg8: memref<32x32xbf16, #tpu.memory_space<vmem>>, %arg9: memref<1x8x32xf32, #tpu.memory_space<vmem>>, %arg10: memref<1x4x8x8xf32, #tpu.memory_space<vmem>>, %arg11: memref<1x4x8x8xf32, #tpu.memory_space<vmem>>, %arg12: memref<2x8x32xbf16, #tpu.memory_space<vmem>>, %arg13: memref<4x2x8x8xbf16, #tpu.memory_space<vmem>>, %arg14: memref<4x2x8x8xbf16, #tpu.memory_space<vmem>>) attributes {dimension_semantics = [#tpu.dimension_semantics<parallel>, #tpu.dimension_semantics<arbitrary>], iteration_bounds = array<i64: 2, 2>, scalar_prefetch = 0 : i64, scratch_operands = 3 : i64, tpu.core_type = #tpu.core_type<tc>, window_params = [{transform_indices = @transform_0, window_bounds = array<i64: 1, 16, 32>}, {pipeline_mode = #tpu.pipeline_mode<synchronous>, transform_indices = @transform_1, window_bounds = array<i64: 1, 32>}, {pipeline_mode = #tpu.pipeline_mode<synchronous>, transform_indices = @transform_2, window_bounds = array<i64: 1, 32>}, {pipeline_mode = #tpu.pipeline_mode<synchronous>, transform_indices = @transform_3, window_bounds = array<i64: 32, 32>}, {pipeline_mode = #tpu.pipeline_mode<synchronous>, transform_indices = @transform_4, window_bounds = array<i64: 32, 32>}, {pipeline_mode = #tpu.pipeline_mode<synchronous>, transform_indices = @transform_5, window_bounds = array<i64: 32, 32>}, {pipeline_mode = #tpu.pipeline_mode<synchronous>, transform_indices = @transform_6, window_bounds = array<i64: 32, 32>}, {transform_indices = @transform_7, window_bounds = array<i64: 1, 8, 32>}, {transform_indices = @transform_8, window_bounds = array<i64: 1, 4, 8, 8>}, {transform_indices = @transform_9, window_bounds = array<i64: 1, 4, 8, 8>}]} {
    %c0_i32 = arith.constant 0 : i32
    %0 = arith.cmpi eq, %arg1, %c0_i32 : i32
    %1 = arith.extui %0 : i1 to i32
    %c0_i32_0 = arith.constant 0 : i32
    %2 = arith.cmpi ne, %1, %c0_i32_0 : i32
    scf.if %2 {
      %c0_132 = arith.constant 0 : index
      %c0_133 = arith.constant 0 : index
      %c0_134 = arith.constant 0 : index
      %242 = vector.load %arg2[%c0_132, %c0_133, %c0_134] : memref<1x16x32xf32, #tpu.memory_space<vmem>>, vector<1x16x32xf32>
      %243 = vector.shape_cast %242 : vector<1x16x32xf32> to vector<16x32xf32>
      %cst_135 = arith.constant dense<0.000000e+00> : vector<16xf32>
      %244 = vector.multi_reduction <add>, %243, %cst_135 [1] : vector<16x32xf32> to vector<16xf32>
      %245 = vector.shape_cast %244 : vector<16xf32> to vector<16x1xf32>
      %cst_136 = arith.constant 3.200000e+01 : f32
      %246 = vector.broadcast %cst_136 : f32 to vector<16x1xf32>
      %247 = arith.divf %245, %246 : vector<16x1xf32>
      %248 = vector.broadcast %247 : vector<16x1xf32> to vector<16x32xf32>
      %249 = arith.subf %243, %248 : vector<16x32xf32>
      %250 = arith.mulf %249, %249 : vector<16x32xf32>
      %cst_137 = arith.constant dense<0.000000e+00> : vector<16xf32>
      %251 = vector.multi_reduction <add>, %250, %cst_137 [1] : vector<16x32xf32> to vector<16xf32>
      %252 = vector.shape_cast %251 : vector<16xf32> to vector<16x1xf32>
      %cst_138 = arith.constant 3.200000e+01 : f32
      %253 = vector.broadcast %cst_138 : f32 to vector<16x1xf32>
      %254 = arith.divf %252, %253 : vector<16x1xf32>
      %cst_139 = arith.constant 9.99999974E-6 : f32
      %255 = vector.broadcast %cst_139 : f32 to vector<16x1xf32>
      %256 = arith.addf %254, %255 : vector<16x1xf32>
      %257 = math.rsqrt %256 : vector<16x1xf32>
      %258 = vector.broadcast %257 : vector<16x1xf32> to vector<16x32xf32>
      %259 = arith.mulf %249, %258 : vector<16x32xf32>
      %c0_140 = arith.constant 0 : index
      %c0_141 = arith.constant 0 : index
      %260 = vector.load %arg3[%c0_140, %c0_141] : memref<1x32xf32, #tpu.memory_space<vmem>>, vector<1x32xf32>
      %261 = vector.broadcast %260 : vector<1x32xf32> to vector<16x32xf32>
      %262 = arith.mulf %259, %261 : vector<16x32xf32>
      %c0_142 = arith.constant 0 : index
      %c0_143 = arith.constant 0 : index
      %263 = vector.load %arg4[%c0_142, %c0_143] : memref<1x32xf32, #tpu.memory_space<vmem>>, vector<1x32xf32>
      %264 = vector.broadcast %263 : vector<1x32xf32> to vector<16x32xf32>
      %265 = arith.addf %262, %264 : vector<16x32xf32>
      %266 = arith.truncf %265 : vector<16x32xf32> to vector<16x32xbf16>
      %267 = vector.shape_cast %265 : vector<16x32xf32> to vector<2x8x32xf32>
      %268 = arith.truncf %267 : vector<2x8x32xf32> to vector<2x8x32xbf16>
      %c0_144 = arith.constant 0 : index
      %c0_145 = arith.constant 0 : index
      %c0_146 = arith.constant 0 : index
      %269 = vector.load %arg12[%c0_144, %c0_145, %c0_146] : memref<2x8x32xbf16, #tpu.memory_space<vmem>>, vector<2x8x32xbf16>
      tpu.vector_store %arg12[%c0_144, %c0_145, %c0_146], %268 {strides = array<i32>} : memref<2x8x32xbf16, #tpu.memory_space<vmem>>, vector<2x8x32xbf16>,
      %c0_147 = arith.constant 0 : index
      %c0_148 = arith.constant 0 : index
      %270 = vector.load %arg7[%c0_147, %c0_148] : memref<32x32xbf16, #tpu.memory_space<vmem>>, vector<32x32xbf16>
      %cst_149 = arith.constant dense<0.000000e+00> : vector<16x32xf32>
      %271 = tpu.matmul %266, %270, %cst_149 {dimension_numbers = #tpu.dot_dimension_numbers<[1], [0], [0], [1], [0, 0, 1, 1], [], []>} : vector<16x32xbf16>, vector<32x32xbf16>, vector<16x32xf32> -> vector<16x32xf32>
      %272 = vector.extract_strided_slice %271 {offsets = [0, 0], sizes = [16, 8], strides = [1, 1]} : vector<16x32xf32> to vector<16x8xf32>
      %273 = vector.shape_cast %272 : vector<16x8xf32> to vector<2x8x8xf32>
      %274 = arith.truncf %273 : vector<2x8x8xf32> to vector<2x8x8xbf16>
      %c0_150 = arith.constant 0 : index
      %c0_151 = arith.constant 0 : index
      %c0_152 = arith.constant 0 : index
      %c0_153 = arith.constant 0 : index
      %275 = vector.load %arg13[%c0_150, %c0_151, %c0_152, %c0_153] : memref<4x2x8x8xbf16, #tpu.memory_space<vmem>>, vector<1x2x8x8xbf16>
      %276 = vector.shape_cast %275 : vector<1x2x8x8xbf16> to vector<2x8x8xbf16>
      %277 = vector.shape_cast %274 : vector<2x8x8xbf16> to vector<1x2x8x8xbf16>
      tpu.vector_store %arg13[%c0_150, %c0_151, %c0_152, %c0_153], %277 {strides = array<i32>} : memref<4x2x8x8xbf16, #tpu.memory_space<vmem>>, vector<1x2x8x8xbf16>,
      %278 = vector.extract_strided_slice %271 {offsets = [0, 8], sizes = [16, 8], strides = [1, 1]} : vector<16x32xf32> to vector<16x8xf32>
      %279 = vector.shape_cast %278 : vector<16x8xf32> to vector<2x8x8xf32>
      %280 = arith.truncf %279 : vector<2x8x8xf32> to vector<2x8x8xbf16>
      %c1_154 = arith.constant 1 : index
      %c0_155 = arith.constant 0 : index
      %c0_156 = arith.constant 0 : index
      %c0_157 = arith.constant 0 : index
      %281 = vector.load %arg13[%c1_154, %c0_155, %c0_156, %c0_157] : memref<4x2x8x8xbf16, #tpu.memory_space<vmem>>, vector<1x2x8x8xbf16>
      %282 = vector.shape_cast %281 : vector<1x2x8x8xbf16> to vector<2x8x8xbf16>
      %283 = vector.shape_cast %280 : vector<2x8x8xbf16> to vector<1x2x8x8xbf16>
      tpu.vector_store %arg13[%c1_154, %c0_155, %c0_156, %c0_157], %283 {strides = array<i32>} : memref<4x2x8x8xbf16, #tpu.memory_space<vmem>>, vector<1x2x8x8xbf16>,
      %284 = vector.extract_strided_slice %271 {offsets = [0, 16], sizes = [16, 8], strides = [1, 1]} : vector<16x32xf32> to vector<16x8xf32>
      %285 = vector.shape_cast %284 : vector<16x8xf32> to vector<2x8x8xf32>
      %286 = arith.truncf %285 : vector<2x8x8xf32> to vector<2x8x8xbf16>
      %c2_158 = arith.constant 2 : index
      %c0_159 = arith.constant 0 : index
      %c0_160 = arith.constant 0 : index
      %c0_161 = arith.constant 0 : index
      %287 = vector.load %arg13[%c2_158, %c0_159, %c0_160, %c0_161] : memref<4x2x8x8xbf16, #tpu.memory_space<vmem>>, vector<1x2x8x8xbf16>
      %288 = vector.shape_cast %287 : vector<1x2x8x8xbf16> to vector<2x8x8xbf16>
      %289 = vector.shape_cast %286 : vector<2x8x8xbf16> to vector<1x2x8x8xbf16>
      tpu.vector_store %arg13[%c2_158, %c0_159, %c0_160, %c0_161], %289 {strides = array<i32>} : memref<4x2x8x8xbf16, #tpu.memory_space<vmem>>, vector<1x2x8x8xbf16>,
      %290 = vector.extract_strided_slice %271 {offsets = [0, 24], sizes = [16, 8], strides = [1, 1]} : vector<16x32xf32> to vector<16x8xf32>
      %291 = vector.shape_cast %290 : vector<16x8xf32> to vector<2x8x8xf32>
      %292 = arith.truncf %291 : vector<2x8x8xf32> to vector<2x8x8xbf16>
      %c3_162 = arith.constant 3 : index
      %c0_163 = arith.constant 0 : index
      %c0_164 = arith.constant 0 : index
      %c0_165 = arith.constant 0 : index
      %293 = vector.load %arg13[%c3_162, %c0_163, %c0_164, %c0_165] : memref<4x2x8x8xbf16, #tpu.memory_space<vmem>>, vector<1x2x8x8xbf16>
      %294 = vector.shape_cast %293 : vector<1x2x8x8xbf16> to vector<2x8x8xbf16>
      %295 = vector.shape_cast %292 : vector<2x8x8xbf16> to vector<1x2x8x8xbf16>
      tpu.vector_store %arg13[%c3_162, %c0_163, %c0_164, %c0_165], %295 {strides = array<i32>} : memref<4x2x8x8xbf16, #tpu.memory_space<vmem>>, vector<1x2x8x8xbf16>,
      %c0_166 = arith.constant 0 : index
      %c0_167 = arith.constant 0 : index
      %296 = vector.load %arg6[%c0_166, %c0_167] : memref<32x32xbf16, #tpu.memory_space<vmem>>, vector<32x32xbf16>
      %cst_168 = arith.constant dense<0.000000e+00> : vector<16x32xf32>
      %297 = tpu.matmul %266, %296, %cst_168 {dimension_numbers = #tpu.dot_dimension_numbers<[1], [0], [0], [1], [0, 0, 1, 1], [], []>} : vector<16x32xbf16>, vector<32x32xbf16>, vector<16x32xf32> -> vector<16x32xf32>
      %298 = vector.extract_strided_slice %297 {offsets = [0, 0], sizes = [16, 8], strides = [1, 1]} : vector<16x32xf32> to vector<16x8xf32>
      %299 = vector.shape_cast %298 : vector<16x8xf32> to vector<2x8x8xf32>
      %300 = arith.truncf %299 : vector<2x8x8xf32> to vector<2x8x8xbf16>
      %c0_169 = arith.constant 0 : index
      %c0_170 = arith.constant 0 : index
      %c0_171 = arith.constant 0 : index
      %c0_172 = arith.constant 0 : index
      %301 = vector.load %arg14[%c0_169, %c0_170, %c0_171, %c0_172] : memref<4x2x8x8xbf16, #tpu.memory_space<vmem>>, vector<1x2x8x8xbf16>
      %302 = vector.shape_cast %301 : vector<1x2x8x8xbf16> to vector<2x8x8xbf16>
      %303 = vector.shape_cast %300 : vector<2x8x8xbf16> to vector<1x2x8x8xbf16>
      tpu.vector_store %arg14[%c0_169, %c0_170, %c0_171, %c0_172], %303 {strides = array<i32>} : memref<4x2x8x8xbf16, #tpu.memory_space<vmem>>, vector<1x2x8x8xbf16>,
      %304 = vector.extract_strided_slice %297 {offsets = [0, 8], sizes = [16, 8], strides = [1, 1]} : vector<16x32xf32> to vector<16x8xf32>
      %305 = vector.shape_cast %304 : vector<16x8xf32> to vector<2x8x8xf32>
      %306 = arith.truncf %305 : vector<2x8x8xf32> to vector<2x8x8xbf16>
      %c1_173 = arith.constant 1 : index
      %c0_174 = arith.constant 0 : index
      %c0_175 = arith.constant 0 : index
      %c0_176 = arith.constant 0 : index
      %307 = vector.load %arg14[%c1_173, %c0_174, %c0_175, %c0_176] : memref<4x2x8x8xbf16, #tpu.memory_space<vmem>>, vector<1x2x8x8xbf16>
      %308 = vector.shape_cast %307 : vector<1x2x8x8xbf16> to vector<2x8x8xbf16>
      %309 = vector.shape_cast %306 : vector<2x8x8xbf16> to vector<1x2x8x8xbf16>
      tpu.vector_store %arg14[%c1_173, %c0_174, %c0_175, %c0_176], %309 {strides = array<i32>} : memref<4x2x8x8xbf16, #tpu.memory_space<vmem>>, vector<1x2x8x8xbf16>,
      %310 = vector.extract_strided_slice %297 {offsets = [0, 16], sizes = [16, 8], strides = [1, 1]} : vector<16x32xf32> to vector<16x8xf32>
      %311 = vector.shape_cast %310 : vector<16x8xf32> to vector<2x8x8xf32>
      %312 = arith.truncf %311 : vector<2x8x8xf32> to vector<2x8x8xbf16>
      %c2_177 = arith.constant 2 : index
      %c0_178 = arith.constant 0 : index
      %c0_179 = arith.constant 0 : index
      %c0_180 = arith.constant 0 : index
      %313 = vector.load %arg14[%c2_177, %c0_178, %c0_179, %c0_180] : memref<4x2x8x8xbf16, #tpu.memory_space<vmem>>, vector<1x2x8x8xbf16>
      %314 = vector.shape_cast %313 : vector<1x2x8x8xbf16> to vector<2x8x8xbf16>
      %315 = vector.shape_cast %312 : vector<2x8x8xbf16> to vector<1x2x8x8xbf16>
      tpu.vector_store %arg14[%c2_177, %c0_178, %c0_179, %c0_180], %315 {strides = array<i32>} : memref<4x2x8x8xbf16, #tpu.memory_space<vmem>>, vector<1x2x8x8xbf16>,
      %316 = vector.extract_strided_slice %297 {offsets = [0, 24], sizes = [16, 8], strides = [1, 1]} : vector<16x32xf32> to vector<16x8xf32>
      %317 = vector.shape_cast %316 : vector<16x8xf32> to vector<2x8x8xf32>
      %318 = arith.truncf %317 : vector<2x8x8xf32> to vector<2x8x8xbf16>
      %c3_181 = arith.constant 3 : index
      %c0_182 = arith.constant 0 : index
      %c0_183 = arith.constant 0 : index
      %c0_184 = arith.constant 0 : index
      %319 = vector.load %arg14[%c3_181, %c0_182, %c0_183, %c0_184] : memref<4x2x8x8xbf16, #tpu.memory_space<vmem>>, vector<1x2x8x8xbf16>
      %320 = vector.shape_cast %319 : vector<1x2x8x8xbf16> to vector<2x8x8xbf16>
      %321 = vector.shape_cast %318 : vector<2x8x8xbf16> to vector<1x2x8x8xbf16>
      tpu.vector_store %arg14[%c3_181, %c0_182, %c0_183, %c0_184], %321 {strides = array<i32>} : memref<4x2x8x8xbf16, #tpu.memory_space<vmem>>, vector<1x2x8x8xbf16>,
    } else {
    }
    %c8_i32 = arith.constant 8 : i32
    %3 = arith.muli %arg1, %c8_i32 : i32
    %4 = tpu.assume_multiple %3, 8 : i32
    %c0 = arith.constant 0 : index
    %5 = arith.index_cast %4 : i32 to index
    %c0_1 = arith.constant 0 : index
    %6 = vector.load %arg2[%c0, %5, %c0_1] : memref<1x16x32xf32, #tpu.memory_space<vmem>>, vector<1x8x32xf32>
    %7 = vector.shape_cast %6 : vector<1x8x32xf32> to vector<8x32xf32>
    %8 = arith.index_cast %arg1 : i32 to index
    %c0_2 = arith.constant 0 : index
    %c0_3 = arith.constant 0 : index
    %9 = vector.load %arg12[%8, %c0_2, %c0_3] : memref<2x8x32xbf16, #tpu.memory_space<vmem>>, vector<1x8x32xbf16>
    %10 = vector.shape_cast %9 : vector<1x8x32xbf16> to vector<8x32xbf16>
    %c0_4 = arith.constant 0 : index
    %c0_5 = arith.constant 0 : index
    %11 = vector.load %arg5[%c0_4, %c0_5] : memref<32x32xbf16, #tpu.memory_space<vmem>>, vector<32x32xbf16>
    %cst = arith.constant dense<0.000000e+00> : vector<8x32xf32>
    %12 = tpu.matmul %10, %11, %cst {dimension_numbers = #tpu.dot_dimension_numbers<[1], [0], [0], [1], [0, 0, 1, 1], [], []>} : vector<8x32xbf16>, vector<32x32xbf16>, vector<8x32xf32> -> vector<8x32xf32>
    %13 = arith.truncf %12 : vector<8x32xf32> to vector<8x32xbf16>
    %14 = tpu.iota {dimensions = array<i32: 0>} : vector<8x8xi32>
    %15 = vector.broadcast %4 : i32 to vector<8x8xi32>
    %16 = arith.addi %15, %14 : vector<8x8xi32>
    %17 = tpu.iota {dimensions = array<i32: 1>} : vector<8x8xi32>
    %18 = vector.extract_strided_slice %13 {offsets = [0, 0], sizes = [8, 8], strides = [1, 1]} : vector<8x32xbf16> to vector<8x8xbf16>
    %cst_6 = arith.constant 0xFF800000 : f32
    %19 = vector.broadcast %cst_6 : f32 to vector<8x1xf32>
    %cst_7 = arith.constant 0.000000e+00 : f32
    %20 = vector.broadcast %cst_7 : f32 to vector<8x1xf32>
    %cst_8 = arith.constant 0.000000e+00 : f32
    %21 = vector.broadcast %cst_8 : f32 to vector<8x8xf32>
    %c0_i32_9 = arith.constant 0 : i32
    %22 = arith.subi %arg1, %c0_i32_9 : i32
    %23 = arith.addi %c0_i32_9, %22 : i32
    %c1_i32 = arith.constant 1 : i32
    %24:3 = scf.for %arg15 = %c0_i32_9 to %23 step %c1_i32 iter_args(%arg16 = %19, %arg17 = %20, %arg18 = %21) -> (vector<8x1xf32>, vector<8x1xf32>, vector<8x8xf32>)  : i32 {
      %c0_132 = arith.constant 0 : index
      %242 = arith.index_cast %arg15 : i32 to index
      %c0_133 = arith.constant 0 : index
      %c0_134 = arith.constant 0 : index
      %243 = vector.load %arg13[%c0_132, %242, %c0_133, %c0_134] : memref<4x2x8x8xbf16, #tpu.memory_space<vmem>>, vector<1x1x8x8xbf16>
      %244 = vector.shape_cast %243 : vector<1x1x8x8xbf16> to vector<8x8xbf16>
      %c0_135 = arith.constant 0 : index
      %245 = arith.index_cast %arg15 : i32 to index
      %c0_136 = arith.constant 0 : index
      %c0_137 = arith.constant 0 : index
      %246 = vector.load %arg14[%c0_135, %245, %c0_136, %c0_137] : memref<4x2x8x8xbf16, #tpu.memory_space<vmem>>, vector<1x1x8x8xbf16>
      %247 = vector.shape_cast %246 : vector<1x1x8x8xbf16> to vector<8x8xbf16>
      %cst_138 = arith.constant dense<0.000000e+00> : vector<8x8xf32>
      %248 = tpu.matmul %18, %244, %cst_138 {dimension_numbers = #tpu.dot_dimension_numbers<[1], [1], [0], [0], [0, 0, 1, 0], [], []>} : vector<8x8xbf16>, vector<8x8xbf16>, vector<8x8xf32> -> vector<8x8xf32>
      %cst_139 = arith.constant dense<0xFF800000> : vector<8xf32>
      %249 = vector.multi_reduction <maximumf>, %248, %cst_139 [1] : vector<8x8xf32> to vector<8xf32>
      %250 = vector.shape_cast %249 : vector<8xf32> to vector<8x1xf32>
      %251 = arith.maximumf %arg16, %250 : vector<8x1xf32>
      %252 = arith.subf %arg16, %251 : vector<8x1xf32>
      %253 = math.exp %252 : vector<8x1xf32>
      %254 = vector.broadcast %251 : vector<8x1xf32> to vector<8x8xf32>
      %255 = arith.subf %248, %254 : vector<8x8xf32>
      %256 = math.exp %255 : vector<8x8xf32>
      %257 = arith.mulf %253, %arg17 : vector<8x1xf32>
      %cst_140 = arith.constant dense<0.000000e+00> : vector<8xf32>
      %258 = vector.multi_reduction <add>, %256, %cst_140 [1] : vector<8x8xf32> to vector<8xf32>
      %259 = vector.shape_cast %258 : vector<8xf32> to vector<8x1xf32>
      %260 = arith.addf %257, %259 : vector<8x1xf32>
      %261 = vector.broadcast %253 : vector<8x1xf32> to vector<8x8xf32>
      %262 = arith.mulf %261, %arg18 : vector<8x8xf32>
      %263 = arith.truncf %256 : vector<8x8xf32> to vector<8x8xbf16>
      %cst_141 = arith.constant dense<0.000000e+00> : vector<8x8xf32>
      %264 = tpu.matmul %263, %247, %cst_141 {dimension_numbers = #tpu.dot_dimension_numbers<[1], [0], [0], [1], [0, 0, 1, 1], [], []>} : vector<8x8xbf16>, vector<8x8xbf16>, vector<8x8xf32> -> vector<8x8xf32>
      %265 = arith.addf %262, %264 : vector<8x8xf32>
      scf.yield %251, %260, %265 : vector<8x1xf32>, vector<8x1xf32>, vector<8x8xf32>
    }
    %c0_10 = arith.constant 0 : index
    %25 = arith.index_cast %arg1 : i32 to index
    %c0_11 = arith.constant 0 : index
    %c0_12 = arith.constant 0 : index
    %26 = vector.load %arg13[%c0_10, %25, %c0_11, %c0_12] : memref<4x2x8x8xbf16, #tpu.memory_space<vmem>>, vector<1x1x8x8xbf16>
    %27 = vector.shape_cast %26 : vector<1x1x8x8xbf16> to vector<8x8xbf16>
    %c0_13 = arith.constant 0 : index
    %28 = arith.index_cast %arg1 : i32 to index
    %c0_14 = arith.constant 0 : index
    %c0_15 = arith.constant 0 : index
    %29 = vector.load %arg14[%c0_13, %28, %c0_14, %c0_15] : memref<4x2x8x8xbf16, #tpu.memory_space<vmem>>, vector<1x1x8x8xbf16>
    %30 = vector.shape_cast %29 : vector<1x1x8x8xbf16> to vector<8x8xbf16>
    %cst_16 = arith.constant dense<0.000000e+00> : vector<8x8xf32>
    %31 = tpu.matmul %18, %27, %cst_16 {dimension_numbers = #tpu.dot_dimension_numbers<[1], [1], [0], [0], [0, 0, 1, 0], [], []>} : vector<8x8xbf16>, vector<8x8xbf16>, vector<8x8xf32> -> vector<8x8xf32>
    %c8_i32_17 = arith.constant 8 : i32
    %32 = arith.muli %arg1, %c8_i32_17 : i32
    %33 = vector.broadcast %32 : i32 to vector<8x8xi32>
    %34 = arith.addi %33, %17 : vector<8x8xi32>
    %35 = arith.cmpi sle, %34, %16 : vector<8x8xi32>
    %cst_18 = arith.constant 0xFF800000 : f32
    %36 = vector.broadcast %cst_18 : f32 to vector<8x8xf32>
    %37 = arith.select %35, %31, %36 : vector<8x8xi1>, vector<8x8xf32>
    %cst_19 = arith.constant dense<0xFF800000> : vector<8xf32>
    %38 = vector.multi_reduction <maximumf>, %37, %cst_19 [1] : vector<8x8xf32> to vector<8xf32>
    %39 = vector.shape_cast %38 : vector<8xf32> to vector<8x1xf32>
    %40 = arith.maximumf %24#0, %39 : vector<8x1xf32>
    %41 = arith.subf %24#0, %40 : vector<8x1xf32>
    %42 = math.exp %41 : vector<8x1xf32>
    %43 = vector.broadcast %40 : vector<8x1xf32> to vector<8x8xf32>
    %44 = arith.subf %37, %43 : vector<8x8xf32>
    %45 = math.exp %44 : vector<8x8xf32>
    %46 = arith.mulf %42, %24#1 : vector<8x1xf32>
    %cst_20 = arith.constant dense<0.000000e+00> : vector<8xf32>
    %47 = vector.multi_reduction <add>, %45, %cst_20 [1] : vector<8x8xf32> to vector<8xf32>
    %48 = vector.shape_cast %47 : vector<8xf32> to vector<8x1xf32>
    %49 = arith.addf %46, %48 : vector<8x1xf32>
    %50 = vector.broadcast %42 : vector<8x1xf32> to vector<8x8xf32>
    %51 = arith.mulf %50, %24#2 : vector<8x8xf32>
    %52 = arith.truncf %45 : vector<8x8xf32> to vector<8x8xbf16>
    %cst_21 = arith.constant dense<0.000000e+00> : vector<8x8xf32>
    %53 = tpu.matmul %52, %30, %cst_21 {dimension_numbers = #tpu.dot_dimension_numbers<[1], [0], [0], [1], [0, 0, 1, 1], [], []>} : vector<8x8xbf16>, vector<8x8xbf16>, vector<8x8xf32> -> vector<8x8xf32>
    %54 = arith.addf %51, %53 : vector<8x8xf32>
    %55 = tpu.reciprocal %49 {approx = true} : vector<8x1xf32> -> vector<8x1xf32>
    %56 = vector.broadcast %55 : vector<8x1xf32> to vector<8x8xf32>
    %57 = arith.mulf %54, %56 : vector<8x8xf32>
    %58 = vector.extract_strided_slice %13 {offsets = [0, 8], sizes = [8, 8], strides = [1, 1]} : vector<8x32xbf16> to vector<8x8xbf16>
    %cst_22 = arith.constant 0xFF800000 : f32
    %59 = vector.broadcast %cst_22 : f32 to vector<8x1xf32>
    %cst_23 = arith.constant 0.000000e+00 : f32
    %60 = vector.broadcast %cst_23 : f32 to vector<8x1xf32>
    %cst_24 = arith.constant 0.000000e+00 : f32
    %61 = vector.broadcast %cst_24 : f32 to vector<8x8xf32>
    %c0_i32_25 = arith.constant 0 : i32
    %62 = arith.subi %arg1, %c0_i32_25 : i32
    %63 = arith.addi %c0_i32_25, %62 : i32
    %c1_i32_26 = arith.constant 1 : i32
    %64:3 = scf.for %arg15 = %c0_i32_25 to %63 step %c1_i32_26 iter_args(%arg16 = %59, %arg17 = %60, %arg18 = %61) -> (vector<8x1xf32>, vector<8x1xf32>, vector<8x8xf32>)  : i32 {
      %c1_132 = arith.constant 1 : index
      %242 = arith.index_cast %arg15 : i32 to index
      %c0_133 = arith.constant 0 : index
      %c0_134 = arith.constant 0 : index
      %243 = vector.load %arg13[%c1_132, %242, %c0_133, %c0_134] : memref<4x2x8x8xbf16, #tpu.memory_space<vmem>>, vector<1x1x8x8xbf16>
      %244 = vector.shape_cast %243 : vector<1x1x8x8xbf16> to vector<8x8xbf16>
      %c1_135 = arith.constant 1 : index
      %245 = arith.index_cast %arg15 : i32 to index
      %c0_136 = arith.constant 0 : index
      %c0_137 = arith.constant 0 : index
      %246 = vector.load %arg14[%c1_135, %245, %c0_136, %c0_137] : memref<4x2x8x8xbf16, #tpu.memory_space<vmem>>, vector<1x1x8x8xbf16>
      %247 = vector.shape_cast %246 : vector<1x1x8x8xbf16> to vector<8x8xbf16>
      %cst_138 = arith.constant dense<0.000000e+00> : vector<8x8xf32>
      %248 = tpu.matmul %58, %244, %cst_138 {dimension_numbers = #tpu.dot_dimension_numbers<[1], [1], [0], [0], [0, 0, 1, 0], [], []>} : vector<8x8xbf16>, vector<8x8xbf16>, vector<8x8xf32> -> vector<8x8xf32>
      %cst_139 = arith.constant dense<0xFF800000> : vector<8xf32>
      %249 = vector.multi_reduction <maximumf>, %248, %cst_139 [1] : vector<8x8xf32> to vector<8xf32>
      %250 = vector.shape_cast %249 : vector<8xf32> to vector<8x1xf32>
      %251 = arith.maximumf %arg16, %250 : vector<8x1xf32>
      %252 = arith.subf %arg16, %251 : vector<8x1xf32>
      %253 = math.exp %252 : vector<8x1xf32>
      %254 = vector.broadcast %251 : vector<8x1xf32> to vector<8x8xf32>
      %255 = arith.subf %248, %254 : vector<8x8xf32>
      %256 = math.exp %255 : vector<8x8xf32>
      %257 = arith.mulf %253, %arg17 : vector<8x1xf32>
      %cst_140 = arith.constant dense<0.000000e+00> : vector<8xf32>
      %258 = vector.multi_reduction <add>, %256, %cst_140 [1] : vector<8x8xf32> to vector<8xf32>
      %259 = vector.shape_cast %258 : vector<8xf32> to vector<8x1xf32>
      %260 = arith.addf %257, %259 : vector<8x1xf32>
      %261 = vector.broadcast %253 : vector<8x1xf32> to vector<8x8xf32>
      %262 = arith.mulf %261, %arg18 : vector<8x8xf32>
      %263 = arith.truncf %256 : vector<8x8xf32> to vector<8x8xbf16>
      %cst_141 = arith.constant dense<0.000000e+00> : vector<8x8xf32>
      %264 = tpu.matmul %263, %247, %cst_141 {dimension_numbers = #tpu.dot_dimension_numbers<[1], [0], [0], [1], [0, 0, 1, 1], [], []>} : vector<8x8xbf16>, vector<8x8xbf16>, vector<8x8xf32> -> vector<8x8xf32>
      %265 = arith.addf %262, %264 : vector<8x8xf32>
      scf.yield %251, %260, %265 : vector<8x1xf32>, vector<8x1xf32>, vector<8x8xf32>
    }
    %c1 = arith.constant 1 : index
    %65 = arith.index_cast %arg1 : i32 to index
    %c0_27 = arith.constant 0 : index
    %c0_28 = arith.constant 0 : index
    %66 = vector.load %arg13[%c1, %65, %c0_27, %c0_28] : memref<4x2x8x8xbf16, #tpu.memory_space<vmem>>, vector<1x1x8x8xbf16>
    %67 = vector.shape_cast %66 : vector<1x1x8x8xbf16> to vector<8x8xbf16>
    %c1_29 = arith.constant 1 : index
    %68 = arith.index_cast %arg1 : i32 to index
    %c0_30 = arith.constant 0 : index
    %c0_31 = arith.constant 0 : index
    %69 = vector.load %arg14[%c1_29, %68, %c0_30, %c0_31] : memref<4x2x8x8xbf16, #tpu.memory_space<vmem>>, vector<1x1x8x8xbf16>
    %70 = vector.shape_cast %69 : vector<1x1x8x8xbf16> to vector<8x8xbf16>
    %cst_32 = arith.constant dense<0.000000e+00> : vector<8x8xf32>
    %71 = tpu.matmul %58, %67, %cst_32 {dimension_numbers = #tpu.dot_dimension_numbers<[1], [1], [0], [0], [0, 0, 1, 0], [], []>} : vector<8x8xbf16>, vector<8x8xbf16>, vector<8x8xf32> -> vector<8x8xf32>
    %c8_i32_33 = arith.constant 8 : i32
    %72 = arith.muli %arg1, %c8_i32_33 : i32
    %73 = vector.broadcast %72 : i32 to vector<8x8xi32>
    %74 = arith.addi %73, %17 : vector<8x8xi32>
    %75 = arith.cmpi sle, %74, %16 : vector<8x8xi32>
    %cst_34 = arith.constant 0xFF800000 : f32
    %76 = vector.broadcast %cst_34 : f32 to vector<8x8xf32>
    %77 = arith.select %75, %71, %76 : vector<8x8xi1>, vector<8x8xf32>
    %cst_35 = arith.constant dense<0xFF800000> : vector<8xf32>
    %78 = vector.multi_reduction <maximumf>, %77, %cst_35 [1] : vector<8x8xf32> to vector<8xf32>
    %79 = vector.shape_cast %78 : vector<8xf32> to vector<8x1xf32>
    %80 = arith.maximumf %64#0, %79 : vector<8x1xf32>
    %81 = arith.subf %64#0, %80 : vector<8x1xf32>
    %82 = math.exp %81 : vector<8x1xf32>
    %83 = vector.broadcast %80 : vector<8x1xf32> to vector<8x8xf32>
    %84 = arith.subf %77, %83 : vector<8x8xf32>
    %85 = math.exp %84 : vector<8x8xf32>
    %86 = arith.mulf %82, %64#1 : vector<8x1xf32>
    %cst_36 = arith.constant dense<0.000000e+00> : vector<8xf32>
    %87 = vector.multi_reduction <add>, %85, %cst_36 [1] : vector<8x8xf32> to vector<8xf32>
    %88 = vector.shape_cast %87 : vector<8xf32> to vector<8x1xf32>
    %89 = arith.addf %86, %88 : vector<8x1xf32>
    %90 = vector.broadcast %82 : vector<8x1xf32> to vector<8x8xf32>
    %91 = arith.mulf %90, %64#2 : vector<8x8xf32>
    %92 = arith.truncf %85 : vector<8x8xf32> to vector<8x8xbf16>
    %cst_37 = arith.constant dense<0.000000e+00> : vector<8x8xf32>
    %93 = tpu.matmul %92, %70, %cst_37 {dimension_numbers = #tpu.dot_dimension_numbers<[1], [0], [0], [1], [0, 0, 1, 1], [], []>} : vector<8x8xbf16>, vector<8x8xbf16>, vector<8x8xf32> -> vector<8x8xf32>
    %94 = arith.addf %91, %93 : vector<8x8xf32>
    %95 = tpu.reciprocal %89 {approx = true} : vector<8x1xf32> -> vector<8x1xf32>
    %96 = vector.broadcast %95 : vector<8x1xf32> to vector<8x8xf32>
    %97 = arith.mulf %94, %96 : vector<8x8xf32>
    %98 = vector.extract_strided_slice %13 {offsets = [0, 16], sizes = [8, 8], strides = [1, 1]} : vector<8x32xbf16> to vector<8x8xbf16>
    %cst_38 = arith.constant 0xFF800000 : f32
    %99 = vector.broadcast %cst_38 : f32 to vector<8x1xf32>
    %cst_39 = arith.constant 0.000000e+00 : f32
    %100 = vector.broadcast %cst_39 : f32 to vector<8x1xf32>
    %cst_40 = arith.constant 0.000000e+00 : f32
    %101 = vector.broadcast %cst_40 : f32 to vector<8x8xf32>
    %c0_i32_41 = arith.constant 0 : i32
    %102 = arith.subi %arg1, %c0_i32_41 : i32
    %103 = arith.addi %c0_i32_41, %102 : i32
    %c1_i32_42 = arith.constant 1 : i32
    %104:3 = scf.for %arg15 = %c0_i32_41 to %103 step %c1_i32_42 iter_args(%arg16 = %99, %arg17 = %100, %arg18 = %101) -> (vector<8x1xf32>, vector<8x1xf32>, vector<8x8xf32>)  : i32 {
      %c2_132 = arith.constant 2 : index
      %242 = arith.index_cast %arg15 : i32 to index
      %c0_133 = arith.constant 0 : index
      %c0_134 = arith.constant 0 : index
      %243 = vector.load %arg13[%c2_132, %242, %c0_133, %c0_134] : memref<4x2x8x8xbf16, #tpu.memory_space<vmem>>, vector<1x1x8x8xbf16>
      %244 = vector.shape_cast %243 : vector<1x1x8x8xbf16> to vector<8x8xbf16>
      %c2_135 = arith.constant 2 : index
      %245 = arith.index_cast %arg15 : i32 to index
      %c0_136 = arith.constant 0 : index
      %c0_137 = arith.constant 0 : index
      %246 = vector.load %arg14[%c2_135, %245, %c0_136, %c0_137] : memref<4x2x8x8xbf16, #tpu.memory_space<vmem>>, vector<1x1x8x8xbf16>
      %247 = vector.shape_cast %246 : vector<1x1x8x8xbf16> to vector<8x8xbf16>
      %cst_138 = arith.constant dense<0.000000e+00> : vector<8x8xf32>
      %248 = tpu.matmul %98, %244, %cst_138 {dimension_numbers = #tpu.dot_dimension_numbers<[1], [1], [0], [0], [0, 0, 1, 0], [], []>} : vector<8x8xbf16>, vector<8x8xbf16>, vector<8x8xf32> -> vector<8x8xf32>
      %cst_139 = arith.constant dense<0xFF800000> : vector<8xf32>
      %249 = vector.multi_reduction <maximumf>, %248, %cst_139 [1] : vector<8x8xf32> to vector<8xf32>
      %250 = vector.shape_cast %249 : vector<8xf32> to vector<8x1xf32>
      %251 = arith.maximumf %arg16, %250 : vector<8x1xf32>
      %252 = arith.subf %arg16, %251 : vector<8x1xf32>
      %253 = math.exp %252 : vector<8x1xf32>
      %254 = vector.broadcast %251 : vector<8x1xf32> to vector<8x8xf32>
      %255 = arith.subf %248, %254 : vector<8x8xf32>
      %256 = math.exp %255 : vector<8x8xf32>
      %257 = arith.mulf %253, %arg17 : vector<8x1xf32>
      %cst_140 = arith.constant dense<0.000000e+00> : vector<8xf32>
      %258 = vector.multi_reduction <add>, %256, %cst_140 [1] : vector<8x8xf32> to vector<8xf32>
      %259 = vector.shape_cast %258 : vector<8xf32> to vector<8x1xf32>
      %260 = arith.addf %257, %259 : vector<8x1xf32>
      %261 = vector.broadcast %253 : vector<8x1xf32> to vector<8x8xf32>
      %262 = arith.mulf %261, %arg18 : vector<8x8xf32>
      %263 = arith.truncf %256 : vector<8x8xf32> to vector<8x8xbf16>
      %cst_141 = arith.constant dense<0.000000e+00> : vector<8x8xf32>
      %264 = tpu.matmul %263, %247, %cst_141 {dimension_numbers = #tpu.dot_dimension_numbers<[1], [0], [0], [1], [0, 0, 1, 1], [], []>} : vector<8x8xbf16>, vector<8x8xbf16>, vector<8x8xf32> -> vector<8x8xf32>
      %265 = arith.addf %262, %264 : vector<8x8xf32>
      scf.yield %251, %260, %265 : vector<8x1xf32>, vector<8x1xf32>, vector<8x8xf32>
    }
    %c2 = arith.constant 2 : index
    %105 = arith.index_cast %arg1 : i32 to index
    %c0_43 = arith.constant 0 : index
    %c0_44 = arith.constant 0 : index
    %106 = vector.load %arg13[%c2, %105, %c0_43, %c0_44] : memref<4x2x8x8xbf16, #tpu.memory_space<vmem>>, vector<1x1x8x8xbf16>
    %107 = vector.shape_cast %106 : vector<1x1x8x8xbf16> to vector<8x8xbf16>
    %c2_45 = arith.constant 2 : index
    %108 = arith.index_cast %arg1 : i32 to index
    %c0_46 = arith.constant 0 : index
    %c0_47 = arith.constant 0 : index
    %109 = vector.load %arg14[%c2_45, %108, %c0_46, %c0_47] : memref<4x2x8x8xbf16, #tpu.memory_space<vmem>>, vector<1x1x8x8xbf16>
    %110 = vector.shape_cast %109 : vector<1x1x8x8xbf16> to vector<8x8xbf16>
    %cst_48 = arith.constant dense<0.000000e+00> : vector<8x8xf32>
    %111 = tpu.matmul %98, %107, %cst_48 {dimension_numbers = #tpu.dot_dimension_numbers<[1], [1], [0], [0], [0, 0, 1, 0], [], []>} : vector<8x8xbf16>, vector<8x8xbf16>, vector<8x8xf32> -> vector<8x8xf32>
    %c8_i32_49 = arith.constant 8 : i32
    %112 = arith.muli %arg1, %c8_i32_49 : i32
    %113 = vector.broadcast %112 : i32 to vector<8x8xi32>
    %114 = arith.addi %113, %17 : vector<8x8xi32>
    %115 = arith.cmpi sle, %114, %16 : vector<8x8xi32>
    %cst_50 = arith.constant 0xFF800000 : f32
    %116 = vector.broadcast %cst_50 : f32 to vector<8x8xf32>
    %117 = arith.select %115, %111, %116 : vector<8x8xi1>, vector<8x8xf32>
    %cst_51 = arith.constant dense<0xFF800000> : vector<8xf32>
    %118 = vector.multi_reduction <maximumf>, %117, %cst_51 [1] : vector<8x8xf32> to vector<8xf32>
    %119 = vector.shape_cast %118 : vector<8xf32> to vector<8x1xf32>
    %120 = arith.maximumf %104#0, %119 : vector<8x1xf32>
    %121 = arith.subf %104#0, %120 : vector<8x1xf32>
    %122 = math.exp %121 : vector<8x1xf32>
    %123 = vector.broadcast %120 : vector<8x1xf32> to vector<8x8xf32>
    %124 = arith.subf %117, %123 : vector<8x8xf32>
    %125 = math.exp %124 : vector<8x8xf32>
    %126 = arith.mulf %122, %104#1 : vector<8x1xf32>
    %cst_52 = arith.constant dense<0.000000e+00> : vector<8xf32>
    %127 = vector.multi_reduction <add>, %125, %cst_52 [1] : vector<8x8xf32> to vector<8xf32>
    %128 = vector.shape_cast %127 : vector<8xf32> to vector<8x1xf32>
    %129 = arith.addf %126, %128 : vector<8x1xf32>
    %130 = vector.broadcast %122 : vector<8x1xf32> to vector<8x8xf32>
    %131 = arith.mulf %130, %104#2 : vector<8x8xf32>
    %132 = arith.truncf %125 : vector<8x8xf32> to vector<8x8xbf16>
    %cst_53 = arith.constant dense<0.000000e+00> : vector<8x8xf32>
    %133 = tpu.matmul %132, %110, %cst_53 {dimension_numbers = #tpu.dot_dimension_numbers<[1], [0], [0], [1], [0, 0, 1, 1], [], []>} : vector<8x8xbf16>, vector<8x8xbf16>, vector<8x8xf32> -> vector<8x8xf32>
    %134 = arith.addf %131, %133 : vector<8x8xf32>
    %135 = tpu.reciprocal %129 {approx = true} : vector<8x1xf32> -> vector<8x1xf32>
    %136 = vector.broadcast %135 : vector<8x1xf32> to vector<8x8xf32>
    %137 = arith.mulf %134, %136 : vector<8x8xf32>
    %138 = vector.extract_strided_slice %13 {offsets = [0, 24], sizes = [8, 8], strides = [1, 1]} : vector<8x32xbf16> to vector<8x8xbf16>
    %cst_54 = arith.constant 0xFF800000 : f32
    %139 = vector.broadcast %cst_54 : f32 to vector<8x1xf32>
    %cst_55 = arith.constant 0.000000e+00 : f32
    %140 = vector.broadcast %cst_55 : f32 to vector<8x1xf32>
    %cst_56 = arith.constant 0.000000e+00 : f32
    %141 = vector.broadcast %cst_56 : f32 to vector<8x8xf32>
    %c0_i32_57 = arith.constant 0 : i32
    %142 = arith.subi %arg1, %c0_i32_57 : i32
    %143 = arith.addi %c0_i32_57, %142 : i32
    %c1_i32_58 = arith.constant 1 : i32
    %144:3 = scf.for %arg15 = %c0_i32_57 to %143 step %c1_i32_58 iter_args(%arg16 = %139, %arg17 = %140, %arg18 = %141) -> (vector<8x1xf32>, vector<8x1xf32>, vector<8x8xf32>)  : i32 {
      %c3_132 = arith.constant 3 : index
      %242 = arith.index_cast %arg15 : i32 to index
      %c0_133 = arith.constant 0 : index
      %c0_134 = arith.constant 0 : index
      %243 = vector.load %arg13[%c3_132, %242, %c0_133, %c0_134] : memref<4x2x8x8xbf16, #tpu.memory_space<vmem>>, vector<1x1x8x8xbf16>
      %244 = vector.shape_cast %243 : vector<1x1x8x8xbf16> to vector<8x8xbf16>
      %c3_135 = arith.constant 3 : index
      %245 = arith.index_cast %arg15 : i32 to index
      %c0_136 = arith.constant 0 : index
      %c0_137 = arith.constant 0 : index
      %246 = vector.load %arg14[%c3_135, %245, %c0_136, %c0_137] : memref<4x2x8x8xbf16, #tpu.memory_space<vmem>>, vector<1x1x8x8xbf16>
      %247 = vector.shape_cast %246 : vector<1x1x8x8xbf16> to vector<8x8xbf16>
      %cst_138 = arith.constant dense<0.000000e+00> : vector<8x8xf32>
      %248 = tpu.matmul %138, %244, %cst_138 {dimension_numbers = #tpu.dot_dimension_numbers<[1], [1], [0], [0], [0, 0, 1, 0], [], []>} : vector<8x8xbf16>, vector<8x8xbf16>, vector<8x8xf32> -> vector<8x8xf32>
      %cst_139 = arith.constant dense<0xFF800000> : vector<8xf32>
      %249 = vector.multi_reduction <maximumf>, %248, %cst_139 [1] : vector<8x8xf32> to vector<8xf32>
      %250 = vector.shape_cast %249 : vector<8xf32> to vector<8x1xf32>
      %251 = arith.maximumf %arg16, %250 : vector<8x1xf32>
      %252 = arith.subf %arg16, %251 : vector<8x1xf32>
      %253 = math.exp %252 : vector<8x1xf32>
      %254 = vector.broadcast %251 : vector<8x1xf32> to vector<8x8xf32>
      %255 = arith.subf %248, %254 : vector<8x8xf32>
      %256 = math.exp %255 : vector<8x8xf32>
      %257 = arith.mulf %253, %arg17 : vector<8x1xf32>
      %cst_140 = arith.constant dense<0.000000e+00> : vector<8xf32>
      %258 = vector.multi_reduction <add>, %256, %cst_140 [1] : vector<8x8xf32> to vector<8xf32>
      %259 = vector.shape_cast %258 : vector<8xf32> to vector<8x1xf32>
      %260 = arith.addf %257, %259 : vector<8x1xf32>
      %261 = vector.broadcast %253 : vector<8x1xf32> to vector<8x8xf32>
      %262 = arith.mulf %261, %arg18 : vector<8x8xf32>
      %263 = arith.truncf %256 : vector<8x8xf32> to vector<8x8xbf16>
      %cst_141 = arith.constant dense<0.000000e+00> : vector<8x8xf32>
      %264 = tpu.matmul %263, %247, %cst_141 {dimension_numbers = #tpu.dot_dimension_numbers<[1], [0], [0], [1], [0, 0, 1, 1], [], []>} : vector<8x8xbf16>, vector<8x8xbf16>, vector<8x8xf32> -> vector<8x8xf32>
      %265 = arith.addf %262, %264 : vector<8x8xf32>
      scf.yield %251, %260, %265 : vector<8x1xf32>, vector<8x1xf32>, vector<8x8xf32>
    }
    %c3 = arith.constant 3 : index
    %145 = arith.index_cast %arg1 : i32 to index
    %c0_59 = arith.constant 0 : index
    %c0_60 = arith.constant 0 : index
    %146 = vector.load %arg13[%c3, %145, %c0_59, %c0_60] : memref<4x2x8x8xbf16, #tpu.memory_space<vmem>>, vector<1x1x8x8xbf16>
    %147 = vector.shape_cast %146 : vector<1x1x8x8xbf16> to vector<8x8xbf16>
    %c3_61 = arith.constant 3 : index
    %148 = arith.index_cast %arg1 : i32 to index
    %c0_62 = arith.constant 0 : index
    %c0_63 = arith.constant 0 : index
    %149 = vector.load %arg14[%c3_61, %148, %c0_62, %c0_63] : memref<4x2x8x8xbf16, #tpu.memory_space<vmem>>, vector<1x1x8x8xbf16>
    %150 = vector.shape_cast %149 : vector<1x1x8x8xbf16> to vector<8x8xbf16>
    %cst_64 = arith.constant dense<0.000000e+00> : vector<8x8xf32>
    %151 = tpu.matmul %138, %147, %cst_64 {dimension_numbers = #tpu.dot_dimension_numbers<[1], [1], [0], [0], [0, 0, 1, 0], [], []>} : vector<8x8xbf16>, vector<8x8xbf16>, vector<8x8xf32> -> vector<8x8xf32>
    %c8_i32_65 = arith.constant 8 : i32
    %152 = arith.muli %arg1, %c8_i32_65 : i32
    %153 = vector.broadcast %152 : i32 to vector<8x8xi32>
    %154 = arith.addi %153, %17 : vector<8x8xi32>
    %155 = arith.cmpi sle, %154, %16 : vector<8x8xi32>
    %cst_66 = arith.constant 0xFF800000 : f32
    %156 = vector.broadcast %cst_66 : f32 to vector<8x8xf32>
    %157 = arith.select %155, %151, %156 : vector<8x8xi1>, vector<8x8xf32>
    %cst_67 = arith.constant dense<0xFF800000> : vector<8xf32>
    %158 = vector.multi_reduction <maximumf>, %157, %cst_67 [1] : vector<8x8xf32> to vector<8xf32>
    %159 = vector.shape_cast %158 : vector<8xf32> to vector<8x1xf32>
    %160 = arith.maximumf %144#0, %159 : vector<8x1xf32>
    %161 = arith.subf %144#0, %160 : vector<8x1xf32>
    %162 = math.exp %161 : vector<8x1xf32>
    %163 = vector.broadcast %160 : vector<8x1xf32> to vector<8x8xf32>
    %164 = arith.subf %157, %163 : vector<8x8xf32>
    %165 = math.exp %164 : vector<8x8xf32>
    %166 = arith.mulf %162, %144#1 : vector<8x1xf32>
    %cst_68 = arith.constant dense<0.000000e+00> : vector<8xf32>
    %167 = vector.multi_reduction <add>, %165, %cst_68 [1] : vector<8x8xf32> to vector<8xf32>
    %168 = vector.shape_cast %167 : vector<8xf32> to vector<8x1xf32>
    %169 = arith.addf %166, %168 : vector<8x1xf32>
    %170 = vector.broadcast %162 : vector<8x1xf32> to vector<8x8xf32>
    %171 = arith.mulf %170, %144#2 : vector<8x8xf32>
    %172 = arith.truncf %165 : vector<8x8xf32> to vector<8x8xbf16>
    %cst_69 = arith.constant dense<0.000000e+00> : vector<8x8xf32>
    %173 = tpu.matmul %172, %150, %cst_69 {dimension_numbers = #tpu.dot_dimension_numbers<[1], [0], [0], [1], [0, 0, 1, 1], [], []>} : vector<8x8xbf16>, vector<8x8xbf16>, vector<8x8xf32> -> vector<8x8xf32>
    %174 = arith.addf %171, %173 : vector<8x8xf32>
    %175 = tpu.reciprocal %169 {approx = true} : vector<8x1xf32> -> vector<8x1xf32>
    %176 = vector.broadcast %175 : vector<8x1xf32> to vector<8x8xf32>
    %177 = arith.mulf %174, %176 : vector<8x8xf32>
    %178 = tpu.concatenate %57, %97, %137, %177 in 1 : vector<8x8xf32>, vector<8x8xf32>, vector<8x8xf32>, vector<8x8xf32> -> vector<8x32xf32>
    %179 = arith.truncf %178 : vector<8x32xf32> to vector<8x32xbf16>
    %c0_70 = arith.constant 0 : index
    %c0_71 = arith.constant 0 : index
    %180 = vector.load %arg8[%c0_70, %c0_71] : memref<32x32xbf16, #tpu.memory_space<vmem>>, vector<32x32xbf16>
    %cst_72 = arith.constant dense<0.000000e+00> : vector<8x32xf32>
    %181 = tpu.matmul %179, %180, %cst_72 {dimension_numbers = #tpu.dot_dimension_numbers<[1], [0], [0], [1], [0, 0, 1, 1], [], []>} : vector<8x32xbf16>, vector<32x32xbf16>, vector<8x32xf32> -> vector<8x32xf32>
    %182 = arith.addf %181, %7 : vector<8x32xf32>
    %c0_73 = arith.constant 0 : index
    %c0_74 = arith.constant 0 : index
    %c0_75 = arith.constant 0 : index
    %183 = vector.load %arg9[%c0_73, %c0_74, %c0_75] : memref<1x8x32xf32, #tpu.memory_space<vmem>>, vector<1x8x32xf32>
    %184 = vector.shape_cast %183 : vector<1x8x32xf32> to vector<8x32xf32>
    %185 = vector.shape_cast %182 : vector<8x32xf32> to vector<1x8x32xf32>
    tpu.vector_store %arg9[%c0_73, %c0_74, %c0_75], %185 {strides = array<i32>} : memref<1x8x32xf32, #tpu.memory_space<vmem>>, vector<1x8x32xf32>,
    %c0_76 = arith.constant 0 : index
    %186 = arith.index_cast %arg1 : i32 to index
    %c0_77 = arith.constant 0 : index
    %c0_78 = arith.constant 0 : index
    %187 = vector.load %arg13[%c0_76, %186, %c0_77, %c0_78] : memref<4x2x8x8xbf16, #tpu.memory_space<vmem>>, vector<1x1x8x8xbf16>
    %188 = vector.shape_cast %187 : vector<1x1x8x8xbf16> to vector<8x8xbf16>
    %189 = arith.extf %188 : vector<8x8xbf16> to vector<8x8xf32>
    %c0_79 = arith.constant 0 : index
    %c0_80 = arith.constant 0 : index
    %c0_81 = arith.constant 0 : index
    %c0_82 = arith.constant 0 : index
    %190 = vector.load %arg10[%c0_79, %c0_80, %c0_81, %c0_82] : memref<1x4x8x8xf32, #tpu.memory_space<vmem>>, vector<1x1x8x8xf32>
    %191 = vector.shape_cast %190 : vector<1x1x8x8xf32> to vector<8x8xf32>
    %192 = vector.shape_cast %189 : vector<8x8xf32> to vector<1x1x8x8xf32>
    tpu.vector_store %arg10[%c0_79, %c0_80, %c0_81, %c0_82], %192 {strides = array<i32>} : memref<1x4x8x8xf32, #tpu.memory_space<vmem>>, vector<1x1x8x8xf32>,
    %c0_83 = arith.constant 0 : index
    %193 = arith.index_cast %arg1 : i32 to index
    %c0_84 = arith.constant 0 : index
    %c0_85 = arith.constant 0 : index
    %194 = vector.load %arg14[%c0_83, %193, %c0_84, %c0_85] : memref<4x2x8x8xbf16, #tpu.memory_space<vmem>>, vector<1x1x8x8xbf16>
    %195 = vector.shape_cast %194 : vector<1x1x8x8xbf16> to vector<8x8xbf16>
    %196 = arith.extf %195 : vector<8x8xbf16> to vector<8x8xf32>
    %c0_86 = arith.constant 0 : index
    %c0_87 = arith.constant 0 : index
    %c0_88 = arith.constant 0 : index
    %c0_89 = arith.constant 0 : index
    %197 = vector.load %arg11[%c0_86, %c0_87, %c0_88, %c0_89] : memref<1x4x8x8xf32, #tpu.memory_space<vmem>>, vector<1x1x8x8xf32>
    %198 = vector.shape_cast %197 : vector<1x1x8x8xf32> to vector<8x8xf32>
    %199 = vector.shape_cast %196 : vector<8x8xf32> to vector<1x1x8x8xf32>
    tpu.vector_store %arg11[%c0_86, %c0_87, %c0_88, %c0_89], %199 {strides = array<i32>} : memref<1x4x8x8xf32, #tpu.memory_space<vmem>>, vector<1x1x8x8xf32>,
    %c1_90 = arith.constant 1 : index
    %200 = arith.index_cast %arg1 : i32 to index
    %c0_91 = arith.constant 0 : index
    %c0_92 = arith.constant 0 : index
    %201 = vector.load %arg13[%c1_90, %200, %c0_91, %c0_92] : memref<4x2x8x8xbf16, #tpu.memory_space<vmem>>, vector<1x1x8x8xbf16>
    %202 = vector.shape_cast %201 : vector<1x1x8x8xbf16> to vector<8x8xbf16>
    %203 = arith.extf %202 : vector<8x8xbf16> to vector<8x8xf32>
    %c0_93 = arith.constant 0 : index
    %c1_94 = arith.constant 1 : index
    %c0_95 = arith.constant 0 : index
    %c0_96 = arith.constant 0 : index
    %204 = vector.load %arg10[%c0_93, %c1_94, %c0_95, %c0_96] : memref<1x4x8x8xf32, #tpu.memory_space<vmem>>, vector<1x1x8x8xf32>
    %205 = vector.shape_cast %204 : vector<1x1x8x8xf32> to vector<8x8xf32>
    %206 = vector.shape_cast %203 : vector<8x8xf32> to vector<1x1x8x8xf32>
    tpu.vector_store %arg10[%c0_93, %c1_94, %c0_95, %c0_96], %206 {strides = array<i32>} : memref<1x4x8x8xf32, #tpu.memory_space<vmem>>, vector<1x1x8x8xf32>,
    %c1_97 = arith.constant 1 : index
    %207 = arith.index_cast %arg1 : i32 to index
    %c0_98 = arith.constant 0 : index
    %c0_99 = arith.constant 0 : index
    %208 = vector.load %arg14[%c1_97, %207, %c0_98, %c0_99] : memref<4x2x8x8xbf16, #tpu.memory_space<vmem>>, vector<1x1x8x8xbf16>
    %209 = vector.shape_cast %208 : vector<1x1x8x8xbf16> to vector<8x8xbf16>
    %210 = arith.extf %209 : vector<8x8xbf16> to vector<8x8xf32>
    %c0_100 = arith.constant 0 : index
    %c1_101 = arith.constant 1 : index
    %c0_102 = arith.constant 0 : index
    %c0_103 = arith.constant 0 : index
    %211 = vector.load %arg11[%c0_100, %c1_101, %c0_102, %c0_103] : memref<1x4x8x8xf32, #tpu.memory_space<vmem>>, vector<1x1x8x8xf32>
    %212 = vector.shape_cast %211 : vector<1x1x8x8xf32> to vector<8x8xf32>
    %213 = vector.shape_cast %210 : vector<8x8xf32> to vector<1x1x8x8xf32>
    tpu.vector_store %arg11[%c0_100, %c1_101, %c0_102, %c0_103], %213 {strides = array<i32>} : memref<1x4x8x8xf32, #tpu.memory_space<vmem>>, vector<1x1x8x8xf32>,
    %c2_104 = arith.constant 2 : index
    %214 = arith.index_cast %arg1 : i32 to index
    %c0_105 = arith.constant 0 : index
    %c0_106 = arith.constant 0 : index
    %215 = vector.load %arg13[%c2_104, %214, %c0_105, %c0_106] : memref<4x2x8x8xbf16, #tpu.memory_space<vmem>>, vector<1x1x8x8xbf16>
    %216 = vector.shape_cast %215 : vector<1x1x8x8xbf16> to vector<8x8xbf16>
    %217 = arith.extf %216 : vector<8x8xbf16> to vector<8x8xf32>
    %c0_107 = arith.constant 0 : index
    %c2_108 = arith.constant 2 : index
    %c0_109 = arith.constant 0 : index
    %c0_110 = arith.constant 0 : index
    %218 = vector.load %arg10[%c0_107, %c2_108, %c0_109, %c0_110] : memref<1x4x8x8xf32, #tpu.memory_space<vmem>>, vector<1x1x8x8xf32>
    %219 = vector.shape_cast %218 : vector<1x1x8x8xf32> to vector<8x8xf32>
    %220 = vector.shape_cast %217 : vector<8x8xf32> to vector<1x1x8x8xf32>
    tpu.vector_store %arg10[%c0_107, %c2_108, %c0_109, %c0_110], %220 {strides = array<i32>} : memref<1x4x8x8xf32, #tpu.memory_space<vmem>>, vector<1x1x8x8xf32>,
    %c2_111 = arith.constant 2 : index
    %221 = arith.index_cast %arg1 : i32 to index
    %c0_112 = arith.constant 0 : index
    %c0_113 = arith.constant 0 : index
    %222 = vector.load %arg14[%c2_111, %221, %c0_112, %c0_113] : memref<4x2x8x8xbf16, #tpu.memory_space<vmem>>, vector<1x1x8x8xbf16>
    %223 = vector.shape_cast %222 : vector<1x1x8x8xbf16> to vector<8x8xbf16>
    %224 = arith.extf %223 : vector<8x8xbf16> to vector<8x8xf32>
    %c0_114 = arith.constant 0 : index
    %c2_115 = arith.constant 2 : index
    %c0_116 = arith.constant 0 : index
    %c0_117 = arith.constant 0 : index
    %225 = vector.load %arg11[%c0_114, %c2_115, %c0_116, %c0_117] : memref<1x4x8x8xf32, #tpu.memory_space<vmem>>, vector<1x1x8x8xf32>
    %226 = vector.shape_cast %225 : vector<1x1x8x8xf32> to vector<8x8xf32>
    %227 = vector.shape_cast %224 : vector<8x8xf32> to vector<1x1x8x8xf32>
    tpu.vector_store %arg11[%c0_114, %c2_115, %c0_116, %c0_117], %227 {strides = array<i32>} : memref<1x4x8x8xf32, #tpu.memory_space<vmem>>, vector<1x1x8x8xf32>,
    %c3_118 = arith.constant 3 : index
    %228 = arith.index_cast %arg1 : i32 to index
    %c0_119 = arith.constant 0 : index
    %c0_120 = arith.constant 0 : index
    %229 = vector.load %arg13[%c3_118, %228, %c0_119, %c0_120] : memref<4x2x8x8xbf16, #tpu.memory_space<vmem>>, vector<1x1x8x8xbf16>
    %230 = vector.shape_cast %229 : vector<1x1x8x8xbf16> to vector<8x8xbf16>
    %231 = arith.extf %230 : vector<8x8xbf16> to vector<8x8xf32>
    %c0_121 = arith.constant 0 : index
    %c3_122 = arith.constant 3 : index
    %c0_123 = arith.constant 0 : index
    %c0_124 = arith.constant 0 : index
    %232 = vector.load %arg10[%c0_121, %c3_122, %c0_123, %c0_124] : memref<1x4x8x8xf32, #tpu.memory_space<vmem>>, vector<1x1x8x8xf32>
    %233 = vector.shape_cast %232 : vector<1x1x8x8xf32> to vector<8x8xf32>
    %234 = vector.shape_cast %231 : vector<8x8xf32> to vector<1x1x8x8xf32>
    tpu.vector_store %arg10[%c0_121, %c3_122, %c0_123, %c0_124], %234 {strides = array<i32>} : memref<1x4x8x8xf32, #tpu.memory_space<vmem>>, vector<1x1x8x8xf32>,
    %c3_125 = arith.constant 3 : index
    %235 = arith.index_cast %arg1 : i32 to index
    %c0_126 = arith.constant 0 : index
    %c0_127 = arith.constant 0 : index
    %236 = vector.load %arg14[%c3_125, %235, %c0_126, %c0_127] : memref<4x2x8x8xbf16, #tpu.memory_space<vmem>>, vector<1x1x8x8xbf16>
    %237 = vector.shape_cast %236 : vector<1x1x8x8xbf16> to vector<8x8xbf16>
    %238 = arith.extf %237 : vector<8x8xbf16> to vector<8x8xf32>
    %c0_128 = arith.constant 0 : index
    %c3_129 = arith.constant 3 : index
    %c0_130 = arith.constant 0 : index
    %c0_131 = arith.constant 0 : index
    %239 = vector.load %arg11[%c0_128, %c3_129, %c0_130, %c0_131] : memref<1x4x8x8xf32, #tpu.memory_space<vmem>>, vector<1x1x8x8xf32>
    %240 = vector.shape_cast %239 : vector<1x1x8x8xf32> to vector<8x8xf32>
    %241 = vector.shape_cast %238 : vector<8x8xf32> to vector<1x1x8x8xf32>
    tpu.vector_store %arg11[%c0_128, %c3_129, %c0_130, %c0_131], %241 {strides = array<i32>} : memref<1x4x8x8xf32, #tpu.memory_space<vmem>>, vector<1x1x8x8xf32>,
    return
  }
  func.func @transform_0(%arg0: i32, %arg1: i32) -> (i32, i32, i32) {
    %c0_i32 = arith.constant 0 : i32
    %c0_i32_0 = arith.constant 0 : i32
    %c0_i32_1 = arith.constant 0 : i32
    return %arg0, %c0_i32, %c0_i32_0 : i32, i32, i32
  }
  func.func @transform_1(%arg0: i32, %arg1: i32) -> (i32, i32) {
    %c0_i32 = arith.constant 0 : i32
    %c0_i32_0 = arith.constant 0 : i32
    %c0_i32_1 = arith.constant 0 : i32
    return %c0_i32, %c0_i32_0 : i32, i32
  }
  func.func @transform_2(%arg0: i32, %arg1: i32) -> (i32, i32) {
    %c0_i32 = arith.constant 0 : i32
    %c0_i32_0 = arith.constant 0 : i32
    %c0_i32_1 = arith.constant 0 : i32
    return %c0_i32, %c0_i32_0 : i32, i32
  }
  func.func @transform_3(%arg0: i32, %arg1: i32) -> (i32, i32) {
    %c0_i32 = arith.constant 0 : i32
    %c0_i32_0 = arith.constant 0 : i32
    %c0_i32_1 = arith.constant 0 : i32
    return %c0_i32, %c0_i32_0 : i32, i32
  }
  func.func @transform_4(%arg0: i32, %arg1: i32) -> (i32, i32) {
    %c0_i32 = arith.constant 0 : i32
    %c0_i32_0 = arith.constant 0 : i32
    %c0_i32_1 = arith.constant 0 : i32
    return %c0_i32, %c0_i32_0 : i32, i32
  }
  func.func @transform_5(%arg0: i32, %arg1: i32) -> (i32, i32) {
    %c0_i32 = arith.constant 0 : i32
    %c0_i32_0 = arith.constant 0 : i32
    %c0_i32_1 = arith.constant 0 : i32
    return %c0_i32, %c0_i32_0 : i32, i32
  }
  func.func @transform_6(%arg0: i32, %arg1: i32) -> (i32, i32) {
    %c0_i32 = arith.constant 0 : i32
    %c0_i32_0 = arith.constant 0 : i32
    %c0_i32_1 = arith.constant 0 : i32
    return %c0_i32, %c0_i32_0 : i32, i32
  }
  func.func @transform_7(%arg0: i32, %arg1: i32) -> (i32, i32, i32) {
    %c0_i32 = arith.constant 0 : i32
    %c0_i32_0 = arith.constant 0 : i32
    return %arg0, %arg1, %c0_i32 : i32, i32, i32
  }
  func.func @transform_8(%arg0: i32, %arg1: i32) -> (i32, i32, i32, i32) {
    %c0_i32 = arith.constant 0 : i32
    %c0_i32_0 = arith.constant 0 : i32
    %c0_i32_1 = arith.constant 0 : i32
    return %arg0, %c0_i32, %arg1, %c0_i32_0 : i32, i32, i32, i32
  }
  func.func @transform_9(%arg0: i32, %arg1: i32) -> (i32, i32, i32, i32) {
    %c0_i32 = arith.constant 0 : i32
    %c0_i32_0 = arith.constant 0 : i32
    %c0_i32_1 = arith.constant 0 : i32
    return %arg0, %c0_i32, %arg1, %c0_i32_0 : i32, i32, i32, i32
  }
}

</mosaic_0001>

<bundles_post_ra>
// kernel: tpu_custom_call.1
= control target key start
LH: loop header
LB: loop body
LE: loop exit
PB: predicated region body
PF: predicated region fallthrough
CT: control target
= control target key end

     0   :  { %s3530_s0 = inlined_call_operand.hbm [shape: f32[2,16,32], index: 0, kind: input, shape index: {}]   ;;  %s3531_s1 = inlined_call_operand.hbm [shape: f32[1,32], index: 1, kind: input, shape index: {}]   ;;  %s3532_s2 = inlined_call_operand.vmem [shape: f32[1,32], index: 2, kind: input, shape index: {}]   ;;  %s3533_s3 = inlined_call_operand.hbm [shape: bf16[32,32], index: 3, kind: input, shape index: {}]   ;;  %s3534_s4 = inlined_call_operand.hbm [shape: bf16[32,32], index: 4, kind: input, shape index: {}]   ;;  %s3535_s5 = inlined_call_operand.hbm [shape: bf16[32,32], index: 5, kind: input, shape index: {}]   ;;  %s3536_s6 = inlined_call_operand.hbm [shape: bf16[32,32], index: 6, kind: input, shape index: {}]   ;;  %s3537_s7 = inlined_call_operand.hbm [shape: f32[2,16,32], index: 7, kind: output, shape index: {0}]   ;;  %s3538_s8 = inlined_call_operand.vmem [shape: f32[2,4,16,8], index: 8, kind: output, shape index: {1}]   ;;  %s3539_s9 = inlined_call_operand.vmem [shape: f32[2,4,16,8], index: 9, kind: output, shape index: {2}]  }
   0x1   :  { %3544 = sst [smem:[#allocation28_spill]] %s3531_s1 }
   0x2   :  { %3545 = sst [smem:[#allocation29_spill]] %s3532_s2 }
   0x3   :  { %3546 = sst [smem:[#allocation30_spill]] %s3533_s3 }
   0x4   :  { %3547 = sst [smem:[#allocation31_spill]] %s3534_s4 }
   0x5   :  { %3548 = sst [smem:[#allocation32_spill]] %s3535_s5 }
   0x6   :  { %3549 = sst [smem:[#allocation33_spill]] %s3536_s6 }
   0x7   :  { %3550 = sst [smem:[#allocation34_spill]] %s3537_s7 }
   0x8   :  { %3551 = sst [smem:[#allocation35_spill]] %s3538_s8 }
   0x9   :  { %3552 = sst [smem:[#allocation36_spill]] %s3539_s9 }
   0xa   :  { %15 = vsyncpa [#allocation6], 0 }
   0xb   :  { %17 = vsyncpa [#allocation6 + $0x1], 0 }
   0xc   :  { %18 = vsyncpa [#allocation9], 0 }
   0xd   :  { %19 = vsyncpa [#allocation12], 0 }
   0xe   :  { %20 = vsyncpa [#allocation15], 0 }
   0xf   :  { %21 = vsyncpa [#allocation7], 0 }
  0x10   :  { %23 = vsyncpa [#allocation7 + $0x1], 0  ;;  %s2994_s30 = smov 0   ;;  %s2996_s10 = smov 0  }
  0x11   :  { %s2998_s11 = smov 0   ;;  %s3000_s12 = smov 0  }
  0x12   :  { %s3002_s13 = smov 0   ;;  %s3004_s14 = smov 0  }
  0x13   :  { %s3006_s15 = smov 0   ;;  %s3008_s16 = smov 0  }
  0x14   :  { %s3010_s17 = smov 0   ;;  %s3012_s18 = smov 0  }
  0x15   :  { %s3014_s19 = smov 0  }
  0x16 LB: > { %3553 = sst [smem:[#allocation24_spill]] %s2792_s15  ;;  %s1799_s20 = sadd.s32 4294967295, %s2808_s19   ;;  %s2808_s19 = sphi %s3014_s19, %s29_s19   ;;  %s2804_s18 = sphi %s3012_s18, %s3609_s18   ;;  %s2800_s17 = sphi %s3010_s17, %s3608_s17   ;;  %s2796_s16 = sphi %s3008_s16, %s3607_s16   ;;  %s2792_s15 = sphi %s3006_s15, %s3606_s15   ;;  %s2788_s14 = sphi %s3004_s14, %s3605_s14   ;;  %s2784_s13 = sphi %s3002_s13, %s3604_s13   ;;  %s2780_s12 = sphi %s3000_s12, %s3603_s12   ;;  %s2776_s11 = sphi %s2998_s11, %s3602_s11   ;;  %s2772_s10 = sphi %s2996_s10, %s3601_s10   ;;  %s2768_s30 = sphi %s2994_s30, %s3600_s30  }
  0x17   : > { %3554 = sst [smem:[#allocation25_spill]] %s2796_s16  ;;  %p1801_p0 = scmp.ge.s32.totalorder %s2808_s19, 1 }
  0x18   : > { %p3051_p1 = scmp.eq.s32.totalorder %s1799_s20, 0  ;;  %p3055_p2 = scmp.eq.s32.totalorder %s1799_s20, 3 }
  0x19   : > { %p282_p3 = scmp.lt.s32.totalorder %s2808_s19, 5  ;;  %s3557_s1 = sld [smem:[#allocation28_spill]] }
  0x1a   : > { %s2922_s27 = smov [#allocation8]   ;;  %s3560_s4 = sld [smem:[#allocation31_spill]] }
  0x1b   : > { %p3063_p4 = pnand %p1801_p0, %p282_p3  ;;  %s296_s28 = sshll.u32 %s2922_s27, 4  ;;  %s297_s28 = int_to_ptr.vmem [resolvable:$true] %s296_s28 }
  0x1c   : > { %s2923_s24 = smov [#allocation11]   ;;  %s3561_s3 = sld [smem:[#allocation30_spill]] }
  0x1d   : > { %p1964_p5 = pneg %p3063_p4  ;;  %s2924_s16 = smov 64  }
  0x1e   : > { %s2925_s2 = smov 4   ;;  %s2926_s9 = smov [#allocation10]  }
  0x1f   : > { %s294_s25 = sshll.u32 %s3557_s1, 4  ;;  %p3071_p6 = pnand %p1964_p5, %p3051_p1  ;;  %s295_s25 = int_to_ptr.hbm [resolvable:$true] %s294_s25 }
  0x20   : > { %s322_s23 = sshll.u32 %s3560_s4, 4  ;;  %s324_s1 = sshll.u32 %s2923_s24, 4  ;;  %s323_s23 = int_to_ptr.hbm [resolvable:$true] %s322_s23  ;;  %s325_s1 = int_to_ptr.vmem [resolvable:$true] %s324_s1 }
  0x21   : > { %1967 = dma.hbm_to_vmem [thread:$0]  (!%p3071_p6), %s295_s25, 16, %s297_s28, [#allocation9]  }
  0x22   : > { %s308_s7 = sshll.u32 %s3561_s3, 4  ;;  %s310_s20 = sshll.u32 %s2926_s9, 4  ;;  %s309_s7 = int_to_ptr.hbm [resolvable:$true] %s308_s7  ;;  %s311_s20 = int_to_ptr.vmem [resolvable:$true] %s310_s20 }
  0x23   : > { %1973 = dma.hbm_to_vmem [thread:$0]  (!%p3071_p6), %s323_s23, 256, %s325_s1, [#allocation12], %s2924_s16, %s2924_s16, %s2925_s2  }
  0x24   : > { %s3562_s5 = sld [smem:[#allocation32_spill]]  ;;  %s2927_s23 = smov [#allocation13]  }
  0x25   : > { %1970 = dma.hbm_to_vmem [thread:$0]  (!%p3071_p6), %s309_s7, 256, %s311_s20, [#allocation9], %s2924_s16, %s2924_s16, %s2925_s2  }
  0x26   : > { %s3563_s6 = sld [smem:[#allocation33_spill]]  ;;  %s338_s24 = sshll.u32 %s2927_s23, 4  ;;  %s339_s24 = int_to_ptr.vmem [resolvable:$true] %s338_s24 }
  0x27   : > { %s2928_s4 = smov [#allocation14]   ;;  %s1800_s7 = sadd.s32 4294967294, %s2808_s19  }
  0x28   : > { %s352_s15 = sshll.u32 %s2928_s4, 4  ;;  %s38_s27 = sadd.s32 1, %s2800_s17  ;;  %s353_s15 = int_to_ptr.vmem [resolvable:$true] %s352_s15 }
  0x29   : > { %p39_p7 = scmp.ge.s32.totalorder %s38_s27, 2  ;;  %s41_s9 = sadd.s32 1, %s2804_s18 }
  0x2a   : > { %s336_s25 = sshll.u32 %s3562_s5, 4  ;;  %s48_s20 = sadd.s32 1, %s2788_s14  ;;  %s337_s25 = int_to_ptr.hbm [resolvable:$true] %s336_s25 }
  0x2b   : > { %1976 = dma.hbm_to_vmem [thread:$0]  (!%p3071_p6), %s337_s25, 256, %s339_s24, [#allocation12], %s2924_s16, %s2924_s16, %s2925_s2  }
  0x2c   : > { %s350_s1 = sshll.u32 %s3563_s6, 4  ;;  %p55_p8 = scmp.ne.s32.totalorder %s2788_s14, %s2784_s13  ;;  %s351_s1 = int_to_ptr.hbm [resolvable:$true] %s350_s1 }
  0x2d   : > { %1979 = dma.hbm_to_vmem [thread:$0]  (!%p3071_p6), %s351_s1, 256, %s353_s15, [#allocation15], %s2924_s16, %s2924_s16, %s2925_s2  }
  0x2e   : > { %s3611_s27 = smov (%p39_p7, %s38_s27), 0  ;;  %s3613_s9 = smov (!%p39_p7, %s41_s9), %s2804_s18 }
  0x2f   : > { %3564 = sst [smem:[#allocation26_spill]] %s3611_s27  ;;  %p56_p9 = scmp.eq.s32.totalorder %s2808_s19, 0 }
  0x30   : > { %p61_p10 = scmp.ne.s32.totalorder %s2784_s13, %s2780_s12  ;;  %p43_p11 = scmp.ge.s32.totalorder %s3613_s9, 2 }
  0x31   : > { %s198_s2 = ssub.s32 %s2800_s17, %s3611_s27  ;;  %p3111_p12 = por %p56_p9, %p55_p8 }
  0x32   : > { %p3117_p13 = por %p3051_p1, %p61_p10  ;;  %s3615_s9 = smov (%p43_p11, %s3613_s9), 0 }
  0x33   : > { %3567 = sst [smem:[#allocation27_spill]] %s3615_s9  ;;  %s202_s25 = sadd.s32 1, %s2776_s11 }
  0x34   : > { %p212_p0 = scmp.ne.s32.totalorder %s2776_s11, %s2772_s10  ;;  %s45_s12 = ssub.s32 %s2804_s18, %s3615_s9 }
  0x35   : > { %p218_p3 = scmp.ne.s32.totalorder %s2772_s10, %s2768_s30  ;;  %p46_p5 = scmp.eq.s32.totalorder %s45_s12, 0 }
  0x36   : > { %s199_s8 = sor.u32 %s198_s2, %s45_s12  ;;  %p3132_p7 = por %p3055_p2, %p212_p0 }
  0x37   : > { %p200_p6 = scmp.eq.s32.totalorder %s199_s8, 0  ;;  %p219_p8 = scmp.eq.s32.totalorder %s1800_s7, 3 }
  0x38   : > { %s3137_s1 = scalar_select %p46_p5, %s2788_s14, %s48_s20  }
  0x39   : > { %s3140_s23 = scalar_select %p200_p6, %s2776_s11, %s202_s25  }
  0x3a   : > { %p1993_p9 = scmp.lt.s32.totalorder %s2808_s19, 4  ;;  %s366_s24 = sand.u32 1, %s2788_s14  }
  0x3b   : > { %s1931_s4 = sshll.u32 %s2804_s18, 4  ;;  %p3145_p10 = por %p219_p8, %p218_p3 }
  0x3c   : > { %s1808_s2 = sshll.u32 %s366_s24, 4  ;;  %s375_s8 = scalar_lea.hbm %s3530_s0, %s1931_s4 }
  0x3d   : > { %s376_s3 = sshll.u32 %s375_s8, 4  ;;  %s370_s5 = scalar_lea.vmem [#allocation5], %s1808_s2  ;;  %s377_s3 = int_to_ptr.hbm [resolvable:$true] %s376_s3 }
  0x3e   : > { %s378_s20 = sshll.u32 %s370_s5, 4  ;;  %p1981_p2 = pnand %p1993_p9, %p3111_p12  ;;  %s379_s20 = int_to_ptr.vmem [resolvable:$true] %s378_s20 }
  0x3f   : > { %s367_s7 = scalar_lea.sflag [#allocation6], %s366_s24  ;;  %s2929_s25 = smov 128  }
  0x40   : > { %s2930_s6 = smov 8   ;;  %390 = sbr.rel (%p3063_p4) target bundleno = 4902 (0x1326), region = 48 }
  0x41   : > { %1983 = dma.hbm_to_vmem [thread:$0]  (!%p1981_p2), %s377_s3, 256, %s379_s20, %s367_s7, %s2929_s25, %s2929_s25, %s2930_s6  }
  0x42   : > { %s392_s9 = sand.u32 (!%p3063_p4), 1, %s2784_s13  }
  0x43   : > { %s1812_s27 = sshll.u32 (!%p3063_p4), %s392_s9, 4  ;;  %s393_s12 = scalar_lea.sflag (!%p3063_p4), [#allocation6], %s392_s9 }
  0x44   : > { %s3157_s4 = scalar_lea.vmem (!%p3063_p4), [#allocation5], %s1812_s27 }
  0x45   : > { %2747 = dma.done.wait (%p3117_p13), %s393_s12, 256  }
  0x46   : > { %2749 = vsyncadd (%p3117_p13), %s393_s12, 4294967040 }
  0x47   : > { %2751 = dma.done.wait (%p3051_p1), [#allocation9], 272  }
  0x48   : > { %2753 = vsyncadd (%p3051_p1), [#allocation9], 4294967024 }
  0x49   : > { %2755 = dma.done.wait (%p3051_p1), [#allocation12], 512  }
  0x4a   : > { %2757 = vsyncadd (%p3051_p1), [#allocation12], 4294966784 }
  0x4b   : > { %2759 = dma.done.wait (%p3051_p1), [#allocation15], 256  }
  0x4c   : > { %2761 = vsyncadd (%p3051_p1), [#allocation15], 4294967040  ;;  %s3176_s3 = sand.u32 1, %s2772_s10   ;;  %s3570_s16 = sld [smem:[#allocation24_spill]] }
  0x4d   : > { %s1818_s5 = sshll.u32 %s3176_s3, 3  ;;  %s1819_s6 = sshll.u32 %s3176_s3, 5 }
  0x4e   : > { %s3180_s26 = scalar_lea.vmem [#allocation16], %s1818_s5  ;;  %s3182_s27 = scalar_lea.vmem [#allocation17], %s1819_s6 }
  0x4f   : > { %s3184_s9 = scalar_lea.vmem [#allocation18], %s1819_s6 }
  0x52   : > { %p1821_p4 = scmp.ne.s32.totalorder %s3570_s16, 0 }
  0x53   : > { %s3571_s24 = sld [smem:[#allocation29_spill]] (!%p1821_p4)  ;;  %s2932_s2 = smov (!%p1821_p4), 112  }
  0x54   : > { %469 = sbr.rel (%p1821_p4) target bundleno = 636 (0x27c), region = 76  ;;  %s2933_s22 = smov (!%p1821_p4), 120  }
  0x55   : > { %s2934_s8 = smov (!%p1821_p4), 104  }
  0x59   : > { %v470_v0 = vld [vmem:[%s3157_s4] sm:$0xff]  ;;  %vm472_vm0 = vcmask 261120   ;;  %v471_v2 = vld [vmem:[%s3157_s4 + $0x8] sm:$0xff]  ;;  %v2931_v4 = vmov 32.0   ;;  %vm539_vm7 = vcmask 257024   ;;  %vm577_vm9 = vcmask 60416  }
  0x5a   : > { %v473_v1 = vsel %vm472_vm0, %v470_v0, 0.0  ;;  %v476_v3 = vsel %vm472_vm0, %v471_v2, 0.0  ;;  %2336 = vrcp.f32 %v2931_v4  ;;  %v1933_v21 = vld [vmem:[#allocation13 + $0x8] sm:$0xff]  ;;  %v1935_v22 = vld [vmem:[#allocation11 + $0x8] sm:$0xff]  ;;  %v1932_v24 = vld [vmem:[#allocation13] sm:$0xff] }
  0x5b   : > { %474 = vadd.xlane.f32.xlu0 %v473_v1  ;;  %567 = vmatpush.bf16.msra.mxu0 %v1933_v21  ;;  %v1934_v25 = vld [vmem:[#allocation11] sm:$0xff]  ;;  %v2334_v39 = vld [vmem:[#allocation8] ss:$0 sm:$0xff] }
  0x5c   : > { %631 = vmatpush.bf16.msra.mxu1 %v1935_v22  ;;  %v2335_v43 = vld [vmem:[%s3571_s24] ss:$0 sm:$0xff] }
  0x5f   : > { %568 = vmatpush.bf16.msra.mxu0 %v1932_v24 }
  0x60   : > { %v2337_v5 = vpop.eup %2336  ;;  %632 = vmatpush.bf16.msra.mxu1 %v1934_v25 }
  0x61   : > { %v480_v6 = vmul.f32 32.0, %v2337_v5  ;;  %vm484_vm1 = vweird.f32 %v2337_v5 }
  0x63   : > { %477 = vadd.xlane.f32.xlu0 %v476_v3  ;;  %v481_v7 = vsub.f32 1.0, %v480_v6 }
  0x65   : > { %v482_v8 = vmul.f32 %v2337_v5, %v481_v7 }
  0x67   : > { %v483_v9 = vadd.f32 %v2337_v5, %v482_v8 }
  0x69   : > { %v485_v10 = vsel %vm484_vm1, %v2337_v5, %v483_v9 }
  0xce   : > { %v475_v11 = vpop.xlane.xlu0 %474 }
  0xcf   : > { %v486_v12 = vmul.f32 %v485_v10, %v475_v11 }
  0xd1   : > { %v488_v13 = vsub.f32 %v470_v0, %v486_v12 }
  0xd3   : > { %v490_v14 = vmul.f32 %v488_v13, %v488_v13 }
  0xd5   : > { %v492_v15 = vsel %vm472_vm0, %v490_v14, 0.0 }
  0xd6   : > { %493 = vadd.xlane.f32.xlu1 %v492_v15  ;;  %v478_v16 = vpop.xlane.xlu0 %477 }
  0xd7   : > { %v487_v17 = vmul.f32 %v485_v10, %v478_v16 }
  0xd9   : > { %v489_v18 = vsub.f32 %v471_v2, %v487_v17 }
  0xdb   : > { %v491_v19 = vmul.f32 %v489_v18, %v489_v18 }
  0xdd   : > { %v495_v20 = vsel %vm472_vm0, %v491_v19, 0.0 }
  0xde   : > { %496 = vadd.xlane.f32.xlu1 %v495_v20 }
 0x149   : > { %v494_v23 = vpop.xlane.xlu1 %493 }
 0x14a   : > { %v498_v26 = vmul.f32 %v494_v23, %v485_v10 }
 0x14c   : > { %v500_v27 = vadd.f32 1e-05, %v498_v26 }
 0x14e   : > { %2338 = vrsqrt.f32 %v500_v27  ;;  %vm508_vm3 = vweird.f32 %v500_v27 }
 0x151   : > { %v497_v28 = vpop.xlane.xlu1 %496 }
 0x152   : > { %v499_v29 = vmul.f32 %v497_v28, %v485_v10 }
 0x154   : > { %v2339_v30 = vpop.eup %2338  ;;  %v501_v31 = vadd.f32 1e-05, %v499_v29 }
 0x155   : > { %v503_v32 = vmul.f32 %v2339_v30, %v500_v27  ;;  %vm509_vm2 = vweird.f32 %v2339_v30 }
 0x156   : > { %2340 = vrsqrt.f32 %v501_v31  ;;  %vm510_vm4 = vmor %vm508_vm3, %vm509_vm2  ;;  %vm518_vm6 = vweird.f32 %v501_v31 }
 0x157   : > { %v504_v33 = vmul.f32 %v2339_v30, %v503_v32 }
 0x159   : > { %v505_v34 = vmul.f32 0.5, %v504_v33 }
 0x15b   : > { %v506_v35 = vsub.f32 1.5, %v505_v34 }
 0x15c   : > { %v2341_v36 = vpop.eup %2340 }
 0x15d   : > { %v507_v37 = vmul.f32 %v2339_v30, %v506_v35  ;;  %v513_v38 = vmul.f32 %v2341_v36, %v501_v31  ;;  %vm519_vm5 = vweird.f32 %v2341_v36 }
 0x15e   : > { %vm520_vm8 = vmor %vm518_vm6, %vm519_vm5 }
 0x15f   : > { %v511_v40 = vsel %vm510_vm4, %v2339_v30, %v507_v37  ;;  %v514_v41 = vmul.f32 %v2341_v36, %v513_v38 }
 0x160   : > { %v522_v42 = vmul.f32 %v511_v40, %v488_v13 }
 0x161   : > { %v515_v44 = vmul.f32 0.5, %v514_v41 }
 0x162   : > { %v528_v45 = vmul.f32 %v2334_v39, %v522_v42 }
 0x163   : > { %v516_v46 = vsub.f32 1.5, %v515_v44 }
 0x164   : > { %v534_v47 = vadd.f32 %v2335_v43, %v528_v45 }
 0x165   : > { %v517_v48 = vmul.f32 %v2341_v36, %v516_v46 }
 0x166   : > { %v537_v49 = vpack.c.bf16 %v534_v47, %v534_v47 }
 0x167   : > { %v521_v50 = vsel %vm520_vm8, %v2341_v36, %v517_v48 }
 0x168   : > { %v523_v51 = vmul.f32 %v521_v50, %v489_v18  ;;  %540 = vst.msk [vmem:[#allocation2] sm:$0xf] %vm539_vm7, %v537_v49 }
 0x16a   : > { %v529_v52 = vmul.f32 %v2334_v39, %v523_v51 }
 0x16c   : > { %v535_v53 = vadd.f32 %v2335_v43, %v529_v52 }
 0x16e   : > { %v536_v54 = vpack.c.bf16 %v535_v53, %v534_v47  ;;  %v538_v55 = vpack.c.bf16 %v535_v53, %v535_v53 }
 0x170   : > { %541 = vst.msk [vmem:[#allocation2 + $0x4] sm:$0xf] %vm539_vm7, %v538_v55  ;;  %1830 = vmatmul.msk.bf16.vlgmr.msra.gmra.mxu0 %vm472_vm0, %v536_v54  ;;  %1839 = vmatmul.msk.bf16.vlgmr.msra.gmra.mxu1 %vm472_vm0, %v536_v54 }
 0x1ed   : > { %v570_v56 = vpop.f32.mrf.mxu0  ;;  %v634_v57 = vpop.f32.mrf.mxu1 }
 0x1ee   : > { %v575_v58 = vpack.c.bf16 %v570_v56, %v570_v56  ;;  %v639_v59 = vpack.c.bf16 %v634_v57, %v634_v57 }
 0x1f0   : > { %578 = vst.msk [vmem:[#allocation3] sm:$0xf] %vm577_vm9, %v575_v58  ;;  %591 = vrot.lane.b32.xlu0 %v575_v58, %s2932_s2  ;;  %582 = vrot.lane.b32.xlu2 %v575_v58, %s2933_s22 }
 0x1f1   : > { %641 = vst.msk [vmem:[#allocation4] sm:$0xf] %vm577_vm9, %v639_v59 }
 0x1f5   : > { %v572_v60 = vpop.f32.mrf.mxu0  ;;  %v636_v61 = vpop.f32.mrf.mxu1 }
 0x1f6   : > { %v576_v62 = vpack.c.bf16 %v572_v60, %v572_v60  ;;  %v640_v63 = vpack.c.bf16 %v636_v61, %v636_v61 }
 0x1f8   : > { %579 = vst.msk [vmem:[#allocation3 + $0x4] sm:$0xf] %vm577_vm9, %v576_v62  ;;  %647 = vrot.lane.b32.xlu0 %v640_v63, %s2933_s22  ;;  %600 = vrot.lane.b32.xlu2 %v575_v58, %s2934_s8 }
 0x1f9   : > { %642 = vst.msk [vmem:[#allocation4 + $0x4] sm:$0xf] %vm577_vm9, %v640_v63  ;;  %593 = vrot.lane.b32.xlu1 %v576_v62, %s2932_s2 }
 0x200   : > { %663 = vrot.lane.b32.xlu0 %v639_v59, %s2934_s8  ;;  %645 = vrot.lane.b32.xlu2 %v639_v59, %s2933_s22 }
 0x201   : > { %656 = vrot.lane.b32.xlu1 %v640_v63, %s2932_s2 }
 0x208   : > { %654 = vrot.lane.b32.xlu2 %v639_v59, %s2932_s2 }
 0x210   : > { %584 = vrot.lane.b32.xlu2 %v576_v62, %s2933_s22 }
 0x218   : > { %602 = vrot.lane.b32.xlu2 %v576_v62, %s2934_s8 }
 0x220   : > { %665 = vrot.lane.b32.xlu2 %v640_v63, %s2934_s8 }
 0x24a   : > { %v583_v0 = vpop.permute.xlu2 %582 }
 0x24b   : > { %589 = vst.msk [vmem:[#allocation3 + $0x8] sm:$0xf] %vm577_vm9, %v583_v0 }
 0x252   : > { %v601_v1 = vpop.permute.xlu2 %600 }
 0x253   : > { %607 = vst.msk [vmem:[#allocation3 + $0x18] sm:$0xf] %vm577_vm9, %v601_v1 }
 0x25a   : > { %v646_v2 = vpop.permute.xlu2 %645 }
 0x25b   : > { %652 = vst.msk [vmem:[#allocation4 + $0x8] sm:$0xf] %vm577_vm9, %v646_v2 }
 0x262   : > { %v592_v3 = vpop.permute.xlu0 %591  ;;  %v655_v4 = vpop.permute.xlu2 %654 }
 0x263   : > { %598 = vst.msk [vmem:[#allocation3 + $0x10] sm:$0xf] %vm577_vm9, %v592_v3 }
 0x264   : > { %661 = vst.msk [vmem:[#allocation4 + $0x10] sm:$0xf] %vm577_vm9, %v655_v4 }
 0x26a   : > { %v648_v5 = vpop.permute.xlu0 %647  ;;  %v585_v6 = vpop.permute.xlu2 %584 }
 0x26b   : > { %653 = vst.msk [vmem:[#allocation4 + $0xc] sm:$0xf] %vm577_vm9, %v648_v5  ;;  %v594_v7 = vpop.permute.xlu1 %593 }
 0x26c   : > { %599 = vst.msk [vmem:[#allocation3 + $0x14] sm:$0xf] %vm577_vm9, %v594_v7 }
 0x26d   : > { %590 = vst.msk [vmem:[#allocation3 + $0xc] sm:$0xf] %vm577_vm9, %v585_v6 }
 0x272   : > { %v664_v8 = vpop.permute.xlu0 %663  ;;  %v603_v9 = vpop.permute.xlu2 %602 }
 0x273   : > { %670 = vst.msk [vmem:[#allocation4 + $0x18] sm:$0xf] %vm577_vm9, %v664_v8  ;;  %v657_v10 = vpop.permute.xlu1 %656 }
 0x274   : > { %662 = vst.msk [vmem:[#allocation4 + $0x14] sm:$0xf] %vm577_vm9, %v657_v10 }
 0x275   : > { %608 = vst.msk [vmem:[#allocation3 + $0x1c] sm:$0xf] %vm577_vm9, %v603_v9 }
 0x27a   : > { %v666_v11 = vpop.permute.xlu2 %665 }
 0x27b   : > { %671 = vst.msk [vmem:[#allocation4 + $0x1c] sm:$0xf] %vm577_vm9, %v666_v11 }
 0x27c PF: > { %s3572_s20 = sld [smem:[#allocation24_spill]]  ;;  %v1937_v12 = vld [vmem:[#allocation10 + $0x8] sm:$0xff]  ;;  %v1936_v14 = vld [vmem:[#allocation10] sm:$0xff]  ;;  %vm694_vm10 = vcmask 261120   ;;  %v712_v16 = vlaneseq  ;;  %v2826_v24 = vmov 0.0   ;;  %v2830_v25 = vmov 0.0  }
 0x27d   : > { %704 = vmatpush.bf16.msra.mxu0 %v1937_v12  ;;  %v2834_v26 = vmov -inf  }
 0x27e   : > { %v713_v17 = vshrl.u32 %v712_v16, 7  ;;  %v3228_v20 = vand.u32 127, %v712_v16 }
 0x281   : > { %705 = vmatpush.bf16.msra.mxu0 %v1936_v14 }
 0x282   : > { %s1840_s7 = sshll.u32 %s3572_s20, 3  ;;  %s3216_s25 = sshll.u32 %s3572_s20, 2 }
 0x283   : > { %s673_s12 = scalar_lea.vmem %s3157_s4, %s1840_s7 [#allocation5]  ;;  %s676_s5 = scalar_lea.vmem [#allocation2], %s3216_s25  ;;  %v3223_v18 = vstv %s1840_s7 }
 0x284   : > { %v3219_v13 = vld [vmem:[%s673_s12] sm:$0xff]  ;;  %v3226_v19 = vadd.s32 %v3223_v18, %v713_v17  ;;  %p1851_p1 = scmp.le.s32.totalorder %s3572_s20, 0 }
 0x285   : > { %v677_v15 = vld [vmem:[%s676_s5] sm:$0xf]  ;;  %s3235_s4 = smov (!%p1851_p1), 0  }
 0x286   : > { %1850 = vmatmul.msk.bf16.vlgmr.msra.gmra.mxu0 %vm694_vm10, %v677_v15 }
 0x303   : > { %v707_v21 = vpop.f32.mrf.mxu0 }
 0x304   : > { %v3230_v22 = vpack.c.bf16 %v707_v21, %v707_v21 }
 0x307   : > { %1650 = sbr.rel (%p1851_p1) target bundleno = 1184 (0x4a0), region = 269 }
 0x30b   : > { %v709_v23 = vpop.f32.mrf.mxu0 }
 0x30c   : > { %v2810_v27 = vmov 0.0   ;;  %v2814_v28 = vmov 0.0   ;;  %v2818_v29 = vmov -inf  }
 0x30d LB: >> { %s1852_s6 = sshll.u32 %s2824_s4, 2  ;;  %vm733_vm11 = vcmask 64512   ;;  %vm773_vm12 = vcmask 1043456   ;;  %s721_s4 = sadd.s32 1, %s2824_s4   ;;  %s2824_s4 = sphi %s3235_s4, %s721_s4   ;;  %v2820_v29 = vphi %v2818_v29, %v2819_v29   ;;  %v2816_v28 = vphi %v2814_v28, %v2815_v28   ;;  %v2812_v27 = vphi %v2810_v27, %v2811_v27  }
 0x30e   : >> { %s728_s16 = scalar_lea.vmem [#allocation3], %s1852_s6  ;;  %s731_s21 = scalar_lea.vmem [#allocation4], %s1852_s6 }
 0x30f   : >> { %v729_v30 = vld [vmem:[%s728_s16] sm:$0xf]  ;;  %s3573_s29 = sld [smem:[#allocation24_spill]] }
 0x310   : >> { %v738_v31 = vsel %vm733_vm11, %v729_v30, 0  ;;  %v732_v35 = vld [vmem:[%s731_s21] sm:$0xf] }
 0x311   : >> { %747 = vmatpush.bf16.xpose.msra.mxu0 %v738_v31  ;;  %v775_v36 = vsel %vm773_vm12, %v732_v35, 0 }
 0x312   : >> { %784 = vmatpush.bf16.msra.mxu1 %v775_v36 }
 0x315   : >> { %p720_p11 = scmp.ge.s32.totalorder %s721_s4, %s3573_s29 }
 0x318   : >> { %1854 = vmatmul.msk.bf16.vlgmr.msra.gmra.mxu0 %vm733_vm11, %v3230_v22 }
 0x395   : >> { %v749_v32 = vpop.f32.mrf.mxu0 }
 0x396   : >> { %v753_v33 = vsel %vm733_vm11, %v749_v32, -inf }
 0x397   : >> { %754 = vmax.xlane.f32.xlu0 %v753_v33 }
 0x39d   : >> { %v751_v34 = vpop.f32.mrf.mxu0 }
 0x40a   : >> { %v755_v37 = vpop.xlane.xlu0 %754 }
 0x40b   : >> { %v756_v38 = vmax.f32 %v2820_v29, %v755_v37  }
 0x40d   : >> { %v757_v39 = vsub.f32 %v2820_v29, %v756_v38  ;;  %v760_v40 = vsub.f32 %v749_v32, %v756_v38  ;;  %v2819_v29 = vmov %v756_v38   ;;  %v2835_v26 = vmov (%p720_p11), %v756_v38  }
 0x40f   : >> { %v761_v41 = vmul.f32 1.442695, %v760_v40  ;;  %v758_v45 = vmul.f32 1.442695, %v757_v39 }
 0x411   : >> { %2342 = vpow2.f32 %v761_v41 }
 0x412   : >> { %2344 = vpow2.f32 %v758_v45 }
 0x417   : >> { %v2343_v42 = vpop.eup %2342 }
 0x418   : >> { %v764_v43 = vsel %vm733_vm11, %v2343_v42, 0.0  ;;  %v769_v44 = vpack.c.bf16 %v2343_v42, %v2343_v42  ;;  %v2345_v46 = vpop.eup %2344 }
 0x419   : >> { %765 = vadd.xlane.f32.xlu0 %v764_v43  ;;  %v763_v47 = vmul.f32 %v2816_v28, %v2345_v46  ;;  %v768_v50 = vmul.f32 %v2812_v27, %v2345_v46 }
 0x41a   : >> { %1855 = vmatmul.msk.bf16.vlgmr.msra.gmra.mxu1 %vm733_vm11, %v769_v44 }
 0x48c   : >> { %v766_v48 = vpop.xlane.xlu0 %765 }
 0x48d   : >> { %v767_v49 = vadd.f32 %v766_v48, %v763_v47  }
 0x48f   : >> { %v2815_v28 = vmov %v767_v49   ;;  %v2831_v25 = vmov (%p720_p11), %v767_v49  }
 0x497   : >> { %v786_v51 = vpop.f32.mrf.mxu1 }
 0x498   : >> { %v790_v52 = vadd.f32 %v786_v51, %v768_v50  }
 0x49a   : >> { %v2811_v27 = vmov %v790_v52   ;;  %v2827_v24 = vmov (%p720_p11), %v790_v52  }
 0x49b   : > { %723 = sbr.rel (!%p720_p11) target bundleno = 781 (0x30d), region = 275 }
 0x49f   : >> { %v788_v53 = vpop.f32.mrf.mxu1 }
 0x4a0 PF: > { %vm797_vm13 = vcmask 64512   ;;  %s3252_s24 = scalar_lea.vmem [#allocation3], %s3216_s25  ;;  %v3260_v56 = vadd.s32 %v3228_v20, %v3223_v18  ;;  %s3269_s2 = scalar_lea.vmem [#allocation4], %s3216_s25  ;;  %vm841_vm15 = vcmask 1043456   ;;  %v3277_v20 = vmov 0.0   ;;  %v2836_v26 = vphi %v2834_v26, %v2835_v26   ;;  %v2832_v25 = vphi %v2830_v25, %v2831_v25   ;;  %v2828_v24 = vphi %v2826_v24, %v2827_v24  }
 0x4a1   : > { %v793_v54 = vld [vmem:[%s3252_s24] sm:$0xf]  ;;  %v3279_v21 = vmov 0.0   ;;  %v3281_v23 = vmov -inf   ;;  %s3285_s8 = smov (!%p1851_p1), 0  }
 0x4a2   : > { %v802_v55 = vsel %vm797_vm13, %v793_v54, 0  ;;  %vm819_vm14 = vcmp.le.s32.totalorder %v3260_v56, %v3226_v19  ;;  %v796_v61 = vld [vmem:[%s3269_s2] sm:$0xf] }
 0x4a3   : > { %811 = vmatpush.bf16.xpose.msra.mxu0 %v802_v55  ;;  %v843_v62 = vsel %vm841_vm15, %v796_v61, 0 }
 0x4a4   : > { %852 = vmatpush.bf16.msra.mxu1 %v843_v62 }
 0x4aa   : > { %1858 = vmatmul.msk.bf16.vlgmr.msra.gmra.mxu0 %vm797_vm13, %v3230_v22 }
 0x527   : > { %v813_v57 = vpop.f32.mrf.mxu0 }
 0x528   : > { %v820_v58 = vsel %vm819_vm14, %v813_v57, -inf }
 0x529   : > { %v821_v59 = vsel %vm797_vm13, %v820_v58, -inf }
 0x52a   : > { %822 = vmax.xlane.f32.xlu0 %v821_v59 }
 0x52f   : > { %v815_v60 = vpop.f32.mrf.mxu0 }
 0x59d   : > { %v823_v63 = vpop.xlane.xlu0 %822 }
 0x59e   : > { %v824_v0 = vmax.f32 %v2836_v26, %v823_v63 }
 0x5a0   : > { %v828_v1 = vsub.f32 %v820_v58, %v824_v0  ;;  %v825_v6 = vsub.f32 %v2836_v26, %v824_v0 }
 0x5a2   : > { %v829_v2 = vmul.f32 1.442695, %v828_v1  ;;  %v826_v7 = vmul.f32 1.442695, %v825_v6 }
 0x5a4   : > { %2346 = vpow2.f32 %v829_v2 }
 0x5a5   : > { %2348 = vpow2.f32 %v826_v7 }
 0x5aa   : > { %v2347_v3 = vpop.eup %2346 }
 0x5ab   : > { %v832_v4 = vsel %vm797_vm13, %v2347_v3, 0.0  ;;  %v837_v5 = vpack.c.bf16 %v2347_v3, %v2347_v3  ;;  %v2349_v8 = vpop.eup %2348 }
 0x5ac   : > { %833 = vadd.xlane.f32.xlu0 %v832_v4  ;;  %v831_v10 = vmul.f32 %v2832_v25, %v2349_v8  ;;  %v836_v12 = vmul.f32 %v2828_v24, %v2349_v8 }
 0x5ad   : > { %1859 = vmatmul.msk.bf16.vlgmr.msra.gmra.mxu1 %vm797_vm13, %v837_v5 }
 0x61f   : > { %v834_v9 = vpop.xlane.xlu0 %833 }
 0x620   : > { %v835_v11 = vadd.f32 %v834_v9, %v831_v10 }
 0x622   : > { %2350 = vrcp.f32 %v835_v11 }
 0x628   : > { %v2351_v16 = vpop.eup %2350 }
 0x62a   : > { %v854_v14 = vpop.f32.mrf.mxu1 }
 0x62b   : > { %v858_v15 = vadd.f32 %v854_v14, %v836_v12 }
 0x62d   : > { %v3275_v17 = vmul.f32 %v2351_v16, %v858_v15 }
 0x62e   : > { %1664 = sbr.rel (%p1851_p1) target bundleno = 2099 (0x833), region = 280 }
 0x632   : > { %v856_v18 = vpop.f32.mrf.mxu1 }
 0x633   : > { %v2838_v26 = vmov 0.0   ;;  %v2842_v25 = vmov 0.0   ;;  %v2846_v27 = vmov -inf  }
 0x634 LB: >> { %v878_v24 = vunpack.c.l.b16 %v3230_v22  ;;  %s1861_s20 = sshll.u32 %s2852_s8, 2  ;;  %s2935_s7 = smov 120   ;;  %s2852_s8 = sphi %s3285_s8, %s864_s8   ;;  %v2848_v27 = vphi %v2846_v27, %v2847_v27   ;;  %v2844_v25 = vphi %v2842_v25, %v2843_v25   ;;  %v2840_v26 = vphi %v2838_v26, %v2839_v26  }
 0x635   : >> { %s1576_s25 = scalar_lea.vmem [#allocation3], %s1861_s20  ;;  %s1579_s12 = scalar_lea.vmem [#allocation4], %s1861_s20 }
 0x636   : >> { %v879_v28 = vpack.c.b16 %v878_v24, %v878_v24  ;;  %v1862_v29 = vld [vmem:[%s1576_s25 + $0x8] sm:$0xf]  ;;  %s864_s8 = sadd.s32 1, %s2852_s8   ;;  %s3575_s5 = sld [smem:[#allocation24_spill]] }
 0x637   : >> { %v886_v30 = vsel %vm797_vm13, %v1862_v29, 0  ;;  %v1864_v35 = vld [vmem:[%s1579_s12 + $0x8] sm:$0xf] }
 0x638   : >> { %880 = vrot.lane.b32.xlu0 %v879_v28, %s2935_s7  ;;  %895 = vmatpush.bf16.xpose.msra.mxu0 %v886_v30  ;;  %v922_v36 = vsel %vm841_vm15, %v1864_v35, 0 }
 0x639   : >> { %931 = vmatpush.bf16.msra.mxu1 %v922_v36 }
 0x63c   : >> { %p863_p12 = scmp.ge.s32.totalorder %s864_s8, %s3575_s5 }
 0x6aa   : >> { %v881_v31 = vpop.permute.xlu0 %880 }
 0x6ab   : >> { %1865 = vmatmul.msk.bf16.vlgmr.msra.gmra.mxu0 %vm797_vm13, %v881_v31 }
 0x728   : >> { %v897_v32 = vpop.f32.mrf.mxu0 }
 0x729   : >> { %v901_v33 = vsel %vm797_vm13, %v897_v32, -inf }
 0x72a   : >> { %902 = vmax.xlane.f32.xlu0 %v901_v33 }
 0x730   : >> { %v899_v34 = vpop.f32.mrf.mxu0 }
 0x79d   : >> { %v903_v37 = vpop.xlane.xlu0 %902 }
 0x79e   : >> { %v904_v38 = vmax.f32 %v2848_v27, %v903_v37  }
 0x7a0   : >> { %v905_v39 = vsub.f32 %v2848_v27, %v904_v38  ;;  %v908_v40 = vsub.f32 %v897_v32, %v904_v38  ;;  %v2847_v27 = vmov %v904_v38   ;;  %v3578_v23 = vmov (%p863_p12), %v904_v38 }
 0x7a2   : >> { %v909_v41 = vmul.f32 1.442695, %v908_v40  ;;  %v906_v45 = vmul.f32 1.442695, %v905_v39 }
 0x7a4   : >> { %2352 = vpow2.f32 %v909_v41 }
 0x7a5   : >> { %2354 = vpow2.f32 %v906_v45 }
 0x7aa   : >> { %v2353_v42 = vpop.eup %2352 }
 0x7ab   : >> { %v912_v43 = vsel %vm797_vm13, %v2353_v42, 0.0  ;;  %v917_v44 = vpack.c.bf16 %v2353_v42, %v2353_v42  ;;  %v2355_v46 = vpop.eup %2354 }
 0x7ac   : >> { %913 = vadd.xlane.f32.xlu1 %v912_v43  ;;  %v911_v47 = vmul.f32 %v2844_v25, %v2355_v46  ;;  %v916_v50 = vmul.f32 %v2840_v26, %v2355_v46 }
 0x7ad   : >> { %1866 = vmatmul.msk.bf16.vlgmr.msra.gmra.mxu1 %vm797_vm13, %v917_v44 }
 0x81f   : >> { %v914_v48 = vpop.xlane.xlu1 %913 }
 0x820   : >> { %v915_v49 = vadd.f32 %v914_v48, %v911_v47  }
 0x822   : >> { %v2843_v25 = vmov %v915_v49   ;;  %v3577_v21 = vmov (%p863_p12), %v915_v49 }
 0x82a   : >> { %v933_v51 = vpop.f32.mrf.mxu1 }
 0x82b   : >> { %v937_v52 = vadd.f32 %v933_v51, %v916_v50  }
 0x82d   : >> { %v2839_v26 = vmov %v937_v52   ;;  %v3576_v20 = vmov (%p863_p12), %v937_v52 }
 0x82e   : > { %866 = sbr.rel (!%p863_p12) target bundleno = 1588 (0x634), region = 286 }
 0x832   : >> { %v935_v53 = vpop.f32.mrf.mxu1 }
 0x833 PF: > { %v946_v54 = vunpack.c.l.b16 %v3230_v22  ;;  %v1868_v55 = vld [vmem:[%s3252_s24 + $0x8] sm:$0xf]  ;;  %s2936_s4 = smov 120   ;;  %v3328_v24 = vmov 0.0   ;;  %v3330_v28 = vmov 0.0   ;;  %s3336_s16 = smov (!%p1851_p1), 0   ;;  %v2864_v23 = vphi %v3281_v23, %v3578_v23   ;;  %v2860_v21 = vphi %v3279_v21, %v3577_v21   ;;  %v2856_v20 = vphi %v3277_v20, %v3576_v20  }
 0x834   : > { %v954_v57 = vsel %vm797_vm13, %v1868_v55, 0  ;;  %v1870_v63 = vld [vmem:[%s3269_s2 + $0x8] sm:$0xf] }
 0x835   : > { %v3314_v58 = vpack.c.b16 %v946_v54, %v946_v54  ;;  %963 = vmatpush.bf16.xpose.msra.mxu0 %v954_v57  ;;  %v991_v0 = vsel %vm841_vm15, %v1870_v63, 0 }
 0x836   : > { %1000 = vmatpush.bf16.msra.mxu1 %v991_v0 }
 0x837   : > { %948 = vrot.lane.b32.xlu0 %v3314_v58, %s2936_s4 }
 0x8a9   : > { %v949_v59 = vpop.permute.xlu0 %948 }
 0x8aa   : > { %1871 = vmatmul.msk.bf16.vlgmr.msra.gmra.mxu0 %vm797_vm13, %v949_v59 }
 0x927   : > { %v965_v60 = vpop.f32.mrf.mxu0 }
 0x928   : > { %v969_v61 = vsel %vm819_vm14, %v965_v60, -inf }
 0x929   : > { %v970_v62 = vsel %vm797_vm13, %v969_v61, -inf }
 0x92a   : > { %971 = vmax.xlane.f32.xlu0 %v970_v62 }
 0x92f   : > { %v967_v22 = vpop.f32.mrf.mxu0 }
 0x99d   : > { %v972_v1 = vpop.xlane.xlu0 %971 }
 0x99e   : > { %v973_v2 = vmax.f32 %v2864_v23, %v972_v1 }
 0x9a0   : > { %v977_v3 = vsub.f32 %v969_v61, %v973_v2  ;;  %v974_v8 = vsub.f32 %v2864_v23, %v973_v2  ;;  %v3332_v23 = vmov -inf  }
 0x9a2   : > { %v978_v4 = vmul.f32 1.442695, %v977_v3  ;;  %v975_v9 = vmul.f32 1.442695, %v974_v8 }
 0x9a4   : > { %2356 = vpow2.f32 %v978_v4 }
 0x9a5   : > { %2358 = vpow2.f32 %v975_v9 }
 0x9aa   : > { %v2357_v5 = vpop.eup %2356 }
 0x9ab   : > { %v981_v6 = vsel %vm797_vm13, %v2357_v5, 0.0  ;;  %v986_v7 = vpack.c.bf16 %v2357_v5, %v2357_v5  ;;  %v2359_v10 = vpop.eup %2358 }
 0x9ac   : > { %982 = vadd.xlane.f32.xlu1 %v981_v6  ;;  %v980_v12 = vmul.f32 %v2860_v21, %v2359_v10  ;;  %v985_v15 = vmul.f32 %v2856_v20, %v2359_v10 }
 0x9ad   : > { %1872 = vmatmul.msk.bf16.vlgmr.msra.gmra.mxu1 %vm797_vm13, %v986_v7 }
 0xa1f   : > { %v983_v11 = vpop.xlane.xlu1 %982 }
 0xa20   : > { %v984_v14 = vadd.f32 %v983_v11, %v980_v12 }
 0xa22   : > { %2360 = vrcp.f32 %v984_v14 }
 0xa28   : > { %v2361_v26 = vpop.eup %2360 }
 0xa2a   : > { %v1002_v16 = vpop.f32.mrf.mxu1 }
 0xa2b   : > { %v1006_v18 = vadd.f32 %v1002_v16, %v985_v15 }
 0xa2d   : > { %v3326_v25 = vmul.f32 %v2361_v26, %v1006_v18 }
 0xa2e   : > { %1678 = sbr.rel (%p1851_p1) target bundleno = 3120 (0xc30), region = 291 }
 0xa32   : > { %v1004_v27 = vpop.f32.mrf.mxu1 }
 0xa33   : > { %v2866_v29 = vmov 0.0   ;;  %v2870_v21 = vmov 0.0   ;;  %v2874_v30 = vmov -inf  }
 0xa34 LB: >> { %s2937_s21 = smov 112   ;;  %s1874_s29 = sshll.u32 %s2880_s16, 2  ;;  %s2880_s16 = sphi %s3336_s16, %s1012_s16   ;;  %v2876_v30 = vphi %v2874_v30, %v2875_v30   ;;  %v2872_v21 = vphi %v2870_v21, %v2871_v21   ;;  %v2868_v29 = vphi %v2866_v29, %v2867_v29  }
 0xa35   : >> { %1025 = vrot.lane.b32.xlu0 %v3314_v58, %s2937_s21  ;;  %s1588_s22 = scalar_lea.vmem [#allocation3], %s1874_s29  ;;  %s1591_s8 = scalar_lea.vmem [#allocation4], %s1874_s29 }
 0xa36   : >> { %v1875_v20 = vld [vmem:[%s1588_s22 + $0x10] sm:$0xf]  ;;  %s1012_s16 = sadd.s32 1, %s2880_s16   ;;  %s3580_s20 = sld [smem:[#allocation24_spill]] }
 0xa37   : >> { %v1031_v31 = vsel %vm797_vm13, %v1875_v20, 0  ;;  %v1877_v36 = vld [vmem:[%s1591_s8 + $0x10] sm:$0xf] }
 0xa38   : >> { %1040 = vmatpush.bf16.xpose.msra.mxu0 %v1031_v31  ;;  %v1067_v37 = vsel %vm841_vm15, %v1877_v36, 0 }
 0xa39   : >> { %1076 = vmatpush.bf16.msra.mxu1 %v1067_v37 }
 0xa3c   : >> { %p1011_p13 = scmp.ge.s32.totalorder %s1012_s16, %s3580_s20 }
 0xaa7   : >> { %v1026_v32 = vpop.permute.xlu0 %1025 }
 0xaa8   : >> { %1878 = vmatmul.msk.bf16.vlgmr.msra.gmra.mxu0 %vm797_vm13, %v1026_v32 }
 0xb25   : >> { %v1042_v33 = vpop.f32.mrf.mxu0 }
 0xb26   : >> { %v1046_v34 = vsel %vm797_vm13, %v1042_v33, -inf }
 0xb27   : >> { %1047 = vmax.xlane.f32.xlu0 %v1046_v34 }
 0xb2d   : >> { %v1044_v35 = vpop.f32.mrf.mxu0 }
 0xb9a   : >> { %v1048_v38 = vpop.xlane.xlu0 %1047 }
 0xb9b   : >> { %v1049_v39 = vmax.f32 %v2876_v30, %v1048_v38  }
 0xb9d   : >> { %v1050_v40 = vsub.f32 %v2876_v30, %v1049_v39  ;;  %v1053_v41 = vsub.f32 %v1042_v33, %v1049_v39  ;;  %v2875_v30 = vmov %v1049_v39   ;;  %v3583_v23 = vmov (%p1011_p13), %v1049_v39 }
 0xb9f   : >> { %v1054_v42 = vmul.f32 1.442695, %v1053_v41  ;;  %v1051_v46 = vmul.f32 1.442695, %v1050_v40 }
 0xba1   : >> { %2362 = vpow2.f32 %v1054_v42 }
 0xba2   : >> { %2364 = vpow2.f32 %v1051_v46 }
 0xba7   : >> { %v2363_v43 = vpop.eup %2362 }
 0xba8   : >> { %v1057_v44 = vsel %vm797_vm13, %v2363_v43, 0.0  ;;  %v1062_v45 = vpack.c.bf16 %v2363_v43, %v2363_v43  ;;  %v2365_v47 = vpop.eup %2364 }
 0xba9   : >> { %1058 = vadd.xlane.f32.xlu1 %v1057_v44  ;;  %v1056_v48 = vmul.f32 %v2872_v21, %v2365_v47  ;;  %v1061_v51 = vmul.f32 %v2868_v29, %v2365_v47 }
 0xbaa   : >> { %1879 = vmatmul.msk.bf16.vlgmr.msra.gmra.mxu1 %vm797_vm13, %v1062_v45 }
 0xc1c   : >> { %v1059_v49 = vpop.xlane.xlu1 %1058 }
 0xc1d   : >> { %v1060_v50 = vadd.f32 %v1059_v49, %v1056_v48  }
 0xc1f   : >> { %v2871_v21 = vmov %v1060_v50   ;;  %v3582_v28 = vmov (%p1011_p13), %v1060_v50 }
 0xc27   : >> { %v1078_v52 = vpop.f32.mrf.mxu1 }
 0xc28   : >> { %v1082_v53 = vadd.f32 %v1078_v52, %v1061_v51  }
 0xc2a   : >> { %v2867_v29 = vmov %v1082_v53   ;;  %v3581_v24 = vmov (%p1011_p13), %v1082_v53 }
 0xc2b   : > { %1014 = sbr.rel (!%p1011_p13) target bundleno = 2612 (0xa34), region = 297 }
 0xc2f   : >> { %v1080_v54 = vpop.f32.mrf.mxu1 }
 0xc30 PF: > { %v1881_v55 = vld [vmem:[%s3252_s24 + $0x10] sm:$0xf]  ;;  %s2938_s7 = smov 112   ;;  %v3376_v21 = vmov 0.0   ;;  %v3378_v30 = vmov 0.0   ;;  %s3384_s12 = smov (!%p1851_p1), 0   ;;  %v2892_v23 = vphi %v3332_v23, %v3583_v23   ;;  %v2888_v28 = vphi %v3330_v28, %v3582_v28   ;;  %v2884_v24 = vphi %v3328_v24, %v3581_v24  }
 0xc31   : > { %1090 = vrot.lane.b32.xlu0 %v3314_v58, %s2938_s7  ;;  %v1096_v57 = vsel %vm797_vm13, %v1881_v55, 0  ;;  %v1883_v63 = vld [vmem:[%s3269_s2 + $0x10] sm:$0xf] }
 0xc32   : > { %1105 = vmatpush.bf16.xpose.msra.mxu0 %v1096_v57  ;;  %v1133_v0 = vsel %vm841_vm15, %v1883_v63, 0 }
 0xc33   : > { %1142 = vmatpush.bf16.msra.mxu1 %v1133_v0 }
 0xca3   : > { %v1091_v59 = vpop.permute.xlu0 %1090 }
 0xca4   : > { %1884 = vmatmul.msk.bf16.vlgmr.msra.gmra.mxu0 %vm797_vm13, %v1091_v59 }
 0xd21   : > { %v1107_v60 = vpop.f32.mrf.mxu0 }
 0xd22   : > { %v1111_v61 = vsel %vm819_vm14, %v1107_v60, -inf }
 0xd23   : > { %v1112_v62 = vsel %vm797_vm13, %v1111_v61, -inf }
 0xd24   : > { %1113 = vmax.xlane.f32.xlu0 %v1112_v62 }
 0xd29   : > { %v1109_v22 = vpop.f32.mrf.mxu0 }
 0xd97   : > { %v1114_v1 = vpop.xlane.xlu0 %1113 }
 0xd98   : > { %v1115_v2 = vmax.f32 %v2892_v23, %v1114_v1 }
 0xd9a   : > { %v1119_v3 = vsub.f32 %v1111_v61, %v1115_v2  ;;  %v1116_v8 = vsub.f32 %v2892_v23, %v1115_v2  ;;  %v3380_v23 = vmov -inf  }
 0xd9c   : > { %v1120_v4 = vmul.f32 1.442695, %v1119_v3  ;;  %v1117_v9 = vmul.f32 1.442695, %v1116_v8 }
 0xd9e   : > { %2366 = vpow2.f32 %v1120_v4 }
 0xd9f   : > { %2368 = vpow2.f32 %v1117_v9 }
 0xda4   : > { %v2367_v5 = vpop.eup %2366 }
 0xda5   : > { %v1123_v6 = vsel %vm797_vm13, %v2367_v5, 0.0  ;;  %v1128_v7 = vpack.c.bf16 %v2367_v5, %v2367_v5  ;;  %v2369_v10 = vpop.eup %2368 }
 0xda6   : > { %1124 = vadd.xlane.f32.xlu1 %v1123_v6  ;;  %v1122_v12 = vmul.f32 %v2888_v28, %v2369_v10  ;;  %v1127_v15 = vmul.f32 %v2884_v24, %v2369_v10 }
 0xda7   : > { %1885 = vmatmul.msk.bf16.vlgmr.msra.gmra.mxu1 %vm797_vm13, %v1128_v7 }
 0xe19   : > { %v1125_v11 = vpop.xlane.xlu1 %1124 }
 0xe1a   : > { %v1126_v14 = vadd.f32 %v1125_v11, %v1122_v12 }
 0xe1c   : > { %2370 = vrcp.f32 %v1126_v14 }
 0xe22   : > { %v2371_v26 = vpop.eup %2370 }
 0xe24   : > { %v1144_v16 = vpop.f32.mrf.mxu1 }
 0xe25   : > { %v1148_v18 = vadd.f32 %v1144_v16, %v1127_v15 }
 0xe27   : > { %v3374_v27 = vmul.f32 %v2371_v26, %v1148_v18 }
 0xe28   : > { %1692 = sbr.rel (%p1851_p1) target bundleno = 4138 (0x102a), region = 302 }
 0xe2c   : > { %v1146_v29 = vpop.f32.mrf.mxu1 }
 0xe2d   : > { %v2894_v20 = vmov 0.0   ;;  %v2898_v28 = vmov 0.0   ;;  %v2902_v31 = vmov -inf  }
 0xe2e LB: >> { %s2939_s5 = smov 104   ;;  %s1887_s4 = sshll.u32 %s2908_s12, 2  ;;  %s2908_s12 = sphi %s3384_s12, %s1154_s12   ;;  %v2904_v31 = vphi %v2902_v31, %v2903_v31   ;;  %v2900_v28 = vphi %v2898_v28, %v2899_v28   ;;  %v2896_v20 = vphi %v2894_v20, %v2895_v20  }
 0xe2f   : >> { %1167 = vrot.lane.b32.xlu0 %v3314_v58, %s2939_s5  ;;  %s1600_s6 = scalar_lea.vmem [#allocation3], %s1887_s4  ;;  %s1603_s16 = scalar_lea.vmem [#allocation4], %s1887_s4 }
 0xe30   : >> { %v1888_v24 = vld [vmem:[%s1600_s6 + $0x18] sm:$0xf]  ;;  %s1154_s12 = sadd.s32 1, %s2908_s12   ;;  %s3585_s21 = sld [smem:[#allocation24_spill]] }
 0xe31   : >> { %v1173_v32 = vsel %vm797_vm13, %v1888_v24, 0  ;;  %v1890_v37 = vld [vmem:[%s1603_s16 + $0x18] sm:$0xf] }
 0xe32   : >> { %1182 = vmatpush.bf16.xpose.msra.mxu0 %v1173_v32  ;;  %v1209_v38 = vsel %vm841_vm15, %v1890_v37, 0 }
 0xe33   : >> { %1218 = vmatpush.bf16.msra.mxu1 %v1209_v38 }
 0xe36   : >> { %p1153_p0 = scmp.ge.s32.totalorder %s1154_s12, %s3585_s21 }
 0xea1   : >> { %v1168_v33 = vpop.permute.xlu0 %1167 }
 0xea2   : >> { %1891 = vmatmul.msk.bf16.vlgmr.msra.gmra.mxu0 %vm797_vm13, %v1168_v33 }
 0xf1f   : >> { %v1184_v34 = vpop.f32.mrf.mxu0 }
 0xf20   : >> { %v1188_v35 = vsel %vm797_vm13, %v1184_v34, -inf }
 0xf21   : >> { %1189 = vmax.xlane.f32.xlu0 %v1188_v35 }
 0xf27   : >> { %v1186_v36 = vpop.f32.mrf.mxu0 }
 0xf94   : >> { %v1190_v39 = vpop.xlane.xlu0 %1189 }
 0xf95   : >> { %v1191_v40 = vmax.f32 %v2904_v31, %v1190_v39  }
 0xf97   : >> { %v1192_v41 = vsub.f32 %v2904_v31, %v1191_v40  ;;  %v1195_v42 = vsub.f32 %v1184_v34, %v1191_v40  ;;  %v2903_v31 = vmov %v1191_v40   ;;  %v3588_v23 = vmov (%p1153_p0), %v1191_v40 }
 0xf99   : >> { %v1196_v43 = vmul.f32 1.442695, %v1195_v42  ;;  %v1193_v47 = vmul.f32 1.442695, %v1192_v41 }
 0xf9b   : >> { %2372 = vpow2.f32 %v1196_v43 }
 0xf9c   : >> { %2374 = vpow2.f32 %v1193_v47 }
 0xfa1   : >> { %v2373_v44 = vpop.eup %2372 }
 0xfa2   : >> { %v1199_v45 = vsel %vm797_vm13, %v2373_v44, 0.0  ;;  %v1204_v46 = vpack.c.bf16 %v2373_v44, %v2373_v44  ;;  %v2375_v48 = vpop.eup %2374 }
 0xfa3   : >> { %1200 = vadd.xlane.f32.xlu1 %v1199_v45  ;;  %v1198_v49 = vmul.f32 %v2900_v28, %v2375_v48  ;;  %v1203_v52 = vmul.f32 %v2896_v20, %v2375_v48 }
 0xfa4   : >> { %1892 = vmatmul.msk.bf16.vlgmr.msra.gmra.mxu1 %vm797_vm13, %v1204_v46 }
0x1016   : >> { %v1201_v50 = vpop.xlane.xlu1 %1200 }
0x1017   : >> { %v1202_v51 = vadd.f32 %v1201_v50, %v1198_v49  }
0x1019   : >> { %v2899_v28 = vmov %v1202_v51   ;;  %v3587_v30 = vmov (%p1153_p0), %v1202_v51 }
0x1021   : >> { %v1220_v53 = vpop.f32.mrf.mxu1 }
0x1022   : >> { %v1224_v54 = vadd.f32 %v1220_v53, %v1203_v52  }
0x1024   : >> { %v2895_v20 = vmov %v1224_v54   ;;  %v3586_v21 = vmov (%p1153_p0), %v1224_v54 }
0x1025   : > { %1156 = sbr.rel (!%p1153_p0) target bundleno = 3630 (0xe2e), region = 308 }
0x1029   : >> { %v1222_v55 = vpop.f32.mrf.mxu1 }
0x102a PF: > { %v1894_v57 = vld [vmem:[%s3252_s24 + $0x18] sm:$0xf]  ;;  %s2940_s29 = smov 104   ;;  %s2941_s22 = smov 16   ;;  %v1939_v8 = vld [vmem:[#allocation14 + $0x8] sm:$0xff]  ;;  %vm1306_vm0 = vcmask 130048   ;;  %v2920_v23 = vphi %v3380_v23, %v3588_v23   ;;  %v2916_v30 = vphi %v3378_v30, %v3587_v30   ;;  %v2912_v21 = vphi %v3376_v21, %v3586_v21  }
0x102b   : > { %1232 = vrot.lane.b32.xlu0 %v3314_v58, %s2940_s29  ;;  %v1238_v59 = vsel %vm797_vm13, %v1894_v57, 0  ;;  %v1896_v0 = vld [vmem:[%s3269_s2 + $0x18] sm:$0xf]  ;;  %1298 = vrot.lane.b32.xlu2 %v3374_v27, %s2941_s22  ;;  %s2942_s8 = smov 8   ;;  %s2943_s20 = smov 24   ;;  %vm1308_vm1 = vcmask 195584  }
0x102c   : > { %1247 = vmatpush.bf16.xpose.msra.mxu0 %v1238_v59  ;;  %v1275_v1 = vsel %vm841_vm15, %v1896_v0, 0  ;;  %1336 = vmatpush.bf16.msra.mxu2 %v1939_v8  ;;  %v1938_v27 = vld [vmem:[#allocation14] sm:$0xff]  ;;  %v1908_v33 = vld [vmem:[%s3252_s24 + $0x8] sm:$0xf]  ;;  %v1912_v37 = vld [vmem:[%s3252_s24 + $0x10] sm:$0xf] }
0x102d   : > { %1284 = vmatpush.bf16.msra.mxu1 %v1275_v1  ;;  %v1344_v24 = vld [vmem:[%s3252_s24] sm:$0xf]  ;;  %v1351_v35 = vunpack.c.l.bf16 %v1908_v33  ;;  %v1910_v36 = vld [vmem:[%s3269_s2 + $0x8] sm:$0xf]  ;;  %v1914_v38 = vld [vmem:[%s3269_s2 + $0x10] sm:$0xf]  ;;  %v1359_v41 = vunpack.c.l.bf16 %v1912_v37 }
0x102e   : > { %v1347_v32 = vld [vmem:[%s3269_s2] sm:$0xf]  ;;  %v1345_v34 = vunpack.c.l.bf16 %v1344_v24  ;;  %s3589_s7 = sld [smem:[#allocation25_spill]]  ;;  %v1355_v39 = vunpack.c.l.bf16 %v1910_v36  ;;  %v1916_v40 = vld [vmem:[%s3252_s24 + $0x18] sm:$0xf]  ;;  %v1363_v43 = vunpack.c.l.bf16 %v1914_v38  ;;  %s1397_s21 = sshll.u32 %s3180_s26, 4  ;;  %s1398_s21 = int_to_ptr.vmem [resolvable:$true] %s1397_s21 }
0x102f   : > { %s3590_s25 = sld [smem:[#allocation24_spill]]  ;;  %v1918_v42 = vld [vmem:[%s3269_s2 + $0x18] sm:$0xf]  ;;  %1909 = vst.msk [vmem:[%s3182_s27 + $0x8] sm:$0xff] %vm797_vm13, %v1351_v35  ;;  %v1367_v44 = vunpack.c.l.bf16 %v1916_v40  ;;  %s1375_s22 = scalar_lea.sflag [#allocation7], %s3176_s3 }
0x1030   : > { %1337 = vmatpush.bf16.msra.mxu2 %v1938_v27  ;;  %1346 = vst.msk [vmem:[%s3182_s27] sm:$0xff] %vm797_vm13, %v1345_v34  ;;  %v1371_v45 = vunpack.c.l.bf16 %v1918_v42  ;;  %s3591_s6 = sld [smem:[#allocation34_spill]] }
0x1031   : > { %1911 = vst.msk [vmem:[%s3184_s9 + $0x8] sm:$0xff] %vm797_vm13, %v1355_v39 }
0x1032   : > { %1913 = vst.msk [vmem:[%s3182_s27 + $0x10] sm:$0xff] %vm797_vm13, %v1359_v41 }
0x1033   : > { %1915 = vst.msk [vmem:[%s3184_s9 + $0x10] sm:$0xff] %vm797_vm13, %v1363_v43 }
0x1034   : > { %1917 = vst.msk [vmem:[%s3182_s27 + $0x18] sm:$0xff] %vm797_vm13, %v1367_v44  ;;  %s1923_s24 = sshll.u32 %s3589_s7, 1 }
0x1035   : > { %1919 = vst.msk [vmem:[%s3184_s9 + $0x18] sm:$0xff] %vm797_vm13, %v1371_v45  ;;  %s1393_s2 = sadd.s32 %s3590_s25, %s1923_s24 }
0x1036   : > { %s1924_s12 = sshll.u32 %s1393_s2, 3  ;;  %s2582_s24 = scalar_lea.hbm %s3591_s6, 32 }
0x1037   : > { %s1395_s16 = scalar_lea.hbm %s3591_s6, %s1924_s12 }
0x1038   : > { %s1399_s29 = sshll.u32 %s1395_s16, 4  ;;  %s1400_s29 = int_to_ptr.hbm [resolvable:$true] %s1399_s29 }
0x1085   : > { %v1299_v29 = vpop.permute.xlu2 %1298 }
0x109d   : > { %v1233_v60 = vpop.permute.xlu0 %1232 }
0x109e   : > { %1897 = vmatmul.msk.bf16.vlgmr.msra.gmra.mxu0 %vm797_vm13, %v1233_v60 }
0x111b   : > { %v1249_v61 = vpop.f32.mrf.mxu0 }
0x111c   : > { %v1253_v62 = vsel %vm819_vm14, %v1249_v61, -inf }
0x111d   : > { %v1254_v22 = vsel %vm797_vm13, %v1253_v62, -inf }
0x111e   : > { %1255 = vmax.xlane.f32.xlu0 %v1254_v22 }
0x1123   : > { %v1251_v63 = vpop.f32.mrf.mxu0 }
0x1191   : > { %v1256_v58 = vpop.xlane.xlu0 %1255 }
0x1192   : > { %v1257_v2 = vmax.f32 %v2920_v23, %v1256_v58 }
0x1194   : > { %v1261_v3 = vsub.f32 %v1253_v62, %v1257_v2  ;;  %v1258_v6 = vsub.f32 %v2920_v23, %v1257_v2 }
0x1196   : > { %v1262_v4 = vmul.f32 1.442695, %v1261_v3  ;;  %v1259_v7 = vmul.f32 1.442695, %v1258_v6 }
0x1198   : > { %2376 = vpow2.f32 %v1262_v4 }
0x1199   : > { %2378 = vpow2.f32 %v1259_v7 }
0x119e   : > { %v2377_v5 = vpop.eup %2376 }
0x119f   : > { %v1265_v19 = vsel %vm797_vm13, %v2377_v5, 0.0  ;;  %v1270_v56 = vpack.c.bf16 %v2377_v5, %v2377_v5  ;;  %v2379_v9 = vpop.eup %2378 }
0x11a0   : > { %1266 = vadd.xlane.f32.xlu1 %v1265_v19  ;;  %v1264_v11 = vmul.f32 %v2916_v30, %v2379_v9  ;;  %v1269_v14 = vmul.f32 %v2912_v21, %v2379_v9 }
0x11a1   : > { %1898 = vmatmul.msk.bf16.vlgmr.msra.gmra.mxu1 %vm797_vm13, %v1270_v56 }
0x11b9   : > { %1294 = vrot.lane.b32.xlu1 %v3326_v25, %s2942_s8  ;;  %s2576_s8 = sshra.s32 %s1400_s29, 4  ;;  %s2577_s8 = int_to_ptr.hbm [resolvable:$true] %s2576_s8 }
0x11ba   : > { %p2583_p8 = scmp.lt.s32.totalorder %s2577_s8, %s3591_s6 }
0x1213   : > { %v1267_v10 = vpop.xlane.xlu1 %1266 }
0x1214   : > { %v1268_v12 = vadd.f32 %v1267_v10, %v1264_v11 }
0x1216   : > { %2380 = vrcp.f32 %v1268_v12 }
0x121c   : > { %v2381_v18 = vpop.eup %2380 }
0x121e   : > { %v1286_v15 = vpop.f32.mrf.mxu1 }
0x121f   : > { %v1290_v16 = vadd.f32 %v1286_v15, %v1269_v14 }
0x1221   : > { %v1292_v26 = vmul.f32 %v2381_v18, %v1290_v16 }
0x1223   : > { %1302 = vrot.lane.b32.xlu2 %v1292_v26, %s2943_s20  ;;  %s2578_s20 = scalar_lea.hbm %s2577_s8, 8 }
0x1224   : > { %p2579_p3 = scmp.ne.s32.totalorder %s2577_s8, %s2578_s20  ;;  %p2584_p9 = scmp.lt.s32.totalorder %s2582_s24, %s2578_s20 }
0x1226   : > { %v1288_v25 = vpop.f32.mrf.mxu1  ;;  %p2580_p5 = pnand %p2579_p3, %p3132_p7  ;;  %p2585_p2 = por %p2584_p9, %p2583_p8 }
0x1228   : > { %p2581_p6 = pneg %p2580_p5 }
0x122a   : > { %p2586_p4 = pnand %p2585_p2, %p2581_p6 }
0x122b   : > { %v1295_v23 = vpop.permute.xlu1 %1294 }
0x122c   : > { %v1305_v30 = vsel %vm797_vm13, %v3275_v17, %v1295_v23  ;;  %v1348_v17 = vunpack.c.l.bf16 %v1347_v32 }
0x122d   : > { %v1307_v21 = vsel %vm1306_vm0, %v1305_v30, %v1299_v29 }
0x122e   : > { %1349 = vst.msk [vmem:[%s3184_s9] sm:$0xff] %vm797_vm13, %v1348_v17 }
0x127d   : > { %v1303_v20 = vpop.permute.xlu2 %1302 }
0x127e   : > { %v1309_v28 = vsel %vm1308_vm1, %v1307_v21, %v1303_v20 }
0x127f   : > { %v1310_v31 = vpack.c.bf16 %v1309_v28, %v1309_v28 }
0x1281   : > { %1907 = vmatmul.msk.bf16.vlgmr.msra.gmra.mxu2 %vm694_vm10, %v1310_v31 }
0x1304   : > { %v1339_v46 = vpop.f32.mrf.mxu2 }
0x1305   : > { %v1340_v47 = vadd.f32 %v1339_v46, %v3219_v13 }
0x1307   : > { %1343 = vst.msk [vmem:[%s3180_s26] sm:$0xff] %vm694_vm10, %v1340_v47 }
0x1308   : > { %2589 = shalt.err (!%p2586_p4)
}
0x1309   : > { %1962 = dma.vmem_to_hbm [thread:$0]  (%p3132_p7), %s1398_s21, 128, %s1400_s29, %s1375_s22   ;;  %v1444_v48 = vld [vmem:[%s3182_s27] sm:$0xff] (%p3132_p7)  ;;  %v1446_v49 = vld [vmem:[%s3182_s27 + $0x8] sm:$0xff] (%p3132_p7)  ;;  %v1448_v50 = vld [vmem:[%s3182_s27 + $0x10] sm:$0xff] (%p3132_p7) }
0x130a   : > { %1405 = sbr.rel (!%p3132_p7) target bundleno = 4888 (0x1318), region = 112  ;;  %s3592_s3 = sld [smem:[#allocation25_spill]] (%p3132_p7)  ;;  %v1450_v51 = vld [vmem:[%s3182_s27 + $0x18] sm:$0xff] (%p3132_p7) }
0x130b   : > { %s3593_s26 = sld [smem:[#allocation24_spill]] (%p3132_p7) }
0x130c   : > { %v1341_v13 = vpop.f32.mrf.mxu2  ;;  %s3594_s7 = sld [smem:[#allocation35_spill]] (%p3132_p7) }
0x1310   : > { %s1925_s5 = sshll.u32 %s3592_s3, 3 }
0x1311   : > { %s1407_s4 = sadd.s32 %s3593_s26, %s1925_s5 }
0x1312   : > { %s1926_s16 = sshll.u32 %s1407_s4, 3 }
0x1313   : > { %s1409_s25 = scalar_lea.vmem %s3594_s7, %s1926_s16 }
0x1314   : > { %1445 = vst [vmem:[%s1409_s25] sm:$0xff] %v1444_v48 }
0x1315   : > { %1447 = vst [vmem:[%s1409_s25 + $0x10] sm:$0xff] %v1446_v49 }
0x1316   : > { %1449 = vst [vmem:[%s1409_s25 + $0x20] sm:$0xff] %v1448_v50 }
0x1317   : > { %1451 = vst [vmem:[%s1409_s25 + $0x30] sm:$0xff] %v1450_v51 }
0x1318 PF: > { %1457 = sbr.rel (!%p3132_p7) target bundleno = 4902 (0x1326), region = 150  ;;  %s3595_s21 = sld [smem:[#allocation25_spill]] (%p3132_p7)  ;;  %v1496_v52 = vld [vmem:[%s3184_s9] sm:$0xff] (%p3132_p7)  ;;  %v1498_v53 = vld [vmem:[%s3184_s9 + $0x8] sm:$0xff] (%p3132_p7)  ;;  %v1500_v54 = vld [vmem:[%s3184_s9 + $0x10] sm:$0xff] (%p3132_p7) }
0x1319   : > { %s3596_s29 = sld [smem:[#allocation24_spill]] (%p3132_p7)  ;;  %v1502_v55 = vld [vmem:[%s3184_s9 + $0x18] sm:$0xff] (%p3132_p7) }
0x131a   : > { %s3597_s3 = sld [smem:[#allocation36_spill]] (%p3132_p7) }
0x131e   : > { %s1927_s22 = sshll.u32 %s3595_s21, 3 }
0x131f   : > { %s1459_s24 = sadd.s32 %s3596_s29, %s1927_s22 }
0x1320   : > { %s1928_s2 = sshll.u32 %s1459_s24, 3 }
0x1321   : > { %s1461_s26 = scalar_lea.vmem %s3597_s3, %s1928_s2 }
0x1322   : > { %1497 = vst [vmem:[%s1461_s26] sm:$0xff] %v1496_v52 }
0x1323   : > { %1499 = vst [vmem:[%s1461_s26 + $0x10] sm:$0xff] %v1498_v53 }
0x1324   : > { %1501 = vst [vmem:[%s1461_s26 + $0x20] sm:$0xff] %v1500_v54 }
0x1325   : > { %1503 = vst [vmem:[%s1461_s26 + $0x30] sm:$0xff] %v1502_v55 }
0x1326 PF: > { %p1999_p7 = scmp.ge.s32.totalorder %s2808_s19, 2  ;;  %s1515_s28 = sand.u32 1, %s2768_s30  }
0x1327   : > { %s1516_s5 = scalar_lea.sflag [#allocation7], %s1515_s28 }
0x1328   : > { %p1985_p1 = pnand %p1999_p7, %p3145_p10 }
0x132a   : > { %p1986_p11 = pneg %p1985_p1 }
0x132c   : > { %2763 = dma.done.wait (%p1986_p11), %s1516_s5, 128  }
0x132d   : > { %2765 = vsyncadd (%p1986_p11), %s1516_s5, 4294967168  ;;  %s29_s19 = sadd.s32 1, %s2808_s19   ;;  %s3598_s9 = sld [smem:[#allocation26_spill]] }
0x132e   : > { %p26_p12 = scmp.ge.s32.totalorder %s29_s19, 6   ;;  %s3599_s4 = sld [smem:[#allocation27_spill]] }
0x132f   : > { %s3600_s30 = smov %s2772_s10  ;;  %s3601_s10 = smov %s2776_s11 }
0x1330   : > { %s3602_s11 = smov %s3140_s23  ;;  %s3603_s12 = smov %s2784_s13 }
0x1331   : > { %s3604_s13 = smov %s2788_s14  ;;  %s3605_s14 = smov %s3137_s1 }
0x1332   : > { %s3606_s15 = smov %s2800_s17  ;;  %s3607_s16 = smov %s2804_s18 }
0x1333   : > { %s3608_s17 = smov %s3598_s9  ;;  %28 = sbr.rel (!%p26_p12) target bundleno = 22 (0x16), region = 319 }
0x1334   : > { %s3609_s18 = smov %s3599_s4 }
0x1338   :  { %1536 = vsyncpa [#allocation6], 1 }
0x1339   :  { %1538 = vsyncpa [#allocation6 + $0x1], 1 }
0x133a   :  { %1539 = vsyncpa [#allocation9], 1 }
0x133b   :  { %1540 = vsyncpa [#allocation12], 1 }
0x133c   :  { %1541 = vsyncpa [#allocation15], 1 }
0x133d   :  { %1542 = vsyncpa [#allocation7], 1 }
0x133e   :  { %1544 = vsyncpa [#allocation7 + $0x1], 1 }

// kernel: tpu_custom_call.1
= control target key start
LH: loop header
LB: loop body
LE: loop exit
PB: predicated region body
PF: predicated region fallthrough
CT: control target
= control target key end

     0   :  { %s3530_s0 = inlined_call_operand.hbm [shape: f32[2,16,32], index: 0, kind: input, shape index: {}]   ;;  %s3531_s1 = inlined_call_operand.hbm [shape: f32[1,32], index: 1, kind: input, shape index: {}]   ;;  %s3532_s2 = inlined_call_operand.vmem [shape: f32[1,32], index: 2, kind: input, shape index: {}]   ;;  %s3533_s3 = inlined_call_operand.hbm [shape: bf16[32,32], index: 3, kind: input, shape index: {}]   ;;  %s3534_s4 = inlined_call_operand.hbm [shape: bf16[32,32], index: 4, kind: input, shape index: {}]   ;;  %s3535_s5 = inlined_call_operand.hbm [shape: bf16[32,32], index: 5, kind: input, shape index: {}]   ;;  %s3536_s6 = inlined_call_operand.hbm [shape: bf16[32,32], index: 6, kind: input, shape index: {}]   ;;  %s3537_s7 = inlined_call_operand.hbm [shape: f32[2,16,32], index: 7, kind: output, shape index: {0}]   ;;  %s3538_s8 = inlined_call_operand.vmem [shape: f32[2,4,16,8], index: 8, kind: output, shape index: {1}]   ;;  %s3539_s9 = inlined_call_operand.vmem [shape: f32[2,4,16,8], index: 9, kind: output, shape index: {2}]  }
   0x1   :  { %3544 = sst [smem:[#allocation28_spill]] %s3531_s1 }
   0x2   :  { %3545 = sst [smem:[#allocation29_spill]] %s3532_s2 }
   0x3   :  { %3546 = sst [smem:[#allocation30_spill]] %s3533_s3 }
   0x4   :  { %3547 = sst [smem:[#allocation31_spill]] %s3534_s4 }
   0x5   :  { %3548 = sst [smem:[#allocation32_spill]] %s3535_s5 }
   0x6   :  { %3549 = sst [smem:[#allocation33_spill]] %s3536_s6 }
   0x7   :  { %3550 = sst [smem:[#allocation34_spill]] %s3537_s7 }
   0x8   :  { %3551 = sst [smem:[#allocation35_spill]] %s3538_s8 }
   0x9   :  { %3552 = sst [smem:[#allocation36_spill]] %s3539_s9 }
   0xa   :  { %15 = vsyncpa [#allocation6], 0 }
   0xb   :  { %17 = vsyncpa [#allocation6 + $0x1], 0 }
   0xc   :  { %18 = vsyncpa [#allocation9], 0 }
   0xd   :  { %19 = vsyncpa [#allocation12], 0 }
   0xe   :  { %20 = vsyncpa [#allocation15], 0 }
   0xf   :  { %21 = vsyncpa [#allocation7], 0 }
  0x10   :  { %23 = vsyncpa [#allocation7 + $0x1], 0  ;;  %s2994_s30 = smov 0   ;;  %s2996_s10 = smov 0  }
  0x11   :  { %s2998_s11 = smov 0   ;;  %s3000_s12 = smov 0  }
  0x12   :  { %s3002_s13 = smov 0   ;;  %s3004_s14 = smov 0  }
  0x13   :  { %s3006_s15 = smov 0   ;;  %s3008_s16 = smov 0  }
  0x14   :  { %s3010_s17 = smov 0   ;;  %s3012_s18 = smov 0  }
  0x15   :  { %s3014_s19 = smov 0  }
  0x16 LB: > { %3553 = sst [smem:[#allocation24_spill]] %s2792_s15  ;;  %s1799_s20 = sadd.s32 4294967295, %s2808_s19   ;;  %s2808_s19 = sphi %s3014_s19, %s29_s19   ;;  %s2804_s18 = sphi %s3012_s18, %s3609_s18   ;;  %s2800_s17 = sphi %s3010_s17, %s3608_s17   ;;  %s2796_s16 = sphi %s3008_s16, %s3607_s16   ;;  %s2792_s15 = sphi %s3006_s15, %s3606_s15   ;;  %s2788_s14 = sphi %s3004_s14, %s3605_s14   ;;  %s2784_s13 = sphi %s3002_s13, %s3604_s13   ;;  %s2780_s12 = sphi %s3000_s12, %s3603_s12   ;;  %s2776_s11 = sphi %s2998_s11, %s3602_s11   ;;  %s2772_s10 = sphi %s2996_s10, %s3601_s10   ;;  %s2768_s30 = sphi %s2994_s30, %s3600_s30  }
  0x17   : > { %3554 = sst [smem:[#allocation25_spill]] %s2796_s16  ;;  %p1801_p0 = scmp.ge.s32.totalorder %s2808_s19, 1 }
  0x18   : > { %p3051_p1 = scmp.eq.s32.totalorder %s1799_s20, 0  ;;  %p3055_p2 = scmp.eq.s32.totalorder %s1799_s20, 3 }
  0x19   : > { %p282_p3 = scmp.lt.s32.totalorder %s2808_s19, 5  ;;  %s3557_s1 = sld [smem:[#allocation28_spill]] }
  0x1a   : > { %s2922_s27 = smov [#allocation8]   ;;  %s3560_s4 = sld [smem:[#allocation31_spill]] }
  0x1b   : > { %p3063_p4 = pnand %p1801_p0, %p282_p3  ;;  %s296_s28 = sshll.u32 %s2922_s27, 4  ;;  %s297_s28 = int_to_ptr.vmem [resolvable:$true] %s296_s28 }
  0x1c   : > { %s2923_s24 = smov [#allocation11]   ;;  %s3561_s3 = sld [smem:[#allocation30_spill]] }
  0x1d   : > { %p1964_p5 = pneg %p3063_p4  ;;  %s2924_s16 = smov 64  }
  0x1e   : > { %s2925_s2 = smov 4   ;;  %s2926_s9 = smov [#allocation10]  }
  0x1f   : > { %s294_s25 = sshll.u32 %s3557_s1, 4  ;;  %p3071_p6 = pnand %p1964_p5, %p3051_p1  ;;  %s295_s25 = int_to_ptr.hbm [resolvable:$true] %s294_s25 }
  0x20   : > { %s322_s23 = sshll.u32 %s3560_s4, 4  ;;  %s324_s1 = sshll.u32 %s2923_s24, 4  ;;  %s323_s23 = int_to_ptr.hbm [resolvable:$true] %s322_s23  ;;  %s325_s1 = int_to_ptr.vmem [resolvable:$true] %s324_s1 }
  0x21   : > { %1967 = dma.hbm_to_vmem [thread:$0]  (!%p3071_p6), %s295_s25, 16, %s297_s28, [#allocation9]  }
  0x22   : > { %s308_s7 = sshll.u32 %s3561_s3, 4  ;;  %s310_s20 = sshll.u32 %s2926_s9, 4  ;;  %s309_s7 = int_to_ptr.hbm [resolvable:$true] %s308_s7  ;;  %s311_s20 = int_to_ptr.vmem [resolvable:$true] %s310_s20 }
  0x23   : > { %1973 = dma.hbm_to_vmem [thread:$0]  (!%p3071_p6), %s323_s23, 256, %s325_s1, [#allocation12], %s2924_s16, %s2924_s16, %s2925_s2  }
  0x24   : > { %s3562_s5 = sld [smem:[#allocation32_spill]]  ;;  %s2927_s23 = smov [#allocation13]  }
  0x25   : > { %1970 = dma.hbm_to_vmem [thread:$0]  (!%p3071_p6), %s309_s7, 256, %s311_s20, [#allocation9], %s2924_s16, %s2924_s16, %s2925_s2  }
  0x26   : > { %s3563_s6 = sld [smem:[#allocation33_spill]]  ;;  %s338_s24 = sshll.u32 %s2927_s23, 4  ;;  %s339_s24 = int_to_ptr.vmem [resolvable:$true] %s338_s24 }
  0x27   : > { %s2928_s4 = smov [#allocation14]   ;;  %s1800_s7 = sadd.s32 4294967294, %s2808_s19  }
  0x28   : > { %s352_s15 = sshll.u32 %s2928_s4, 4  ;;  %s38_s27 = sadd.s32 1, %s2800_s17  ;;  %s353_s15 = int_to_ptr.vmem [resolvable:$true] %s352_s15 }
  0x29   : > { %p39_p7 = scmp.ge.s32.totalorder %s38_s27, 2  ;;  %s41_s9 = sadd.s32 1, %s2804_s18 }
  0x2a   : > { %s336_s25 = sshll.u32 %s3562_s5, 4  ;;  %s48_s20 = sadd.s32 1, %s2788_s14  ;;  %s337_s25 = int_to_ptr.hbm [resolvable:$true] %s336_s25 }
  0x2b   : > { %1976 = dma.hbm_to_vmem [thread:$0]  (!%p3071_p6), %s337_s25, 256, %s339_s24, [#allocation12], %s2924_s16, %s2924_s16, %s2925_s2  }
  0x2c   : > { %s350_s1 = sshll.u32 %s3563_s6, 4  ;;  %p55_p8 = scmp.ne.s32.totalorder %s2788_s14, %s2784_s13  ;;  %s351_s1 = int_to_ptr.hbm [resolvable:$true] %s350_s1 }
  0x2d   : > { %1979 = dma.hbm_to_vmem [thread:$0]  (!%p3071_p6), %s351_s1, 256, %s353_s15, [#allocation15], %s2924_s16, %s2924_s16, %s2925_s2  }
  0x2e   : > { %s3611_s27 = smov (%p39_p7, %s38_s27), 0  ;;  %s3613_s9 = smov (!%p39_p7, %s41_s9), %s2804_s18 }
  0x2f   : > { %3564 = sst [smem:[#allocation26_spill]] %s3611_s27  ;;  %p56_p9 = scmp.eq.s32.totalorder %s2808_s19, 0 }
  0x30   : > { %p61_p10 = scmp.ne.s32.totalorder %s2784_s13, %s2780_s12  ;;  %p43_p11 = scmp.ge.s32.totalorder %s3613_s9, 2 }
  0x31   : > { %s198_s2 = ssub.s32 %s2800_s17, %s3611_s27  ;;  %p3111_p12 = por %p56_p9, %p55_p8 }
  0x32   : > { %p3117_p13 = por %p3051_p1, %p61_p10  ;;  %s3615_s9 = smov (%p43_p11, %s3613_s9), 0 }
  0x33   : > { %3567 = sst [smem:[#allocation27_spill]] %s3615_s9  ;;  %s202_s25 = sadd.s32 1, %s2776_s11 }
  0x34   : > { %p212_p0 = scmp.ne.s32.totalorder %s2776_s11, %s2772_s10  ;;  %s45_s12 = ssub.s32 %s2804_s18, %s3615_s9 }
  0x35   : > { %p218_p3 = scmp.ne.s32.totalorder %s2772_s10, %s2768_s30  ;;  %p46_p5 = scmp.eq.s32.totalorder %s45_s12, 0 }
  0x36   : > { %s199_s8 = sor.u32 %s198_s2, %s45_s12  ;;  %p3132_p7 = por %p3055_p2, %p212_p0 }
  0x37   : > { %p200_p6 = scmp.eq.s32.totalorder %s199_s8, 0  ;;  %p219_p8 = scmp.eq.s32.totalorder %s1800_s7, 3 }
  0x38   : > { %s3137_s1 = scalar_select %p46_p5, %s2788_s14, %s48_s20  }
  0x39   : > { %s3140_s23 = scalar_select %p200_p6, %s2776_s11, %s202_s25  }
  0x3a   : > { %p1993_p9 = scmp.lt.s32.totalorder %s2808_s19, 4  ;;  %s366_s24 = sand.u32 1, %s2788_s14  }
  0x3b   : > { %s1931_s4 = sshll.u32 %s2804_s18, 4  ;;  %p3145_p10 = por %p219_p8, %p218_p3 }
  0x3c   : > { %s1808_s2 = sshll.u32 %s366_s24, 4  ;;  %s375_s8 = scalar_lea.hbm %s3530_s0, %s1931_s4 }
  0x3d   : > { %s376_s3 = sshll.u32 %s375_s8, 4  ;;  %s370_s5 = scalar_lea.vmem [#allocation5], %s1808_s2  ;;  %s377_s3 = int_to_ptr.hbm [resolvable:$true] %s376_s3 }
  0x3e   : > { %s378_s20 = sshll.u32 %s370_s5, 4  ;;  %p1981_p2 = pnand %p1993_p9, %p3111_p12  ;;  %s379_s20 = int_to_ptr.vmem [resolvable:$true] %s378_s20 }
  0x3f   : > { %s367_s7 = scalar_lea.sflag [#allocation6], %s366_s24  ;;  %s2929_s25 = smov 128  }
  0x40   : > { %s2930_s6 = smov 8   ;;  %390 = sbr.rel (%p3063_p4) target bundleno = 4902 (0x1326), region = 48 }
  0x41   : > { %1983 = dma.hbm_to_vmem [thread:$0]  (!%p1981_p2), %s377_s3, 256, %s379_s20, %s367_s7, %s2929_s25, %s2929_s25, %s2930_s6  }
  0x42   : > { %s392_s9 = sand.u32 (!%p3063_p4), 1, %s2784_s13  }
  0x43   : > { %s1812_s27 = sshll.u32 (!%p3063_p4), %s392_s9, 4  ;;  %s393_s12 = scalar_lea.sflag (!%p3063_p4), [#allocation6], %s392_s9 }
  0x44   : > { %s3157_s4 = scalar_lea.vmem (!%p3063_p4), [#allocation5], %s1812_s27 }
  0x45   : > { %2747 = dma.done.wait (%p3117_p13), %s393_s12, 256  }
  0x46   : > { %2749 = vsyncadd (%p3117_p13), %s393_s12, 4294967040 }
  0x47   : > { %2751 = dma.done.wait (%p3051_p1), [#allocation9], 272  }
  0x48   : > { %2753 = vsyncadd (%p3051_p1), [#allocation9], 4294967024 }
  0x49   : > { %2755 = dma.done.wait (%p3051_p1), [#allocation12], 512  }
  0x4a   : > { %2757 = vsyncadd (%p3051_p1), [#allocation12], 4294966784 }
  0x4b   : > { %2759 = dma.done.wait (%p3051_p1), [#allocation15], 256  }
  0x4c   : > { %2761 = vsyncadd (%p3051_p1), [#allocation15], 4294967040  ;;  %s3176_s3 = sand.u32 1, %s2772_s10   ;;  %s3570_s16 = sld [smem:[#allocation24_spill]] }
  0x4d   : > { %s1818_s5 = sshll.u32 %s3176_s3, 3  ;;  %s1819_s6 = sshll.u32 %s3176_s3, 5 }
  0x4e   : > { %s3180_s26 = scalar_lea.vmem [#allocation16], %s1818_s5  ;;  %s3182_s27 = scalar_lea.vmem [#allocation17], %s1819_s6 }
  0x4f   : > { %s3184_s9 = scalar_lea.vmem [#allocation18], %s1819_s6 }
  0x52   : > { %p1821_p4 = scmp.ne.s32.totalorder %s3570_s16, 0 }
  0x53   : > { %s3571_s24 = sld [smem:[#allocation29_spill]] (!%p1821_p4)  ;;  %s2932_s2 = smov (!%p1821_p4), 112  }
  0x54   : > { %469 = sbr.rel (%p1821_p4) target bundleno = 636 (0x27c), region = 76  ;;  %s2933_s22 = smov (!%p1821_p4), 120  }
  0x55   : > { %s2934_s8 = smov (!%p1821_p4), 104  }
  0x59   : > { %v470_v0 = vld [vmem:[%s3157_s4] sm:$0xff]  ;;  %vm472_vm0 = vcmask 261120   ;;  %v471_v2 = vld [vmem:[%s3157_s4 + $0x8] sm:$0xff]  ;;  %v2931_v4 = vmov 32.0   ;;  %vm539_vm7 = vcmask 257024   ;;  %vm577_vm9 = vcmask 60416  }
  0x5a   : > { %v473_v1 = vsel %vm472_vm0, %v470_v0, 0.0  ;;  %v476_v3 = vsel %vm472_vm0, %v471_v2, 0.0  ;;  %2336 = vrcp.f32 %v2931_v4  ;;  %v1933_v21 = vld [vmem:[#allocation13 + $0x8] sm:$0xff]  ;;  %v1935_v22 = vld [vmem:[#allocation11 + $0x8] sm:$0xff]  ;;  %v1932_v24 = vld [vmem:[#allocation13] sm:$0xff] }
  0x5b   : > { %474 = vadd.xlane.f32.xlu0 %v473_v1  ;;  %567 = vmatpush.bf16.msra.mxu0 %v1933_v21  ;;  %v1934_v25 = vld [vmem:[#allocation11] sm:$0xff]  ;;  %v2334_v39 = vld [vmem:[#allocation8] ss:$0 sm:$0xff] }
  0x5c   : > { %631 = vmatpush.bf16.msra.mxu1 %v1935_v22  ;;  %v2335_v43 = vld [vmem:[%s3571_s24] ss:$0 sm:$0xff] }
  0x5f   : > { %568 = vmatpush.bf16.msra.mxu0 %v1932_v24 }
  0x60   : > { %v2337_v5 = vpop.eup %2336  ;;  %632 = vmatpush.bf16.msra.mxu1 %v1934_v25 }
  0x61   : > { %v480_v6 = vmul.f32 32.0, %v2337_v5  ;;  %vm484_vm1 = vweird.f32 %v2337_v5 }
  0x63   : > { %477 = vadd.xlane.f32.xlu0 %v476_v3  ;;  %v481_v7 = vsub.f32 1.0, %v480_v6 }
  0x65   : > { %v482_v8 = vmul.f32 %v2337_v5, %v481_v7 }
  0x67   : > { %v483_v9 = vadd.f32 %v2337_v5, %v482_v8 }
  0x69   : > { %v485_v10 = vsel %vm484_vm1, %v2337_v5, %v483_v9 }
  0xce   : > { %v475_v11 = vpop.xlane.xlu0 %474 }
  0xcf   : > { %v486_v12 = vmul.f32 %v485_v10, %v475_v11 }
  0xd1   : > { %v488_v13 = vsub.f32 %v470_v0, %v486_v12 }
  0xd3   : > { %v490_v14 = vmul.f32 %v488_v13, %v488_v13 }
  0xd5   : > { %v492_v15 = vsel %vm472_vm0, %v490_v14, 0.0 }
  0xd6   : > { %493 = vadd.xlane.f32.xlu1 %v492_v15  ;;  %v478_v16 = vpop.xlane.xlu0 %477 }
  0xd7   : > { %v487_v17 = vmul.f32 %v485_v10, %v478_v16 }
  0xd9   : > { %v489_v18 = vsub.f32 %v471_v2, %v487_v17 }
  0xdb   : > { %v491_v19 = vmul.f32 %v489_v18, %v489_v18 }
  0xdd   : > { %v495_v20 = vsel %vm472_vm0, %v491_v19, 0.0 }
  0xde   : > { %496 = vadd.xlane.f32.xlu1 %v495_v20 }
 0x149   : > { %v494_v23 = vpop.xlane.xlu1 %493 }
 0x14a   : > { %v498_v26 = vmul.f32 %v494_v23, %v485_v10 }
 0x14c   : > { %v500_v27 = vadd.f32 1e-05, %v498_v26 }
 0x14e   : > { %2338 = vrsqrt.f32 %v500_v27  ;;  %vm508_vm3 = vweird.f32 %v500_v27 }
 0x151   : > { %v497_v28 = vpop.xlane.xlu1 %496 }
 0x152   : > { %v499_v29 = vmul.f32 %v497_v28, %v485_v10 }
 0x154   : > { %v2339_v30 = vpop.eup %2338  ;;  %v501_v31 = vadd.f32 1e-05, %v499_v29 }
 0x155   : > { %v503_v32 = vmul.f32 %v2339_v30, %v500_v27  ;;  %vm509_vm2 = vweird.f32 %v2339_v30 }
 0x156   : > { %2340 = vrsqrt.f32 %v501_v31  ;;  %vm510_vm4 = vmor %vm508_vm3, %vm509_vm2  ;;  %vm518_vm6 = vweird.f32 %v501_v31 }
 0x157   : > { %v504_v33 = vmul.f32 %v2339_v30, %v503_v32 }
 0x159   : > { %v505_v34 = vmul.f32 0.5, %v504_v33 }
 0x15b   : > { %v506_v35 = vsub.f32 1.5, %v505_v34 }
 0x15c   : > { %v2341_v36 = vpop.eup %2340 }
 0x15d   : > { %v507_v37 = vmul.f32 %v2339_v30, %v506_v35  ;;  %v513_v38 = vmul.f32 %v2341_v36, %v501_v31  ;;  %vm519_vm5 = vweird.f32 %v2341_v36 }
 0x15e   : > { %vm520_vm8 = vmor %vm518_vm6, %vm519_vm5 }
 0x15f   : > { %v511_v40 = vsel %vm510_vm4, %v2339_v30, %v507_v37  ;;  %v514_v41 = vmul.f32 %v2341_v36, %v513_v38 }
 0x160   : > { %v522_v42 = vmul.f32 %v511_v40, %v488_v13 }
 0x161   : > { %v515_v44 = vmul.f32 0.5, %v514_v41 }
 0x162   : > { %v528_v45 = vmul.f32 %v2334_v39, %v522_v42 }
 0x163   : > { %v516_v46 = vsub.f32 1.5, %v515_v44 }
 0x164   : > { %v534_v47 = vadd.f32 %v2335_v43, %v528_v45 }
 0x165   : > { %v517_v48 = vmul.f32 %v2341_v36, %v516_v46 }
 0x166   : > { %v537_v49 = vpack.c.bf16 %v534_v47, %v534_v47 }
 0x167   : > { %v521_v50 = vsel %vm520_vm8, %v2341_v36, %v517_v48 }
 0x168   : > { %v523_v51 = vmul.f32 %v521_v50, %v489_v18  ;;  %540 = vst.msk [vmem:[#allocation2] sm:$0xf] %vm539_vm7, %v537_v49 }
 0x16a   : > { %v529_v52 = vmul.f32 %v2334_v39, %v523_v51 }
 0x16c   : > { %v535_v53 = vadd.f32 %v2335_v43, %v529_v52 }
 0x16e   : > { %v536_v54 = vpack.c.bf16 %v535_v53, %v534_v47  ;;  %v538_v55 = vpack.c.bf16 %v535_v53, %v535_v53 }
 0x170   : > { %541 = vst.msk [vmem:[#allocation2 + $0x4] sm:$0xf] %vm539_vm7, %v538_v55  ;;  %1830 = vmatmul.msk.bf16.vlgmr.msra.gmra.mxu0 %vm472_vm0, %v536_v54  ;;  %1839 = vmatmul.msk.bf16.vlgmr.msra.gmra.mxu1 %vm472_vm0, %v536_v54 }
 0x1ed   : > { %v570_v56 = vpop.f32.mrf.mxu0  ;;  %v634_v57 = vpop.f32.mrf.mxu1 }
 0x1ee   : > { %v575_v58 = vpack.c.bf16 %v570_v56, %v570_v56  ;;  %v639_v59 = vpack.c.bf16 %v634_v57, %v634_v57 }
 0x1f0   : > { %578 = vst.msk [vmem:[#allocation3] sm:$0xf] %vm577_vm9, %v575_v58  ;;  %591 = vrot.lane.b32.xlu0 %v575_v58, %s2932_s2  ;;  %582 = vrot.lane.b32.xlu2 %v575_v58, %s2933_s22 }
 0x1f1   : > { %641 = vst.msk [vmem:[#allocation4] sm:$0xf] %vm577_vm9, %v639_v59 }
 0x1f5   : > { %v572_v60 = vpop.f32.mrf.mxu0  ;;  %v636_v61 = vpop.f32.mrf.mxu1 }
 0x1f6   : > { %v576_v62 = vpack.c.bf16 %v572_v60, %v572_v60  ;;  %v640_v63 = vpack.c.bf16 %v636_v61, %v636_v61 }
 0x1f8   : > { %579 = vst.msk [vmem:[#allocation3 + $0x4] sm:$0xf] %vm577_vm9, %v576_v62  ;;  %647 = vrot.lane.b32.xlu0 %v640_v63, %s2933_s22  ;;  %600 = vrot.lane.b32.xlu2 %v575_v58, %s2934_s8 }
 0x1f9   : > { %642 = vst.msk [vmem:[#allocation4 + $0x4] sm:$0xf] %vm577_vm9, %v640_v63  ;;  %593 = vrot.lane.b32.xlu1 %v576_v62, %s2932_s2 }
 0x200   : > { %663 = vrot.lane.b32.xlu0 %v639_v59, %s2934_s8  ;;  %645 = vrot.lane.b32.xlu2 %v639_v59, %s2933_s22 }
 0x201   : > { %656 = vrot.lane.b32.xlu1 %v640_v63, %s2932_s2 }
 0x208   : > { %654 = vrot.lane.b32.xlu2 %v639_v59, %s2932_s2 }
 0x210   : > { %584 = vrot.lane.b32.xlu2 %v576_v62, %s2933_s22 }
 0x218   : > { %602 = vrot.lane.b32.xlu2 %v576_v62, %s2934_s8 }
 0x220   : > { %665 = vrot.lane.b32.xlu2 %v640_v63, %s2934_s8 }
 0x24a   : > { %v583_v0 = vpop.permute.xlu2 %582 }
 0x24b   : > { %589 = vst.msk [vmem:[#allocation3 + $0x8] sm:$0xf] %vm577_vm9, %v583_v0 }
 0x252   : > { %v601_v1 = vpop.permute.xlu2 %600 }
 0x253   : > { %607 = vst.msk [vmem:[#allocation3 + $0x18] sm:$0xf] %vm577_vm9, %v601_v1 }
 0x25a   : > { %v646_v2 = vpop.permute.xlu2 %645 }
 0x25b   : > { %652 = vst.msk [vmem:[#allocation4 + $0x8] sm:$0xf] %vm577_vm9, %v646_v2 }
 0x262   : > { %v592_v3 = vpop.permute.xlu0 %591  ;;  %v655_v4 = vpop.permute.xlu2 %654 }
 0x263   : > { %598 = vst.msk [vmem:[#allocation3 + $0x10] sm:$0xf] %vm577_vm9, %v592_v3 }
 0x264   : > { %661 = vst.msk [vmem:[#allocation4 + $0x10] sm:$0xf] %vm577_vm9, %v655_v4 }
 0x26a   : > { %v648_v5 = vpop.permute.xlu0 %647  ;;  %v585_v6 = vpop.permute.xlu2 %584 }
 0x26b   : > { %653 = vst.msk [vmem:[#allocation4 + $0xc] sm:$0xf] %vm577_vm9, %v648_v5  ;;  %v594_v7 = vpop.permute.xlu1 %593 }
 0x26c   : > { %599 = vst.msk [vmem:[#allocation3 + $0x14] sm:$0xf] %vm577_vm9, %v594_v7 }
 0x26d   : > { %590 = vst.msk [vmem:[#allocation3 + $0xc] sm:$0xf] %vm577_vm9, %v585_v6 }
 0x272   : > { %v664_v8 = vpop.permute.xlu0 %663  ;;  %v603_v9 = vpop.permute.xlu2 %602 }
 0x273   : > { %670 = vst.msk [vmem:[#allocation4 + $0x18] sm:$0xf] %vm577_vm9, %v664_v8  ;;  %v657_v10 = vpop.permute.xlu1 %656 }
 0x274   : > { %662 = vst.msk [vmem:[#allocation4 + $0x14] sm:$0xf] %vm577_vm9, %v657_v10 }
 0x275   : > { %608 = vst.msk [vmem:[#allocation3 + $0x1c] sm:$0xf] %vm577_vm9, %v603_v9 }
 0x27a   : > { %v666_v11 = vpop.permute.xlu2 %665 }
 0x27b   : > { %671 = vst.msk [vmem:[#allocation4 + $0x1c] sm:$0xf] %vm577_vm9, %v666_v11 }
 0x27c PF: > { %s3572_s20 = sld [smem:[#allocation24_spill]]  ;;  %v1937_v12 = vld [vmem:[#allocation10 + $0x8] sm:$0xff]  ;;  %v1936_v14 = vld [vmem:[#allocation10] sm:$0xff]  ;;  %vm694_vm10 = vcmask 261120   ;;  %v712_v16 = vlaneseq  ;;  %v2826_v24 = vmov 0.0   ;;  %v2830_v25 = vmov 0.0  }
 0x27d   : > { %704 = vmatpush.bf16.msra.mxu0 %v1937_v12  ;;  %v2834_v26 = vmov -inf  }
 0x27e   : > { %v713_v17 = vshrl.u32 %v712_v16, 7  ;;  %v3228_v20 = vand.u32 127, %v712_v16 }
 0x281   : > { %705 = vmatpush.bf16.msra.mxu0 %v1936_v14 }
 0x282   : > { %s1840_s7 = sshll.u32 %s3572_s20, 3  ;;  %s3216_s25 = sshll.u32 %s3572_s20, 2 }
 0x283   : > { %s673_s12 = scalar_lea.vmem %s3157_s4, %s1840_s7 [#allocation5]  ;;  %s676_s5 = scalar_lea.vmem [#allocation2], %s3216_s25  ;;  %v3223_v18 = vstv %s1840_s7 }
 0x284   : > { %v3219_v13 = vld [vmem:[%s673_s12] sm:$0xff]  ;;  %v3226_v19 = vadd.s32 %v3223_v18, %v713_v17  ;;  %p1851_p1 = scmp.le.s32.totalorder %s3572_s20, 0 }
 0x285   : > { %v677_v15 = vld [vmem:[%s676_s5] sm:$0xf]  ;;  %s3235_s4 = smov (!%p1851_p1), 0  }
 0x286   : > { %1850 = vmatmul.msk.bf16.vlgmr.msra.gmra.mxu0 %vm694_vm10, %v677_v15 }
 0x303   : > { %v707_v21 = vpop.f32.mrf.mxu0 }
 0x304   : > { %v3230_v22 = vpack.c.bf16 %v707_v21, %v707_v21 }
 0x307   : > { %1650 = sbr.rel (%p1851_p1) target bundleno = 1184 (0x4a0), region = 269 }
 0x30b   : > { %v709_v23 = vpop.f32.mrf.mxu0 }
 0x30c   : > { %v2810_v27 = vmov 0.0   ;;  %v2814_v28 = vmov 0.0   ;;  %v2818_v29 = vmov -inf  }
 0x30d LB: >> { %s1852_s6 = sshll.u32 %s2824_s4, 2  ;;  %vm733_vm11 = vcmask 64512   ;;  %vm773_vm12 = vcmask 1043456   ;;  %s721_s4 = sadd.s32 1, %s2824_s4   ;;  %s2824_s4 = sphi %s3235_s4, %s721_s4   ;;  %v2820_v29 = vphi %v2818_v29, %v2819_v29   ;;  %v2816_v28 = vphi %v2814_v28, %v2815_v28   ;;  %v2812_v27 = vphi %v2810_v27, %v2811_v27  }
 0x30e   : >> { %s728_s16 = scalar_lea.vmem [#allocation3], %s1852_s6  ;;  %s731_s21 = scalar_lea.vmem [#allocation4], %s1852_s6 }
 0x30f   : >> { %v729_v30 = vld [vmem:[%s728_s16] sm:$0xf]  ;;  %s3573_s29 = sld [smem:[#allocation24_spill]] }
 0x310   : >> { %v738_v31 = vsel %vm733_vm11, %v729_v30, 0  ;;  %v732_v35 = vld [vmem:[%s731_s21] sm:$0xf] }
 0x311   : >> { %747 = vmatpush.bf16.xpose.msra.mxu0 %v738_v31  ;;  %v775_v36 = vsel %vm773_vm12, %v732_v35, 0 }
 0x312   : >> { %784 = vmatpush.bf16.msra.mxu1 %v775_v36 }
 0x315   : >> { %p720_p11 = scmp.ge.s32.totalorder %s721_s4, %s3573_s29 }
 0x318   : >> { %1854 = vmatmul.msk.bf16.vlgmr.msra.gmra.mxu0 %vm733_vm11, %v3230_v22 }
 0x395   : >> { %v749_v32 = vpop.f32.mrf.mxu0 }
 0x396   : >> { %v753_v33 = vsel %vm733_vm11, %v749_v32, -inf }
 0x397   : >> { %754 = vmax.xlane.f32.xlu0 %v753_v33 }
 0x39d   : >> { %v751_v34 = vpop.f32.mrf.mxu0 }
 0x40a   : >> { %v755_v37 = vpop.xlane.xlu0 %754 }
 0x40b   : >> { %v756_v38 = vmax.f32 %v2820_v29, %v755_v37  }
 0x40d   : >> { %v757_v39 = vsub.f32 %v2820_v29, %v756_v38  ;;  %v760_v40 = vsub.f32 %v749_v32, %v756_v38  ;;  %v2819_v29 = vmov %v756_v38   ;;  %v2835_v26 = vmov (%p720_p11), %v756_v38  }
 0x40f   : >> { %v761_v41 = vmul.f32 1.442695, %v760_v40  ;;  %v758_v45 = vmul.f32 1.442695, %v757_v39 }
 0x411   : >> { %2342 = vpow2.f32 %v761_v41 }
 0x412   : >> { %2344 = vpow2.f32 %v758_v45 }
 0x417   : >> { %v2343_v42 = vpop.eup %2342 }
 0x418   : >> { %v764_v43 = vsel %vm733_vm11, %v2343_v42, 0.0  ;;  %v769_v44 = vpack.c.bf16 %v2343_v42, %v2343_v42  ;;  %v2345_v46 = vpop.eup %2344 }
 0x419   : >> { %765 = vadd.xlane.f32.xlu0 %v764_v43  ;;  %v763_v47 = vmul.f32 %v2816_v28, %v2345_v46  ;;  %v768_v50 = vmul.f32 %v2812_v27, %v2345_v46 }
 0x41a   : >> { %1855 = vmatmul.msk.bf16.vlgmr.msra.gmra.mxu1 %vm733_vm11, %v769_v44 }
 0x48c   : >> { %v766_v48 = vpop.xlane.xlu0 %765 }
 0x48d   : >> { %v767_v49 = vadd.f32 %v766_v48, %v763_v47  }
 0x48f   : >> { %v2815_v28 = vmov %v767_v49   ;;  %v2831_v25 = vmov (%p720_p11), %v767_v49  }
 0x497   : >> { %v786_v51 = vpop.f32.mrf.mxu1 }
 0x498   : >> { %v790_v52 = vadd.f32 %v786_v51, %v768_v50  }
 0x49a   : >> { %v2811_v27 = vmov %v790_v52   ;;  %v2827_v24 = vmov (%p720_p11), %v790_v52  }
 0x49b   : > { %723 = sbr.rel (!%p720_p11) target bundleno = 781 (0x30d), region = 275 }
 0x49f   : >> { %v788_v53 = vpop.f32.mrf.mxu1 }
 0x4a0 PF: > { %vm797_vm13 = vcmask 64512   ;;  %s3252_s24 = scalar_lea.vmem [#allocation3], %s3216_s25  ;;  %v3260_v56 = vadd.s32 %v3228_v20, %v3223_v18  ;;  %s3269_s2 = scalar_lea.vmem [#allocation4], %s3216_s25  ;;  %vm841_vm15 = vcmask 1043456   ;;  %v3277_v20 = vmov 0.0   ;;  %v2836_v26 = vphi %v2834_v26, %v2835_v26   ;;  %v2832_v25 = vphi %v2830_v25, %v2831_v25   ;;  %v2828_v24 = vphi %v2826_v24, %v2827_v24  }
 0x4a1   : > { %v793_v54 = vld [vmem:[%s3252_s24] sm:$0xf]  ;;  %v3279_v21 = vmov 0.0   ;;  %v3281_v23 = vmov -inf   ;;  %s3285_s8 = smov (!%p1851_p1), 0  }
 0x4a2   : > { %v802_v55 = vsel %vm797_vm13, %v793_v54, 0  ;;  %vm819_vm14 = vcmp.le.s32.totalorder %v3260_v56, %v3226_v19  ;;  %v796_v61 = vld [vmem:[%s3269_s2] sm:$0xf] }
 0x4a3   : > { %811 = vmatpush.bf16.xpose.msra.mxu0 %v802_v55  ;;  %v843_v62 = vsel %vm841_vm15, %v796_v61, 0 }
 0x4a4   : > { %852 = vmatpush.bf16.msra.mxu1 %v843_v62 }
 0x4aa   : > { %1858 = vmatmul.msk.bf16.vlgmr.msra.gmra.mxu0 %vm797_vm13, %v3230_v22 }
 0x527   : > { %v813_v57 = vpop.f32.mrf.mxu0 }
 0x528   : > { %v820_v58 = vsel %vm819_vm14, %v813_v57, -inf }
 0x529   : > { %v821_v59 = vsel %vm797_vm13, %v820_v58, -inf }
 0x52a   : > { %822 = vmax.xlane.f32.xlu0 %v821_v59 }
 0x52f   : > { %v815_v60 = vpop.f32.mrf.mxu0 }
 0x59d   : > { %v823_v63 = vpop.xlane.xlu0 %822 }
 0x59e   : > { %v824_v0 = vmax.f32 %v2836_v26, %v823_v63 }
 0x5a0   : > { %v828_v1 = vsub.f32 %v820_v58, %v824_v0  ;;  %v825_v6 = vsub.f32 %v2836_v26, %v824_v0 }
 0x5a2   : > { %v829_v2 = vmul.f32 1.442695, %v828_v1  ;;  %v826_v7 = vmul.f32 1.442695, %v825_v6 }
 0x5a4   : > { %2346 = vpow2.f32 %v829_v2 }
 0x5a5   : > { %2348 = vpow2.f32 %v826_v7 }
 0x5aa   : > { %v2347_v3 = vpop.eup %2346 }
 0x5ab   : > { %v832_v4 = vsel %vm797_vm13, %v2347_v3, 0.0  ;;  %v837_v5 = vpack.c.bf16 %v2347_v3, %v2347_v3  ;;  %v2349_v8 = vpop.eup %2348 }
 0x5ac   : > { %833 = vadd.xlane.f32.xlu0 %v832_v4  ;;  %v831_v10 = vmul.f32 %v2832_v25, %v2349_v8  ;;  %v836_v12 = vmul.f32 %v2828_v24, %v2349_v8 }
 0x5ad   : > { %1859 = vmatmul.msk.bf16.vlgmr.msra.gmra.mxu1 %vm797_vm13, %v837_v5 }
 0x61f   : > { %v834_v9 = vpop.xlane.xlu0 %833 }
 0x620   : > { %v835_v11 = vadd.f32 %v834_v9, %v831_v10 }
 0x622   : > { %2350 = vrcp.f32 %v835_v11 }
 0x628   : > { %v2351_v16 = vpop.eup %2350 }
 0x62a   : > { %v854_v14 = vpop.f32.mrf.mxu1 }
 0x62b   : > { %v858_v15 = vadd.f32 %v854_v14, %v836_v12 }
 0x62d   : > { %v3275_v17 = vmul.f32 %v2351_v16, %v858_v15 }
 0x62e   : > { %1664 = sbr.rel (%p1851_p1) target bundleno = 2099 (0x833), region = 280 }
 0x632   : > { %v856_v18 = vpop.f32.mrf.mxu1 }
 0x633   : > { %v2838_v26 = vmov 0.0   ;;  %v2842_v25 = vmov 0.0   ;;  %v2846_v27 = vmov -inf  }
 0x634 LB: >> { %v878_v24 = vunpack.c.l.b16 %v3230_v22  ;;  %s1861_s20 = sshll.u32 %s2852_s8, 2  ;;  %s2935_s7 = smov 120   ;;  %s2852_s8 = sphi %s3285_s8, %s864_s8   ;;  %v2848_v27 = vphi %v2846_v27, %v2847_v27   ;;  %v2844_v25 = vphi %v2842_v25, %v2843_v25   ;;  %v2840_v26 = vphi %v2838_v26, %v2839_v26  }
 0x635   : >> { %s1576_s25 = scalar_lea.vmem [#allocation3], %s1861_s20  ;;  %s1579_s12 = scalar_lea.vmem [#allocation4], %s1861_s20 }
 0x636   : >> { %v879_v28 = vpack.c.b16 %v878_v24, %v878_v24  ;;  %v1862_v29 = vld [vmem:[%s1576_s25 + $0x8] sm:$0xf]  ;;  %s864_s8 = sadd.s32 1, %s2852_s8   ;;  %s3575_s5 = sld [smem:[#allocation24_spill]] }
 0x637   : >> { %v886_v30 = vsel %vm797_vm13, %v1862_v29, 0  ;;  %v1864_v35 = vld [vmem:[%s1579_s12 + $0x8] sm:$0xf] }
 0x638   : >> { %880 = vrot.lane.b32.xlu0 %v879_v28, %s2935_s7  ;;  %895 = vmatpush.bf16.xpose.msra.mxu0 %v886_v30  ;;  %v922_v36 = vsel %vm841_vm15, %v1864_v35, 0 }
 0x639   : >> { %931 = vmatpush.bf16.msra.mxu1 %v922_v36 }
 0x63c   : >> { %p863_p12 = scmp.ge.s32.totalorder %s864_s8, %s3575_s5 }
 0x6aa   : >> { %v881_v31 = vpop.permute.xlu0 %880 }
 0x6ab   : >> { %1865 = vmatmul.msk.bf16.vlgmr.msra.gmra.mxu0 %vm797_vm13, %v881_v31 }
 0x728   : >> { %v897_v32 = vpop.f32.mrf.mxu0 }
 0x729   : >> { %v901_v33 = vsel %vm797_vm13, %v897_v32, -inf }
 0x72a   : >> { %902 = vmax.xlane.f32.xlu0 %v901_v33 }
 0x730   : >> { %v899_v34 = vpop.f32.mrf.mxu0 }
 0x79d   : >> { %v903_v37 = vpop.xlane.xlu0 %902 }
 0x79e   : >> { %v904_v38 = vmax.f32 %v2848_v27, %v903_v37  }
 0x7a0   : >> { %v905_v39 = vsub.f32 %v2848_v27, %v904_v38  ;;  %v908_v40 = vsub.f32 %v897_v32, %v904_v38  ;;  %v2847_v27 = vmov %v904_v38   ;;  %v3578_v23 = vmov (%p863_p12), %v904_v38 }
 0x7a2   : >> { %v909_v41 = vmul.f32 1.442695, %v908_v40  ;;  %v906_v45 = vmul.f32 1.442695, %v905_v39 }
 0x7a4   : >> { %2352 = vpow2.f32 %v909_v41 }
 0x7a5   : >> { %2354 = vpow2.f32 %v906_v45 }
 0x7aa   : >> { %v2353_v42 = vpop.eup %2352 }
 0x7ab   : >> { %v912_v43 = vsel %vm797_vm13, %v2353_v42, 0.0  ;;  %v917_v44 = vpack.c.bf16 %v2353_v42, %v2353_v42  ;;  %v2355_v46 = vpop.eup %2354 }
 0x7ac   : >> { %913 = vadd.xlane.f32.xlu1 %v912_v43  ;;  %v911_v47 = vmul.f32 %v2844_v25, %v2355_v46  ;;  %v916_v50 = vmul.f32 %v2840_v26, %v2355_v46 }
 0x7ad   : >> { %1866 = vmatmul.msk.bf16.vlgmr.msra.gmra.mxu1 %vm797_vm13, %v917_v44 }
 0x81f   : >> { %v914_v48 = vpop.xlane.xlu1 %913 }
 0x820   : >> { %v915_v49 = vadd.f32 %v914_v48, %v911_v47  }
 0x822   : >> { %v2843_v25 = vmov %v915_v49   ;;  %v3577_v21 = vmov (%p863_p12), %v915_v49 }
 0x82a   : >> { %v933_v51 = vpop.f32.mrf.mxu1 }
 0x82b   : >> { %v937_v52 = vadd.f32 %v933_v51, %v916_v50  }
 0x82d   : >> { %v2839_v26 = vmov %v937_v52   ;;  %v3576_v20 = vmov (%p863_p12), %v937_v52 }
 0x82e   : > { %866 = sbr.rel (!%p863_p12) target bundleno = 1588 (0x634), region = 286 }
 0x832   : >> { %v935_v53 = vpop.f32.mrf.mxu1 }
 0x833 PF: > { %v946_v54 = vunpack.c.l.b16 %v3230_v22  ;;  %v1868_v55 = vld [vmem:[%s3252_s24 + $0x8] sm:$0xf]  ;;  %s2936_s4 = smov 120   ;;  %v3328_v24 = vmov 0.0   ;;  %v3330_v28 = vmov 0.0   ;;  %s3336_s16 = smov (!%p1851_p1), 0   ;;  %v2864_v23 = vphi %v3281_v23, %v3578_v23   ;;  %v2860_v21 = vphi %v3279_v21, %v3577_v21   ;;  %v2856_v20 = vphi %v3277_v20, %v3576_v20  }
 0x834   : > { %v954_v57 = vsel %vm797_vm13, %v1868_v55, 0  ;;  %v1870_v63 = vld [vmem:[%s3269_s2 + $0x8] sm:$0xf] }
 0x835   : > { %v3314_v58 = vpack.c.b16 %v946_v54, %v946_v54  ;;  %963 = vmatpush.bf16.xpose.msra.mxu0 %v954_v57  ;;  %v991_v0 = vsel %vm841_vm15, %v1870_v63, 0 }
 0x836   : > { %1000 = vmatpush.bf16.msra.mxu1 %v991_v0 }
 0x837   : > { %948 = vrot.lane.b32.xlu0 %v3314_v58, %s2936_s4 }
 0x8a9   : > { %v949_v59 = vpop.permute.xlu0 %948 }
 0x8aa   : > { %1871 = vmatmul.msk.bf16.vlgmr.msra.gmra.mxu0 %vm797_vm13, %v949_v59 }
 0x927   : > { %v965_v60 = vpop.f32.mrf.mxu0 }
 0x928   : > { %v969_v61 = vsel %vm819_vm14, %v965_v60, -inf }
 0x929   : > { %v970_v62 = vsel %vm797_vm13, %v969_v61, -inf }
 0x92a   : > { %971 = vmax.xlane.f32.xlu0 %v970_v62 }
 0x92f   : > { %v967_v22 = vpop.f32.mrf.mxu0 }
 0x99d   : > { %v972_v1 = vpop.xlane.xlu0 %971 }
 0x99e   : > { %v973_v2 = vmax.f32 %v2864_v23, %v972_v1 }
 0x9a0   : > { %v977_v3 = vsub.f32 %v969_v61, %v973_v2  ;;  %v974_v8 = vsub.f32 %v2864_v23, %v973_v2  ;;  %v3332_v23 = vmov -inf  }
 0x9a2   : > { %v978_v4 = vmul.f32 1.442695, %v977_v3  ;;  %v975_v9 = vmul.f32 1.442695, %v974_v8 }
 0x9a4   : > { %2356 = vpow2.f32 %v978_v4 }
 0x9a5   : > { %2358 = vpow2.f32 %v975_v9 }
 0x9aa   : > { %v2357_v5 = vpop.eup %2356 }
 0x9ab   : > { %v981_v6 = vsel %vm797_vm13, %v2357_v5, 0.0  ;;  %v986_v7 = vpack.c.bf16 %v2357_v5, %v2357_v5  ;;  %v2359_v10 = vpop.eup %2358 }
 0x9ac   : > { %982 = vadd.xlane.f32.xlu1 %v981_v6  ;;  %v980_v12 = vmul.f32 %v2860_v21, %v2359_v10  ;;  %v985_v15 = vmul.f32 %v2856_v20, %v2359_v10 }
 0x9ad   : > { %1872 = vmatmul.msk.bf16.vlgmr.msra.gmra.mxu1 %vm797_vm13, %v986_v7 }
 0xa1f   : > { %v983_v11 = vpop.xlane.xlu1 %982 }
 0xa20   : > { %v984_v14 = vadd.f32 %v983_v11, %v980_v12 }
 0xa22   : > { %2360 = vrcp.f32 %v984_v14 }
 0xa28   : > { %v2361_v26 = vpop.eup %2360 }
 0xa2a   : > { %v1002_v16 = vpop.f32.mrf.mxu1 }
 0xa2b   : > { %v1006_v18 = vadd.f32 %v1002_v16, %v985_v15 }
 0xa2d   : > { %v3326_v25 = vmul.f32 %v2361_v26, %v1006_v18 }
 0xa2e   : > { %1678 = sbr.rel (%p1851_p1) target bundleno = 3120 (0xc30), region = 291 }
 0xa32   : > { %v1004_v27 = vpop.f32.mrf.mxu1 }
 0xa33   : > { %v2866_v29 = vmov 0.0   ;;  %v2870_v21 = vmov 0.0   ;;  %v2874_v30 = vmov -inf  }
 0xa34 LB: >> { %s2937_s21 = smov 112   ;;  %s1874_s29 = sshll.u32 %s2880_s16, 2  ;;  %s2880_s16 = sphi %s3336_s16, %s1012_s16   ;;  %v2876_v30 = vphi %v2874_v30, %v2875_v30   ;;  %v2872_v21 = vphi %v2870_v21, %v2871_v21   ;;  %v2868_v29 = vphi %v2866_v29, %v2867_v29  }
 0xa35   : >> { %1025 = vrot.lane.b32.xlu0 %v3314_v58, %s2937_s21  ;;  %s1588_s22 = scalar_lea.vmem [#allocation3], %s1874_s29  ;;  %s1591_s8 = scalar_lea.vmem [#allocation4], %s1874_s29 }
 0xa36   : >> { %v1875_v20 = vld [vmem:[%s1588_s22 + $0x10] sm:$0xf]  ;;  %s1012_s16 = sadd.s32 1, %s2880_s16   ;;  %s3580_s20 = sld [smem:[#allocation24_spill]] }
 0xa37   : >> { %v1031_v31 = vsel %vm797_vm13, %v1875_v20, 0  ;;  %v1877_v36 = vld [vmem:[%s1591_s8 + $0x10] sm:$0xf] }
 0xa38   : >> { %1040 = vmatpush.bf16.xpose.msra.mxu0 %v1031_v31  ;;  %v1067_v37 = vsel %vm841_vm15, %v1877_v36, 0 }
 0xa39   : >> { %1076 = vmatpush.bf16.msra.mxu1 %v1067_v37 }
 0xa3c   : >> { %p1011_p13 = scmp.ge.s32.totalorder %s1012_s16, %s3580_s20 }
 0xaa7   : >> { %v1026_v32 = vpop.permute.xlu0 %1025 }
 0xaa8   : >> { %1878 = vmatmul.msk.bf16.vlgmr.msra.gmra.mxu0 %vm797_vm13, %v1026_v32 }
 0xb25   : >> { %v1042_v33 = vpop.f32.mrf.mxu0 }
 0xb26   : >> { %v1046_v34 = vsel %vm797_vm13, %v1042_v33, -inf }
 0xb27   : >> { %1047 = vmax.xlane.f32.xlu0 %v1046_v34 }
 0xb2d   : >> { %v1044_v35 = vpop.f32.mrf.mxu0 }
 0xb9a   : >> { %v1048_v38 = vpop.xlane.xlu0 %1047 }
 0xb9b   : >> { %v1049_v39 = vmax.f32 %v2876_v30, %v1048_v38  }
 0xb9d   : >> { %v1050_v40 = vsub.f32 %v2876_v30, %v1049_v39  ;;  %v1053_v41 = vsub.f32 %v1042_v33, %v1049_v39  ;;  %v2875_v30 = vmov %v1049_v39   ;;  %v3583_v23 = vmov (%p1011_p13), %v1049_v39 }
 0xb9f   : >> { %v1054_v42 = vmul.f32 1.442695, %v1053_v41  ;;  %v1051_v46 = vmul.f32 1.442695, %v1050_v40 }
 0xba1   : >> { %2362 = vpow2.f32 %v1054_v42 }
 0xba2   : >> { %2364 = vpow2.f32 %v1051_v46 }
 0xba7   : >> { %v2363_v43 = vpop.eup %2362 }
 0xba8   : >> { %v1057_v44 = vsel %vm797_vm13, %v2363_v43, 0.0  ;;  %v1062_v45 = vpack.c.bf16 %v2363_v43, %v2363_v43  ;;  %v2365_v47 = vpop.eup %2364 }
 0xba9   : >> { %1058 = vadd.xlane.f32.xlu1 %v1057_v44  ;;  %v1056_v48 = vmul.f32 %v2872_v21, %v2365_v47  ;;  %v1061_v51 = vmul.f32 %v2868_v29, %v2365_v47 }
 0xbaa   : >> { %1879 = vmatmul.msk.bf16.vlgmr.msra.gmra.mxu1 %vm797_vm13, %v1062_v45 }
 0xc1c   : >> { %v1059_v49 = vpop.xlane.xlu1 %1058 }
 0xc1d   : >> { %v1060_v50 = vadd.f32 %v1059_v49, %v1056_v48  }
 0xc1f   : >> { %v2871_v21 = vmov %v1060_v50   ;;  %v3582_v28 = vmov (%p1011_p13), %v1060_v50 }
 0xc27   : >> { %v1078_v52 = vpop.f32.mrf.mxu1 }
 0xc28   : >> { %v1082_v53 = vadd.f32 %v1078_v52, %v1061_v51  }
 0xc2a   : >> { %v2867_v29 = vmov %v1082_v53   ;;  %v3581_v24 = vmov (%p1011_p13), %v1082_v53 }
 0xc2b   : > { %1014 = sbr.rel (!%p1011_p13) target bundleno = 2612 (0xa34), region = 297 }
 0xc2f   : >> { %v1080_v54 = vpop.f32.mrf.mxu1 }
 0xc30 PF: > { %v1881_v55 = vld [vmem:[%s3252_s24 + $0x10] sm:$0xf]  ;;  %s2938_s7 = smov 112   ;;  %v3376_v21 = vmov 0.0   ;;  %v3378_v30 = vmov 0.0   ;;  %s3384_s12 = smov (!%p1851_p1), 0   ;;  %v2892_v23 = vphi %v3332_v23, %v3583_v23   ;;  %v2888_v28 = vphi %v3330_v28, %v3582_v28   ;;  %v2884_v24 = vphi %v3328_v24, %v3581_v24  }
 0xc31   : > { %1090 = vrot.lane.b32.xlu0 %v3314_v58, %s2938_s7  ;;  %v1096_v57 = vsel %vm797_vm13, %v1881_v55, 0  ;;  %v1883_v63 = vld [vmem:[%s3269_s2 + $0x10] sm:$0xf] }
 0xc32   : > { %1105 = vmatpush.bf16.xpose.msra.mxu0 %v1096_v57  ;;  %v1133_v0 = vsel %vm841_vm15, %v1883_v63, 0 }
 0xc33   : > { %1142 = vmatpush.bf16.msra.mxu1 %v1133_v0 }
 0xca3   : > { %v1091_v59 = vpop.permute.xlu0 %1090 }
 0xca4   : > { %1884 = vmatmul.msk.bf16.vlgmr.msra.gmra.mxu0 %vm797_vm13, %v1091_v59 }
 0xd21   : > { %v1107_v60 = vpop.f32.mrf.mxu0 }
 0xd22   : > { %v1111_v61 = vsel %vm819_vm14, %v1107_v60, -inf }
 0xd23   : > { %v1112_v62 = vsel %vm797_vm13, %v1111_v61, -inf }
 0xd24   : > { %1113 = vmax.xlane.f32.xlu0 %v1112_v62 }
 0xd29   : > { %v1109_v22 = vpop.f32.mrf.mxu0 }
 0xd97   : > { %v1114_v1 = vpop.xlane.xlu0 %1113 }
 0xd98   : > { %v1115_v2 = vmax.f32 %v2892_v23, %v1114_v1 }
 0xd9a   : > { %v1119_v3 = vsub.f32 %v1111_v61, %v1115_v2  ;;  %v1116_v8 = vsub.f32 %v2892_v23, %v1115_v2  ;;  %v3380_v23 = vmov -inf  }
 0xd9c   : > { %v1120_v4 = vmul.f32 1.442695, %v1119_v3  ;;  %v1117_v9 = vmul.f32 1.442695, %v1116_v8 }
 0xd9e   : > { %2366 = vpow2.f32 %v1120_v4 }
 0xd9f   : > { %2368 = vpow2.f32 %v1117_v9 }
 0xda4   : > { %v2367_v5 = vpop.eup %2366 }
 0xda5   : > { %v1123_v6 = vsel %vm797_vm13, %v2367_v5, 0.0  ;;  %v1128_v7 = vpack.c.bf16 %v2367_v5, %v2367_v5  ;;  %v2369_v10 = vpop.eup %2368 }
 0xda6   : > { %1124 = vadd.xlane.f32.xlu1 %v1123_v6  ;;  %v1122_v12 = vmul.f32 %v2888_v28, %v2369_v10  ;;  %v1127_v15 = vmul.f32 %v2884_v24, %v2369_v10 }
 0xda7   : > { %1885 = vmatmul.msk.bf16.vlgmr.msra.gmra.mxu1 %vm797_vm13, %v1128_v7 }
 0xe19   : > { %v1125_v11 = vpop.xlane.xlu1 %1124 }
 0xe1a   : > { %v1126_v14 = vadd.f32 %v1125_v11, %v1122_v12 }
 0xe1c   : > { %2370 = vrcp.f32 %v1126_v14 }
 0xe22   : > { %v2371_v26 = vpop.eup %2370 }
 0xe24   : > { %v1144_v16 = vpop.f32.mrf.mxu1 }
 0xe25   : > { %v1148_v18 = vadd.f32 %v1144_v16, %v1127_v15 }
 0xe27   : > { %v3374_v27 = vmul.f32 %v2371_v26, %v1148_v18 }
 0xe28   : > { %1692 = sbr.rel (%p1851_p1) target bundleno = 4138 (0x102a), region = 302 }
 0xe2c   : > { %v1146_v29 = vpop.f32.mrf.mxu1 }
 0xe2d   : > { %v2894_v20 = vmov 0.0   ;;  %v2898_v28 = vmov 0.0   ;;  %v2902_v31 = vmov -inf  }
 0xe2e LB: >> { %s2939_s5 = smov 104   ;;  %s1887_s4 = sshll.u32 %s2908_s12, 2  ;;  %s2908_s12 = sphi %s3384_s12, %s1154_s12   ;;  %v2904_v31 = vphi %v2902_v31, %v2903_v31   ;;  %v2900_v28 = vphi %v2898_v28, %v2899_v28   ;;  %v2896_v20 = vphi %v2894_v20, %v2895_v20  }
 0xe2f   : >> { %1167 = vrot.lane.b32.xlu0 %v3314_v58, %s2939_s5  ;;  %s1600_s6 = scalar_lea.vmem [#allocation3], %s1887_s4  ;;  %s1603_s16 = scalar_lea.vmem [#allocation4], %s1887_s4 }
 0xe30   : >> { %v1888_v24 = vld [vmem:[%s1600_s6 + $0x18] sm:$0xf]  ;;  %s1154_s12 = sadd.s32 1, %s2908_s12   ;;  %s3585_s21 = sld [smem:[#allocation24_spill]] }
 0xe31   : >> { %v1173_v32 = vsel %vm797_vm13, %v1888_v24, 0  ;;  %v1890_v37 = vld [vmem:[%s1603_s16 + $0x18] sm:$0xf] }
 0xe32   : >> { %1182 = vmatpush.bf16.xpose.msra.mxu0 %v1173_v32  ;;  %v1209_v38 = vsel %vm841_vm15, %v1890_v37, 0 }
 0xe33   : >> { %1218 = vmatpush.bf16.msra.mxu1 %v1209_v38 }
 0xe36   : >> { %p1153_p0 = scmp.ge.s32.totalorder %s1154_s12, %s3585_s21 }
 0xea1   : >> { %v1168_v33 = vpop.permute.xlu0 %1167 }
 0xea2   : >> { %1891 = vmatmul.msk.bf16.vlgmr.msra.gmra.mxu0 %vm797_vm13, %v1168_v33 }
 0xf1f   : >> { %v1184_v34 = vpop.f32.mrf.mxu0 }
 0xf20   : >> { %v1188_v35 = vsel %vm797_vm13, %v1184_v34, -inf }
 0xf21   : >> { %1189 = vmax.xlane.f32.xlu0 %v1188_v35 }
 0xf27   : >> { %v1186_v36 = vpop.f32.mrf.mxu0 }
 0xf94   : >> { %v1190_v39 = vpop.xlane.xlu0 %1189 }
 0xf95   : >> { %v1191_v40 = vmax.f32 %v2904_v31, %v1190_v39  }
 0xf97   : >> { %v1192_v41 = vsub.f32 %v2904_v31, %v1191_v40  ;;  %v1195_v42 = vsub.f32 %v1184_v34, %v1191_v40  ;;  %v2903_v31 = vmov %v1191_v40   ;;  %v3588_v23 = vmov (%p1153_p0), %v1191_v40 }
 0xf99   : >> { %v1196_v43 = vmul.f32 1.442695, %v1195_v42  ;;  %v1193_v47 = vmul.f32 1.442695, %v1192_v41 }
 0xf9b   : >> { %2372 = vpow2.f32 %v1196_v43 }
 0xf9c   : >> { %2374 = vpow2.f32 %v1193_v47 }
 0xfa1   : >> { %v2373_v44 = vpop.eup %2372 }
 0xfa2   : >> { %v1199_v45 = vsel %vm797_vm13, %v2373_v44, 0.0  ;;  %v1204_v46 = vpack.c.bf16 %v2373_v44, %v2373_v44  ;;  %v2375_v48 = vpop.eup %2374 }
 0xfa3   : >> { %1200 = vadd.xlane.f32.xlu1 %v1199_v45  ;;  %v1198_v49 = vmul.f32 %v2900_v28, %v2375_v48  ;;  %v1203_v52 = vmul.f32 %v2896_v20, %v2375_v48 }
 0xfa4   : >> { %1892 = vmatmul.msk.bf16.vlgmr.msra.gmra.mxu1 %vm797_vm13, %v1204_v46 }
0x1016   : >> { %v1201_v50 = vpop.xlane.xlu1 %1200 }
0x1017   : >> { %v1202_v51 = vadd.f32 %v1201_v50, %v1198_v49  }
0x1019   : >> { %v2899_v28 = vmov %v1202_v51   ;;  %v3587_v30 = vmov (%p1153_p0), %v1202_v51 }
0x1021   : >> { %v1220_v53 = vpop.f32.mrf.mxu1 }
0x1022   : >> { %v1224_v54 = vadd.f32 %v1220_v53, %v1203_v52  }
0x1024   : >> { %v2895_v20 = vmov %v1224_v54   ;;  %v3586_v21 = vmov (%p1153_p0), %v1224_v54 }
0x1025   : > { %1156 = sbr.rel (!%p1153_p0) target bundleno = 3630 (0xe2e), region = 308 }
0x1029   : >> { %v1222_v55 = vpop.f32.mrf.mxu1 }
0x102a PF: > { %v1894_v57 = vld [vmem:[%s3252_s24 + $0x18] sm:$0xf]  ;;  %s2940_s29 = smov 104   ;;  %s2941_s22 = smov 16   ;;  %v1939_v8 = vld [vmem:[#allocation14 + $0x8] sm:$0xff]  ;;  %vm1306_vm0 = vcmask 130048   ;;  %v2920_v23 = vphi %v3380_v23, %v3588_v23   ;;  %v2916_v30 = vphi %v3378_v30, %v3587_v30   ;;  %v2912_v21 = vphi %v3376_v21, %v3586_v21  }
0x102b   : > { %1232 = vrot.lane.b32.xlu0 %v3314_v58, %s2940_s29  ;;  %v1238_v59 = vsel %vm797_vm13, %v1894_v57, 0  ;;  %v1896_v0 = vld [vmem:[%s3269_s2 + $0x18] sm:$0xf]  ;;  %1298 = vrot.lane.b32.xlu2 %v3374_v27, %s2941_s22  ;;  %s2942_s8 = smov 8   ;;  %s2943_s20 = smov 24   ;;  %vm1308_vm1 = vcmask 195584  }
0x102c   : > { %1247 = vmatpush.bf16.xpose.msra.mxu0 %v1238_v59  ;;  %v1275_v1 = vsel %vm841_vm15, %v1896_v0, 0  ;;  %1336 = vmatpush.bf16.msra.mxu2 %v1939_v8  ;;  %v1938_v27 = vld [vmem:[#allocation14] sm:$0xff]  ;;  %v1908_v33 = vld [vmem:[%s3252_s24 + $0x8] sm:$0xf]  ;;  %v1912_v37 = vld [vmem:[%s3252_s24 + $0x10] sm:$0xf] }
0x102d   : > { %1284 = vmatpush.bf16.msra.mxu1 %v1275_v1  ;;  %v1344_v24 = vld [vmem:[%s3252_s24] sm:$0xf]  ;;  %v1351_v35 = vunpack.c.l.bf16 %v1908_v33  ;;  %v1910_v36 = vld [vmem:[%s3269_s2 + $0x8] sm:$0xf]  ;;  %v1914_v38 = vld [vmem:[%s3269_s2 + $0x10] sm:$0xf]  ;;  %v1359_v41 = vunpack.c.l.bf16 %v1912_v37 }
0x102e   : > { %v1347_v32 = vld [vmem:[%s3269_s2] sm:$0xf]  ;;  %v1345_v34 = vunpack.c.l.bf16 %v1344_v24  ;;  %s3589_s7 = sld [smem:[#allocation25_spill]]  ;;  %v1355_v39 = vunpack.c.l.bf16 %v1910_v36  ;;  %v1916_v40 = vld [vmem:[%s3252_s24 + $0x18] sm:$0xf]  ;;  %v1363_v43 = vunpack.c.l.bf16 %v1914_v38  ;;  %s1397_s21 = sshll.u32 %s3180_s26, 4  ;;  %s1398_s21 = int_to_ptr.vmem [resolvable:$true] %s1397_s21 }
0x102f   : > { %s3590_s25 = sld [smem:[#allocation24_spill]]  ;;  %v1918_v42 = vld [vmem:[%s3269_s2 + $0x18] sm:$0xf]  ;;  %1909 = vst.msk [vmem:[%s3182_s27 + $0x8] sm:$0xff] %vm797_vm13, %v1351_v35  ;;  %v1367_v44 = vunpack.c.l.bf16 %v1916_v40  ;;  %s1375_s22 = scalar_lea.sflag [#allocation7], %s3176_s3 }
0x1030   : > { %1337 = vmatpush.bf16.msra.mxu2 %v1938_v27  ;;  %1346 = vst.msk [vmem:[%s3182_s27] sm:$0xff] %vm797_vm13, %v1345_v34  ;;  %v1371_v45 = vunpack.c.l.bf16 %v1918_v42  ;;  %s3591_s6 = sld [smem:[#allocation34_spill]] }
0x1031   : > { %1911 = vst.msk [vmem:[%s3184_s9 + $0x8] sm:$0xff] %vm797_vm13, %v1355_v39 }
0x1032   : > { %1913 = vst.msk [vmem:[%s3182_s27 + $0x10] sm:$0xff] %vm797_vm13, %v1359_v41 }
0x1033   : > { %1915 = vst.msk [vmem:[%s3184_s9 + $0x10] sm:$0xff] %vm797_vm13, %v1363_v43 }
0x1034   : > { %1917 = vst.msk [vmem:[%s3182_s27 + $0x18] sm:$0xff] %vm797_vm13, %v1367_v44  ;;  %s1923_s24 = sshll.u32 %s3589_s7, 1 }
0x1035   : > { %1919 = vst.msk [vmem:[%s3184_s9 + $0x18] sm:$0xff] %vm797_vm13, %v1371_v45  ;;  %s1393_s2 = sadd.s32 %s3590_s25, %s1923_s24 }
0x1036   : > { %s1924_s12 = sshll.u32 %s1393_s2, 3  ;;  %s2582_s24 = scalar_lea.hbm %s3591_s6, 32 }
0x1037   : > { %s1395_s16 = scalar_lea.hbm %s3591_s6, %s1924_s12 }
0x1038   : > { %s1399_s29 = sshll.u32 %s1395_s16, 4  ;;  %s1400_s29 = int_to_ptr.hbm [resolvable:$true] %s1399_s29 }
0x1085   : > { %v1299_v29 = vpop.permute.xlu2 %1298 }
0x109d   : > { %v1233_v60 = vpop.permute.xlu0 %1232 }
0x109e   : > { %1897 = vmatmul.msk.bf16.vlgmr.msra.gmra.mxu0 %vm797_vm13, %v1233_v60 }
0x111b   : > { %v1249_v61 = vpop.f32.mrf.mxu0 }
0x111c   : > { %v1253_v62 = vsel %vm819_vm14, %v1249_v61, -inf }
0x111d   : > { %v1254_v22 = vsel %vm797_vm13, %v1253_v62, -inf }
0x111e   : > { %1255 = vmax.xlane.f32.xlu0 %v1254_v22 }
0x1123   : > { %v1251_v63 = vpop.f32.mrf.mxu0 }
0x1191   : > { %v1256_v58 = vpop.xlane.xlu0 %1255 }
0x1192   : > { %v1257_v2 = vmax.f32 %v2920_v23, %v1256_v58 }
0x1194   : > { %v1261_v3 = vsub.f32 %v1253_v62, %v1257_v2  ;;  %v1258_v6 = vsub.f32 %v2920_v23, %v1257_v2 }
0x1196   : > { %v1262_v4 = vmul.f32 1.442695, %v1261_v3  ;;  %v1259_v7 = vmul.f32 1.442695, %v1258_v6 }
0x1198   : > { %2376 = vpow2.f32 %v1262_v4 }
0x1199   : > { %2378 = vpow2.f32 %v1259_v7 }
0x119e   : > { %v2377_v5 = vpop.eup %2376 }
0x119f   : > { %v1265_v19 = vsel %vm797_vm13, %v2377_v5, 0.0  ;;  %v1270_v56 = vpack.c.bf16 %v2377_v5, %v2377_v5  ;;  %v2379_v9 = vpop.eup %2378 }
0x11a0   : > { %1266 = vadd.xlane.f32.xlu1 %v1265_v19  ;;  %v1264_v11 = vmul.f32 %v2916_v30, %v2379_v9  ;;  %v1269_v14 = vmul.f32 %v2912_v21, %v2379_v9 }
0x11a1   : > { %1898 = vmatmul.msk.bf16.vlgmr.msra.gmra.mxu1 %vm797_vm13, %v1270_v56 }
0x11b9   : > { %1294 = vrot.lane.b32.xlu1 %v3326_v25, %s2942_s8  ;;  %s2576_s8 = sshra.s32 %s1400_s29, 4  ;;  %s2577_s8 = int_to_ptr.hbm [resolvable:$true] %s2576_s8 }
0x11ba   : > { %p2583_p8 = scmp.lt.s32.totalorder %s2577_s8, %s3591_s6 }
0x1213   : > { %v1267_v10 = vpop.xlane.xlu1 %1266 }
0x1214   : > { %v1268_v12 = vadd.f32 %v1267_v10, %v1264_v11 }
0x1216   : > { %2380 = vrcp.f32 %v1268_v12 }
0x121c   : > { %v2381_v18 = vpop.eup %2380 }
0x121e   : > { %v1286_v15 = vpop.f32.mrf.mxu1 }
0x121f   : > { %v1290_v16 = vadd.f32 %v1286_v15, %v1269_v14 }
0x1221   : > { %v1292_v26 = vmul.f32 %v2381_v18, %v1290_v16 }
0x1223   : > { %1302 = vrot.lane.b32.xlu2 %v1292_v26, %s2943_s20  ;;  %s2578_s20 = scalar_lea.hbm %s2577_s8, 8 }
0x1224   : > { %p2579_p3 = scmp.ne.s32.totalorder %s2577_s8, %s2578_s20  ;;  %p2584_p9 = scmp.lt.s32.totalorder %s2582_s24, %s2578_s20 }
0x1226   : > { %v1288_v25 = vpop.f32.mrf.mxu1  ;;  %p2580_p5 = pnand %p2579_p3, %p3132_p7  ;;  %p2585_p2 = por %p2584_p9, %p2583_p8 }
0x1228   : > { %p2581_p6 = pneg %p2580_p5 }
0x122a   : > { %p2586_p4 = pnand %p2585_p2, %p2581_p6 }
0x122b   : > { %v1295_v23 = vpop.permute.xlu1 %1294 }
0x122c   : > { %v1305_v30 = vsel %vm797_vm13, %v3275_v17, %v1295_v23  ;;  %v1348_v17 = vunpack.c.l.bf16 %v1347_v32 }
0x122d   : > { %v1307_v21 = vsel %vm1306_vm0, %v1305_v30, %v1299_v29 }
0x122e   : > { %1349 = vst.msk [vmem:[%s3184_s9] sm:$0xff] %vm797_vm13, %v1348_v17 }
0x127d   : > { %v1303_v20 = vpop.permute.xlu2 %1302 }
0x127e   : > { %v1309_v28 = vsel %vm1308_vm1, %v1307_v21, %v1303_v20 }
0x127f   : > { %v1310_v31 = vpack.c.bf16 %v1309_v28, %v1309_v28 }
0x1281   : > { %1907 = vmatmul.msk.bf16.vlgmr.msra.gmra.mxu2 %vm694_vm10, %v1310_v31 }
0x1304   : > { %v1339_v46 = vpop.f32.mrf.mxu2 }
0x1305   : > { %v1340_v47 = vadd.f32 %v1339_v46, %v3219_v13 }
0x1307   : > { %1343 = vst.msk [vmem:[%s3180_s26] sm:$0xff] %vm694_vm10, %v1340_v47 }
0x1308   : > { %2589 = shalt.err (!%p2586_p4)
}
0x1309   : > { %1962 = dma.vmem_to_hbm [thread:$0]  (%p3132_p7), %s1398_s21, 128, %s1400_s29, %s1375_s22   ;;  %v1444_v48 = vld [vmem:[%s3182_s27] sm:$0xff] (%p3132_p7)  ;;  %v1446_v49 = vld [vmem:[%s3182_s27 + $0x8] sm:$0xff] (%p3132_p7)  ;;  %v1448_v50 = vld [vmem:[%s3182_s27 + $0x10] sm:$0xff] (%p3132_p7) }
0x130a   : > { %1405 = sbr.rel (!%p3132_p7) target bundleno = 4888 (0x1318), region = 112  ;;  %s3592_s3 = sld [smem:[#allocation25_spill]] (%p3132_p7)  ;;  %v1450_v51 = vld [vmem:[%s3182_s27 + $0x18] sm:$0xff] (%p3132_p7) }
0x130b   : > { %s3593_s26 = sld [smem:[#allocation24_spill]] (%p3132_p7) }
0x130c   : > { %v1341_v13 = vpop.f32.mrf.mxu2  ;;  %s3594_s7 = sld [smem:[#allocation35_spill]] (%p3132_p7) }
0x1310   : > { %s1925_s5 = sshll.u32 %s3592_s3, 3 }
0x1311   : > { %s1407_s4 = sadd.s32 %s3593_s26, %s1925_s5 }
0x1312   : > { %s1926_s16 = sshll.u32 %s1407_s4, 3 }
0x1313   : > { %s1409_s25 = scalar_lea.vmem %s3594_s7, %s1926_s16 }
0x1314   : > { %1445 = vst [vmem:[%s1409_s25] sm:$0xff] %v1444_v48 }
0x1315   : > { %1447 = vst [vmem:[%s1409_s25 + $0x10] sm:$0xff] %v1446_v49 }
0x1316   : > { %1449 = vst [vmem:[%s1409_s25 + $0x20] sm:$0xff] %v1448_v50 }
0x1317   : > { %1451 = vst [vmem:[%s1409_s25 + $0x30] sm:$0xff] %v1450_v51 }
0x1318 PF: > { %1457 = sbr.rel (!%p3132_p7) target bundleno = 4902 (0x1326), region = 150  ;;  %s3595_s21 = sld [smem:[#allocation25_spill]] (%p3132_p7)  ;;  %v1496_v52 = vld [vmem:[%s3184_s9] sm:$0xff] (%p3132_p7)  ;;  %v1498_v53 = vld [vmem:[%s3184_s9 + $0x8] sm:$0xff] (%p3132_p7)  ;;  %v1500_v54 = vld [vmem:[%s3184_s9 + $0x10] sm:$0xff] (%p3132_p7) }
0x1319   : > { %s3596_s29 = sld [smem:[#allocation24_spill]] (%p3132_p7)  ;;  %v1502_v55 = vld [vmem:[%s3184_s9 + $0x18] sm:$0xff] (%p3132_p7) }
0x131a   : > { %s3597_s3 = sld [smem:[#allocation36_spill]] (%p3132_p7) }
0x131e   : > { %s1927_s22 = sshll.u32 %s3595_s21, 3 }
0x131f   : > { %s1459_s24 = sadd.s32 %s3596_s29, %s1927_s22 }
0x1320   : > { %s1928_s2 = sshll.u32 %s1459_s24, 3 }
0x1321   : > { %s1461_s26 = scalar_lea.vmem %s3597_s3, %s1928_s2 }
0x1322   : > { %1497 = vst [vmem:[%s1461_s26] sm:$0xff] %v1496_v52 }
0x1323   : > { %1499 = vst [vmem:[%s1461_s26 + $0x10] sm:$0xff] %v1498_v53 }
0x1324   : > { %1501 = vst [vmem:[%s1461_s26 + $0x20] sm:$0xff] %v1500_v54 }
0x1325   : > { %1503 = vst [vmem:[%s1461_s26 + $0x30] sm:$0xff] %v1502_v55 }
0x1326 PF: > { %p1999_p7 = scmp.ge.s32.totalorder %s2808_s19, 2  ;;  %s1515_s28 = sand.u32 1, %s2768_s30  }
0x1327   : > { %s1516_s5 = scalar_lea.sflag [#allocation7], %s1515_s28 }
0x1328   : > { %p1985_p1 = pnand %p1999_p7, %p3145_p10 }
0x132a   : > { %p1986_p11 = pneg %p1985_p1 }
0x132c   : > { %2763 = dma.done.wait (%p1986_p11), %s1516_s5, 128  }
0x132d   : > { %2765 = vsyncadd (%p1986_p11), %s1516_s5, 4294967168  ;;  %s29_s19 = sadd.s32 1, %s2808_s19   ;;  %s3598_s9 = sld [smem:[#allocation26_spill]] }
0x132e   : > { %p26_p12 = scmp.ge.s32.totalorder %s29_s19, 6   ;;  %s3599_s4 = sld [smem:[#allocation27_spill]] }
0x132f   : > { %s3600_s30 = smov %s2772_s10  ;;  %s3601_s10 = smov %s2776_s11 }
0x1330   : > { %s3602_s11 = smov %s3140_s23  ;;  %s3603_s12 = smov %s2784_s13 }
0x1331   : > { %s3604_s13 = smov %s2788_s14  ;;  %s3605_s14 = smov %s3137_s1 }
0x1332   : > { %s3606_s15 = smov %s2800_s17  ;;  %s3607_s16 = smov %s2804_s18 }
0x1333   : > { %s3608_s17 = smov %s3598_s9  ;;  %28 = sbr.rel (!%p26_p12) target bundleno = 22 (0x16), region = 319 }
0x1334   : > { %s3609_s18 = smov %s3599_s4 }
0x1338   :  { %1536 = vsyncpa [#allocation6], 1 }
0x1339   :  { %1538 = vsyncpa [#allocation6 + $0x1], 1 }
0x133a   :  { %1539 = vsyncpa [#allocation9], 1 }
0x133b   :  { %1540 = vsyncpa [#allocation12], 1 }
0x133c   :  { %1541 = vsyncpa [#allocation15], 1 }
0x133d   :  { %1542 = vsyncpa [#allocation7], 1 }
0x133e   :  { %1544 = vsyncpa [#allocation7 + $0x1], 1 }

</bundles_post_ra>
